<compile_context>
chip_gen: v6e
topology: v6e:2x2x1
jax: 0.10.0
libtpu: 0.0.40
codegen_flags: <defaults>
</compile_context>

<pallas_src>
import functools
import math

import jax
import jax.numpy as jnp
from jax.experimental import pallas as pl
from jax.experimental.pallas import tpu as pltpu

EPS = 1e-5
F32 = jnp.float32
ACT = jnp.bfloat16          # inter-layer activation / MXU-input dtype
NEG = -1e30                 # max-pool padding value


def _round_up(n, m):
    return ((n + m - 1) // m) * m


def _ceil_div(a, b):
    return -(-a // b)


# ------------------------- Pallas kernels -------------------------

def _conv_tap_kernel(x_ref, w_ref, shift_ref, o_ref, *, tap_offsets, r_out, relu):
    """Direct conv: accumulate KH*KW shifted matmuls over the flattened image.

    x_ref:     (1, Rin, Cin)    flattened, spatially padded image (bf16)
    w_ref:     (T, Cin, Cout)   per-tap weights, BN scale folded in (bf16)
    shift_ref: (1, Cout)        BN shift (+ conv bias), f32
    o_ref:     (1, r_out, Cout) output rows on the padded-width grid (bf16)
    """
    acc = jnp.dot(x_ref[0, pl.ds(tap_offsets[0], r_out), :], w_ref[0],
                  preferred_element_type=jnp.float32)
    for t in range(1, len(tap_offsets)):
        acc = acc + jnp.dot(x_ref[0, pl.ds(tap_offsets[t], r_out), :], w_ref[t],
                            preferred_element_type=jnp.float32)
    out = acc + shift_ref[...]
    if relu:
        out = jnp.maximum(out, 0.0)
    o_ref[0] = out.astype(o_ref.dtype)


def _add_act_kernel(a_ref, b_ref, o_ref, *, relu):
    v = a_ref[...].astype(jnp.float32) + b_ref[...].astype(jnp.float32)
    if relu:
        v = jnp.maximum(v, 0.0)
    o_ref[...] = v.astype(o_ref.dtype)


def _maxpool_relu_kernel(x_ref, o_ref):
    # x_ref: (9, TM, C) stacked 3x3 pooling windows -> max over windows + ReLU
    v = jnp.max(x_ref[...].astype(jnp.float32), axis=0)
    o_ref[...] = jnp.maximum(v, 0.0).astype(o_ref.dtype)


# ------------------------- Pallas wrappers -------------------------

def _conv_flat_pallas(x_flat, w_taps, shift, r_out, win, kh, kw, relu):
    # x_flat: (N, Rin, Cin) bf16, w_taps: (T, Cin, Cout) bf16, shift: (1, Cout) f32
    N, Rin, Cin = x_flat.shape
    T, _, Cout = w_taps.shape
    tap_offsets = tuple(qi * win + qj for qi in range(kh) for qj in range(kw))
    kernel = functools.partial(_conv_tap_kernel, tap_offsets=tap_offsets,
                               r_out=r_out, relu=relu)
    return pl.pallas_call(
        kernel,
        out_shape=jax.ShapeDtypeStruct((N, r_out, Cout), ACT),
        grid=(N,),
        in_specs=[
            pl.BlockSpec((1, Rin, Cin), lambda n: (n, 0, 0)),
            pl.BlockSpec((T, Cin, Cout), lambda n: (0, 0, 0)),
            pl.BlockSpec((1, Cout), lambda n: (0, 0)),
        ],
        out_specs=pl.BlockSpec((1, r_out, Cout), lambda n: (n, 0, 0)),
        compiler_params=pltpu.CompilerParams(dimension_semantics=("parallel",)),
    )(x_flat, w_taps, shift)


def fused_add(a, b, relu):
    # out = (a + b), optionally ReLU'd, in a single row-tiled pass.
    shape = a.shape
    C = shape[-1]
    M = math.prod(shape[:-1])
    a2 = a.reshape(M, C)
    b2 = b.reshape(M, C)
    tm = min(512, _round_up(M, 8))
    out = pl.pallas_call(
        functools.partial(_add_act_kernel, relu=relu),
        out_shape=jax.ShapeDtypeStruct((M, C), a.dtype),
        grid=(pl.cdiv(M, tm),),
        in_specs=[pl.BlockSpec((tm, C), lambda i: (i, 0)),
                  pl.BlockSpec((tm, C), lambda i: (i, 0))],
        out_specs=pl.BlockSpec((tm, C), lambda i: (i, 0)),
        compiler_params=pltpu.CompilerParams(dimension_semantics=("parallel",)),
    )(a2, b2)
    return out.reshape(shape)


def maxpool_3x3_s2_p1_relu(x):
    # MaxPool2d(3, stride=2, padding=1) with the forward's trailing F.relu fused.
    N, H, W, C = x.shape
    OH = (H + 2 - 3) // 2 + 1
    OW = (W + 2 - 3) // 2 + 1
    xp = jnp.pad(x, ((0, 0), (1, 1), (1, 1), (0, 0)), constant_values=NEG)
    wins = [xp[:, i:i + 2 * OH:2, j:j + 2 * OW:2, :]
            for i in range(3) for j in range(3)]
    M = N * OH * OW
    stk = jnp.stack(wins, axis=0).reshape(9, M, C)
    tm = min(512, _round_up(M, 8))
    out = pl.pallas_call(
        _maxpool_relu_kernel,
        out_shape=jax.ShapeDtypeStruct((M, C), x.dtype),
        grid=(pl.cdiv(M, tm),),
        in_specs=[pl.BlockSpec((9, tm, C), lambda i: (0, i, 0))],
        out_specs=pl.BlockSpec((tm, C), lambda i: (i, 0)),
        compiler_params=pltpu.CompilerParams(dimension_semantics=("parallel",)),
    )(stk)
    return out.reshape(N, OH, OW, C)


# ------------------------- Conv + BN wrapper -------------------------

def conv_bn(x, w, conv_bias, bn, stride, pad, relu):
    """x: (N,H,W,Cin) NHWC (bf16); w: PyTorch (Cout,Cin,KH,KW) f32."""
    Cout, Cin, KH, KW = w.shape
    N, H, W, _ = x.shape
    OH = (H + 2 * pad - KH) // stride + 1
    OW = (W + 2 * pad - KW) // stride + 1

    gamma, beta, mean, var = bn
    scale = gamma / jnp.sqrt(var + EPS)
    shift = beta - mean * scale
    if conv_bias is not None:
        shift = shift + conv_bias * scale
    shift = shift.reshape(1, Cout).astype(F32)

    # (KH, KW, Cin, Cout) with BN scale folded into the weights.
    wt = jnp.transpose(w, (2, 3, 1, 0)) * scale[None, None, None, :]

    # 1x1 stride-s conv == spatial subsample + 1x1 stride-1 conv.
    if KH == 1 and KW == 1 and stride > 1:
        assert pad == 0
        x = x[:, ::stride, ::stride, :]
        N, H, W, _ = x.shape
        stride = 1

    if stride > 1:
        # Space-to-depth: stride-s KHxKW conv -> stride-1 ceil(K/s) conv, s*s*Cin channels.
        s = stride
        khp, kwp = _round_up(KH, s), _round_up(KW, s)
        kh2, kw2 = khp // s, kwp // s
        cin2 = s * s * Cin
        wt = jnp.pad(wt, ((0, khp - KH), (0, kwp - KW), (0, 0), (0, 0)))
        wt = wt.reshape(kh2, s, kw2, s, Cin, Cout).transpose(0, 2, 1, 3, 4, 5)
        wt = wt.reshape(kh2, kw2, cin2, Cout)
        win = OW - 1 + kw2                      # flat row stride after s2d
        r_out = _round_up(OH * win, 8)
        rin = r_out + (kh2 - 1) * win + (kw2 - 1)
        hs = _ceil_div(rin, win)
        hneed, wneed = hs * s, win * s
        pb, pr = hneed - H - pad, wneed - W - pad
        assert pb >= 0 and pr >= 0
        xp = jnp.pad(x, ((0, 0), (pad, pb), (pad, pr), (0, 0)))
        xp = xp.reshape(N, hs, s, win, s, Cin).transpose(0, 1, 3, 2, 4, 5)
        xp = xp.reshape(N, hs, win, cin2)
    else:
        kh2, kw2, cin2 = KH, KW, Cin
        win = W + 2 * pad
        r_out = _round_up(OH * win, 8)
        rin = r_out + (kh2 - 1) * win + (kw2 - 1)
        hin = _ceil_div(rin, win)
        pb = hin - H - pad
        xp = jnp.pad(x, ((0, 0), (pad, pb), (pad, pad), (0, 0)))

    x_flat = xp.reshape(N, -1, cin2).astype(ACT)
    w_taps = wt.reshape(kh2 * kw2, cin2, Cout).astype(ACT)

    out = _conv_flat_pallas(x_flat, w_taps, shift, r_out, win, kh2, kw2, relu)
    # Valid outputs live at flat row oh*win + ow.
    out = out[:, :OH * win, :].reshape(N, OH, win, Cout)[:, :, :OW, :]
    return out


# ------------------------- Parameters -------------------------

def _conv_w(key, cout, cin, kh, kw):
    n = kh * kw * cout
    return jax.random.normal(key, (cout, cin, kh, kw), F32) * math.sqrt(2.0 / n)


def _conv_b(key, cout, cin, kh, kw):
    bound = 1.0 / math.sqrt(cin * kh * kw)
    return jax.random.uniform(key, (cout,), F32, -bound, bound)


def _bn(c):
    # (gamma, beta, running_mean, running_var) as set by the module's init
    return (jnp.ones((c,), F32), jnp.zeros((c,), F32),
            jnp.zeros((c,), F32), jnp.ones((c,), F32))


def init_params(key, channels, num_layers=(2, 2)):
    keys = iter(jax.random.split(key, 128))
    p = {}
    # layer1: Conv(channels,64,7,s2,p3,bias=False) + BN (+ReLU, maxpool)
    p['l1_conv'] = _conv_w(next(keys), 64, channels, 7, 7)
    p['l1_bn'] = _bn(64)
    # layer2: Conv(64,64,3,bias=False)+BN+ReLU, Conv(64,64,3,bias=True)+BN
    p['l2_convA'] = _conv_w(next(keys), 64, 64, 3, 3)
    p['l2_bnA'] = _bn(64)
    p['l2_convB'] = _conv_w(next(keys), 64, 64, 3, 3)
    p['l2_convB_b'] = _conv_b(next(keys), 64, 64, 3, 3)
    p['l2_bnB'] = _bn(64)
    # layer3: Conv(64,64,3,bias=True)+BN+ReLU, Conv(64,64,3,bias=True)+BN
    p['l3_convA'] = _conv_w(next(keys), 64, 64, 3, 3)
    p['l3_convA_b'] = _conv_b(next(keys), 64, 64, 3, 3)
    p['l3_bnA'] = _bn(64)
    p['l3_convB'] = _conv_w(next(keys), 64, 64, 3, 3)
    p['l3_convB_b'] = _conv_b(next(keys), 64, 64, 3, 3)
    p['l3_bnB'] = _bn(64)
    # layer4: BasicBlock stack (expansion=1), 64 -> 128, stride 2 on block 0
    blocks = []
    in_planes, planes, stride = 64, 128, 2
    for _ in range(num_layers[0]):
        blk = {
            'conv1': _conv_w(next(keys), planes, in_planes, 3, 3),
            'conv1_b': _conv_b(next(keys), planes, in_planes, 3, 3),
            'bn1': _bn(planes),
            'conv2': _conv_w(next(keys), planes, planes, 3, 3),
            'conv2_b': _conv_b(next(keys), planes, planes, 3, 3),
            'bn2': _bn(planes),
            'stride': stride,
        }
        if stride != 1 or planes != in_planes:
            blk['dc_conv'] = _conv_w(next(keys), planes, in_planes, 1, 1)
            blk['dc_conv_b'] = _conv_b(next(keys), planes, in_planes, 1, 1)
            blk['dc_bn'] = _bn(planes)
        blocks.append(blk)
        in_planes, stride = planes, 1
    p['layer4'] = blocks
    return p


# ------------------------- Forward -------------------------

def basic_block_forward(x, blk):
    out = conv_bn(x, blk['conv1'], blk['conv1_b'], blk['bn1'],
                  stride=blk['stride'], pad=1, relu=True)
    out = conv_bn(out, blk['conv2'], blk['conv2_b'], blk['bn2'],
                  stride=1, pad=1, relu=False)
    if 'dc_conv' in blk:
        res = conv_bn(x, blk['dc_conv'], blk['dc_conv_b'], blk['dc_bn'],
                      stride=blk['stride'], pad=0, relu=False)
    else:
        res = x
    return fused_add(out, res, relu=True)       # out += res; relu(out)


def resnet18_client_forward(params, x_nchw, volly=None):
    x = jnp.transpose(x_nchw, (0, 2, 3, 1)).astype(ACT)     # NCHW -> NHWC, bf16
    # layer1: conv7x7/2 + BN + ReLU + maxpool3x3/2; forward's F.relu fused in pool
    h = conv_bn(x, params['l1_conv'], None, params['l1_bn'],
                stride=2, pad=3, relu=True)
    resudial1 = maxpool_3x3_s2_p1_relu(h)
    # layer2; x = layer2(resudial1) + resudial1; resudial2 = relu(x)
    h = conv_bn(resudial1, params['l2_convA'], None, params['l2_bnA'],
                stride=1, pad=1, relu=True)
    h = conv_bn(h, params['l2_convB'], params['l2_convB_b'], params['l2_bnB'],
                stride=1, pad=1, relu=False)
    resudial2 = fused_add(h, resudial1, relu=True)
    # layer3; x = layer3(resudial2) + resudial2; x = relu(x)
    h = conv_bn(resudial2, params['l3_convA'], params['l3_convA_b'], params['l3_bnA'],
                stride=1, pad=1, relu=True)
    h = conv_bn(h, params['l3_convB'], params['l3_convB_b'], params['l3_bnB'],
                stride=1, pad=1, relu=False)
    h = fused_add(h, resudial2, relu=True)
    # layer4: residual BasicBlocks (64 -> 128, /2)
    for blk in params['layer4']:
        h = basic_block_forward(h, blk)
    out = jnp.transpose(h, (0, 3, 1, 2)).astype(F32)         # NHWC -> NCHW
    return out, volly


if __name__ == "__main__":
    key = jax.random.PRNGKey(0)
    kp, kx = jax.random.split(key)
    channels = 4
    params = init_params(kp, channels, num_layers=(2, 2))
    x = jax.random.normal(kx, (2, channels, 16, 16), F32)    # NCHW like PyTorch

    fwd = jax.jit(lambda inp: resnet18_client_forward(params, inp, volly=None))
    out, volly = fwd(x)
    out = jax.block_until_ready(out)
    assert out.shape == (2, 128, 2, 2), out.shape
    assert volly is None
    print("KERNEL_OK")
</pallas_src>

<mosaic_0001>
module attributes {stable_mosaic.version = 11 : i64} {
  func.func @_conv_tap_kernel(%arg0: i32, %arg1: memref<1x132x16xbf16, #tpu.memory_space<vmem>>, %arg2: memref<16x16x64xbf16, #tpu.memory_space<vmem>>, %arg3: memref<1x64xf32, #tpu.memory_space<vmem>>, %arg4: memref<1x88x64xbf16, #tpu.memory_space<vmem>>) attributes {dimension_semantics = [#tpu.dimension_semantics<parallel>], iteration_bounds = array<i64: 2>, scalar_prefetch = 0 : i64, scratch_operands = 0 : i64, tpu.core_type = #tpu.core_type<tc>, window_params = [{transform_indices = @transform_0, window_bounds = array<i64: 1, 132, 16>}, {pipeline_mode = #tpu.pipeline_mode<synchronous>, transform_indices = @transform_1, window_bounds = array<i64: 16, 16, 64>}, {pipeline_mode = #tpu.pipeline_mode<synchronous>, transform_indices = @transform_2, window_bounds = array<i64: 1, 64>}, {transform_indices = @transform_3, window_bounds = array<i64: 1, 88, 64>}]} {
    %c0 = arith.constant 0 : index
    %c0_0 = arith.constant 0 : index
    %c0_1 = arith.constant 0 : index
    %0 = vector.load %arg1[%c0, %c0_0, %c0_1] : memref<1x132x16xbf16, #tpu.memory_space<vmem>>, vector<1x88x16xbf16>
    %1 = vector.shape_cast %0 : vector<1x88x16xbf16> to vector<88x16xbf16>
    %c0_2 = arith.constant 0 : index
    %c0_3 = arith.constant 0 : index
    %c0_4 = arith.constant 0 : index
    %2 = vector.load %arg2[%c0_2, %c0_3, %c0_4] : memref<16x16x64xbf16, #tpu.memory_space<vmem>>, vector<1x16x64xbf16>
    %3 = vector.shape_cast %2 : vector<1x16x64xbf16> to vector<16x64xbf16>
    %cst = arith.constant dense<0.000000e+00> : vector<88x64xf32>
    %4 = tpu.matmul %1, %3, %cst {dimension_numbers = #tpu.dot_dimension_numbers<[1], [0], [0], [1], [0, 0, 1, 1], [], []>} : vector<88x16xbf16>, vector<16x64xbf16>, vector<88x64xf32> -> vector<88x64xf32>
    %c0_5 = arith.constant 0 : index
    %c1 = arith.constant 1 : index
    %c0_6 = arith.constant 0 : index
    %5 = vector.load %arg1[%c0_5, %c1, %c0_6] : memref<1x132x16xbf16, #tpu.memory_space<vmem>>, vector<1x88x16xbf16>
    %6 = vector.shape_cast %5 : vector<1x88x16xbf16> to vector<88x16xbf16>
    %c1_7 = arith.constant 1 : index
    %c0_8 = arith.constant 0 : index
    %c0_9 = arith.constant 0 : index
    %7 = vector.load %arg2[%c1_7, %c0_8, %c0_9] : memref<16x16x64xbf16, #tpu.memory_space<vmem>>, vector<1x16x64xbf16>
    %8 = vector.shape_cast %7 : vector<1x16x64xbf16> to vector<16x64xbf16>
    %cst_10 = arith.constant dense<0.000000e+00> : vector<88x64xf32>
    %9 = tpu.matmul %6, %8, %cst_10 {dimension_numbers = #tpu.dot_dimension_numbers<[1], [0], [0], [1], [0, 0, 1, 1], [], []>} : vector<88x16xbf16>, vector<16x64xbf16>, vector<88x64xf32> -> vector<88x64xf32>
    %10 = arith.addf %4, %9 : vector<88x64xf32>
    %c0_11 = arith.constant 0 : index
    %c2 = arith.constant 2 : index
    %c0_12 = arith.constant 0 : index
    %11 = vector.load %arg1[%c0_11, %c2, %c0_12] : memref<1x132x16xbf16, #tpu.memory_space<vmem>>, vector<1x88x16xbf16>
    %12 = vector.shape_cast %11 : vector<1x88x16xbf16> to vector<88x16xbf16>
    %c2_13 = arith.constant 2 : index
    %c0_14 = arith.constant 0 : index
    %c0_15 = arith.constant 0 : index
    %13 = vector.load %arg2[%c2_13, %c0_14, %c0_15] : memref<16x16x64xbf16, #tpu.memory_space<vmem>>, vector<1x16x64xbf16>
    %14 = vector.shape_cast %13 : vector<1x16x64xbf16> to vector<16x64xbf16>
    %cst_16 = arith.constant dense<0.000000e+00> : vector<88x64xf32>
    %15 = tpu.matmul %12, %14, %cst_16 {dimension_numbers = #tpu.dot_dimension_numbers<[1], [0], [0], [1], [0, 0, 1, 1], [], []>} : vector<88x16xbf16>, vector<16x64xbf16>, vector<88x64xf32> -> vector<88x64xf32>
    %16 = arith.addf %10, %15 : vector<88x64xf32>
    %c0_17 = arith.constant 0 : index
    %c3 = arith.constant 3 : index
    %c0_18 = arith.constant 0 : index
    %17 = vector.load %arg1[%c0_17, %c3, %c0_18] : memref<1x132x16xbf16, #tpu.memory_space<vmem>>, vector<1x88x16xbf16>
    %18 = vector.shape_cast %17 : vector<1x88x16xbf16> to vector<88x16xbf16>
    %c3_19 = arith.constant 3 : index
    %c0_20 = arith.constant 0 : index
    %c0_21 = arith.constant 0 : index
    %19 = vector.load %arg2[%c3_19, %c0_20, %c0_21] : memref<16x16x64xbf16, #tpu.memory_space<vmem>>, vector<1x16x64xbf16>
    %20 = vector.shape_cast %19 : vector<1x16x64xbf16> to vector<16x64xbf16>
    %cst_22 = arith.constant dense<0.000000e+00> : vector<88x64xf32>
    %21 = tpu.matmul %18, %20, %cst_22 {dimension_numbers = #tpu.dot_dimension_numbers<[1], [0], [0], [1], [0, 0, 1, 1], [], []>} : vector<88x16xbf16>, vector<16x64xbf16>, vector<88x64xf32> -> vector<88x64xf32>
    %22 = arith.addf %16, %21 : vector<88x64xf32>
    %c0_23 = arith.constant 0 : index
    %c11 = arith.constant 11 : index
    %c0_24 = arith.constant 0 : index
    %23 = vector.load %arg1[%c0_23, %c11, %c0_24] : memref<1x132x16xbf16, #tpu.memory_space<vmem>>, vector<1x88x16xbf16>
    %24 = vector.shape_cast %23 : vector<1x88x16xbf16> to vector<88x16xbf16>
    %c4 = arith.constant 4 : index
    %c0_25 = arith.constant 0 : index
    %c0_26 = arith.constant 0 : index
    %25 = vector.load %arg2[%c4, %c0_25, %c0_26] : memref<16x16x64xbf16, #tpu.memory_space<vmem>>, vector<1x16x64xbf16>
    %26 = vector.shape_cast %25 : vector<1x16x64xbf16> to vector<16x64xbf16>
    %cst_27 = arith.constant dense<0.000000e+00> : vector<88x64xf32>
    %27 = tpu.matmul %24, %26, %cst_27 {dimension_numbers = #tpu.dot_dimension_numbers<[1], [0], [0], [1], [0, 0, 1, 1], [], []>} : vector<88x16xbf16>, vector<16x64xbf16>, vector<88x64xf32> -> vector<88x64xf32>
    %28 = arith.addf %22, %27 : vector<88x64xf32>
    %c0_28 = arith.constant 0 : index
    %c12 = arith.constant 12 : index
    %c0_29 = arith.constant 0 : index
    %29 = vector.load %arg1[%c0_28, %c12, %c0_29] : memref<1x132x16xbf16, #tpu.memory_space<vmem>>, vector<1x88x16xbf16>
    %30 = vector.shape_cast %29 : vector<1x88x16xbf16> to vector<88x16xbf16>
    %c5 = arith.constant 5 : index
    %c0_30 = arith.constant 0 : index
    %c0_31 = arith.constant 0 : index
    %31 = vector.load %arg2[%c5, %c0_30, %c0_31] : memref<16x16x64xbf16, #tpu.memory_space<vmem>>, vector<1x16x64xbf16>
    %32 = vector.shape_cast %31 : vector<1x16x64xbf16> to vector<16x64xbf16>
    %cst_32 = arith.constant dense<0.000000e+00> : vector<88x64xf32>
    %33 = tpu.matmul %30, %32, %cst_32 {dimension_numbers = #tpu.dot_dimension_numbers<[1], [0], [0], [1], [0, 0, 1, 1], [], []>} : vector<88x16xbf16>, vector<16x64xbf16>, vector<88x64xf32> -> vector<88x64xf32>
    %34 = arith.addf %28, %33 : vector<88x64xf32>
    %c0_33 = arith.constant 0 : index
    %c13 = arith.constant 13 : index
    %c0_34 = arith.constant 0 : index
    %35 = vector.load %arg1[%c0_33, %c13, %c0_34] : memref<1x132x16xbf16, #tpu.memory_space<vmem>>, vector<1x88x16xbf16>
    %36 = vector.shape_cast %35 : vector<1x88x16xbf16> to vector<88x16xbf16>
    %c6 = arith.constant 6 : index
    %c0_35 = arith.constant 0 : index
    %c0_36 = arith.constant 0 : index
    %37 = vector.load %arg2[%c6, %c0_35, %c0_36] : memref<16x16x64xbf16, #tpu.memory_space<vmem>>, vector<1x16x64xbf16>
    %38 = vector.shape_cast %37 : vector<1x16x64xbf16> to vector<16x64xbf16>
    %cst_37 = arith.constant dense<0.000000e+00> : vector<88x64xf32>
    %39 = tpu.matmul %36, %38, %cst_37 {dimension_numbers = #tpu.dot_dimension_numbers<[1], [0], [0], [1], [0, 0, 1, 1], [], []>} : vector<88x16xbf16>, vector<16x64xbf16>, vector<88x64xf32> -> vector<88x64xf32>
    %40 = arith.addf %34, %39 : vector<88x64xf32>
    %c0_38 = arith.constant 0 : index
    %c14 = arith.constant 14 : index
    %c0_39 = arith.constant 0 : index
    %41 = vector.load %arg1[%c0_38, %c14, %c0_39] : memref<1x132x16xbf16, #tpu.memory_space<vmem>>, vector<1x88x16xbf16>
    %42 = vector.shape_cast %41 : vector<1x88x16xbf16> to vector<88x16xbf16>
    %c7 = arith.constant 7 : index
    %c0_40 = arith.constant 0 : index
    %c0_41 = arith.constant 0 : index
    %43 = vector.load %arg2[%c7, %c0_40, %c0_41] : memref<16x16x64xbf16, #tpu.memory_space<vmem>>, vector<1x16x64xbf16>
    %44 = vector.shape_cast %43 : vector<1x16x64xbf16> to vector<16x64xbf16>
    %cst_42 = arith.constant dense<0.000000e+00> : vector<88x64xf32>
    %45 = tpu.matmul %42, %44, %cst_42 {dimension_numbers = #tpu.dot_dimension_numbers<[1], [0], [0], [1], [0, 0, 1, 1], [], []>} : vector<88x16xbf16>, vector<16x64xbf16>, vector<88x64xf32> -> vector<88x64xf32>
    %46 = arith.addf %40, %45 : vector<88x64xf32>
    %c0_43 = arith.constant 0 : index
    %c22 = arith.constant 22 : index
    %c0_44 = arith.constant 0 : index
    %47 = vector.load %arg1[%c0_43, %c22, %c0_44] : memref<1x132x16xbf16, #tpu.memory_space<vmem>>, vector<1x88x16xbf16>
    %48 = vector.shape_cast %47 : vector<1x88x16xbf16> to vector<88x16xbf16>
    %c8 = arith.constant 8 : index
    %c0_45 = arith.constant 0 : index
    %c0_46 = arith.constant 0 : index
    %49 = vector.load %arg2[%c8, %c0_45, %c0_46] : memref<16x16x64xbf16, #tpu.memory_space<vmem>>, vector<1x16x64xbf16>
    %50 = vector.shape_cast %49 : vector<1x16x64xbf16> to vector<16x64xbf16>
    %cst_47 = arith.constant dense<0.000000e+00> : vector<88x64xf32>
    %51 = tpu.matmul %48, %50, %cst_47 {dimension_numbers = #tpu.dot_dimension_numbers<[1], [0], [0], [1], [0, 0, 1, 1], [], []>} : vector<88x16xbf16>, vector<16x64xbf16>, vector<88x64xf32> -> vector<88x64xf32>
    %52 = arith.addf %46, %51 : vector<88x64xf32>
    %c0_48 = arith.constant 0 : index
    %c23 = arith.constant 23 : index
    %c0_49 = arith.constant 0 : index
    %53 = vector.load %arg1[%c0_48, %c23, %c0_49] : memref<1x132x16xbf16, #tpu.memory_space<vmem>>, vector<1x88x16xbf16>
    %54 = vector.shape_cast %53 : vector<1x88x16xbf16> to vector<88x16xbf16>
    %c9 = arith.constant 9 : index
    %c0_50 = arith.constant 0 : index
    %c0_51 = arith.constant 0 : index
    %55 = vector.load %arg2[%c9, %c0_50, %c0_51] : memref<16x16x64xbf16, #tpu.memory_space<vmem>>, vector<1x16x64xbf16>
    %56 = vector.shape_cast %55 : vector<1x16x64xbf16> to vector<16x64xbf16>
    %cst_52 = arith.constant dense<0.000000e+00> : vector<88x64xf32>
    %57 = tpu.matmul %54, %56, %cst_52 {dimension_numbers = #tpu.dot_dimension_numbers<[1], [0], [0], [1], [0, 0, 1, 1], [], []>} : vector<88x16xbf16>, vector<16x64xbf16>, vector<88x64xf32> -> vector<88x64xf32>
    %58 = arith.addf %52, %57 : vector<88x64xf32>
    %c0_53 = arith.constant 0 : index
    %c24 = arith.constant 24 : index
    %c0_54 = arith.constant 0 : index
    %59 = vector.load %arg1[%c0_53, %c24, %c0_54] : memref<1x132x16xbf16, #tpu.memory_space<vmem>>, vector<1x88x16xbf16>
    %60 = vector.shape_cast %59 : vector<1x88x16xbf16> to vector<88x16xbf16>
    %c10 = arith.constant 10 : index
    %c0_55 = arith.constant 0 : index
    %c0_56 = arith.constant 0 : index
    %61 = vector.load %arg2[%c10, %c0_55, %c0_56] : memref<16x16x64xbf16, #tpu.memory_space<vmem>>, vector<1x16x64xbf16>
    %62 = vector.shape_cast %61 : vector<1x16x64xbf16> to vector<16x64xbf16>
    %cst_57 = arith.constant dense<0.000000e+00> : vector<88x64xf32>
    %63 = tpu.matmul %60, %62, %cst_57 {dimension_numbers = #tpu.dot_dimension_numbers<[1], [0], [0], [1], [0, 0, 1, 1], [], []>} : vector<88x16xbf16>, vector<16x64xbf16>, vector<88x64xf32> -> vector<88x64xf32>
    %64 = arith.addf %58, %63 : vector<88x64xf32>
    %c0_58 = arith.constant 0 : index
    %c25 = arith.constant 25 : index
    %c0_59 = arith.constant 0 : index
    %65 = vector.load %arg1[%c0_58, %c25, %c0_59] : memref<1x132x16xbf16, #tpu.memory_space<vmem>>, vector<1x88x16xbf16>
    %66 = vector.shape_cast %65 : vector<1x88x16xbf16> to vector<88x16xbf16>
    %c11_60 = arith.constant 11 : index
    %c0_61 = arith.constant 0 : index
    %c0_62 = arith.constant 0 : index
    %67 = vector.load %arg2[%c11_60, %c0_61, %c0_62] : memref<16x16x64xbf16, #tpu.memory_space<vmem>>, vector<1x16x64xbf16>
    %68 = vector.shape_cast %67 : vector<1x16x64xbf16> to vector<16x64xbf16>
    %cst_63 = arith.constant dense<0.000000e+00> : vector<88x64xf32>
    %69 = tpu.matmul %66, %68, %cst_63 {dimension_numbers = #tpu.dot_dimension_numbers<[1], [0], [0], [1], [0, 0, 1, 1], [], []>} : vector<88x16xbf16>, vector<16x64xbf16>, vector<88x64xf32> -> vector<88x64xf32>
    %70 = arith.addf %64, %69 : vector<88x64xf32>
    %c0_64 = arith.constant 0 : index
    %c33 = arith.constant 33 : index
    %c0_65 = arith.constant 0 : index
    %71 = vector.load %arg1[%c0_64, %c33, %c0_65] : memref<1x132x16xbf16, #tpu.memory_space<vmem>>, vector<1x88x16xbf16>
    %72 = vector.shape_cast %71 : vector<1x88x16xbf16> to vector<88x16xbf16>
    %c12_66 = arith.constant 12 : index
    %c0_67 = arith.constant 0 : index
    %c0_68 = arith.constant 0 : index
    %73 = vector.load %arg2[%c12_66, %c0_67, %c0_68] : memref<16x16x64xbf16, #tpu.memory_space<vmem>>, vector<1x16x64xbf16>
    %74 = vector.shape_cast %73 : vector<1x16x64xbf16> to vector<16x64xbf16>
    %cst_69 = arith.constant dense<0.000000e+00> : vector<88x64xf32>
    %75 = tpu.matmul %72, %74, %cst_69 {dimension_numbers = #tpu.dot_dimension_numbers<[1], [0], [0], [1], [0, 0, 1, 1], [], []>} : vector<88x16xbf16>, vector<16x64xbf16>, vector<88x64xf32> -> vector<88x64xf32>
    %76 = arith.addf %70, %75 : vector<88x64xf32>
    %c0_70 = arith.constant 0 : index
    %c34 = arith.constant 34 : index
    %c0_71 = arith.constant 0 : index
    %77 = vector.load %arg1[%c0_70, %c34, %c0_71] : memref<1x132x16xbf16, #tpu.memory_space<vmem>>, vector<1x88x16xbf16>
    %78 = vector.shape_cast %77 : vector<1x88x16xbf16> to vector<88x16xbf16>
    %c13_72 = arith.constant 13 : index
    %c0_73 = arith.constant 0 : index
    %c0_74 = arith.constant 0 : index
    %79 = vector.load %arg2[%c13_72, %c0_73, %c0_74] : memref<16x16x64xbf16, #tpu.memory_space<vmem>>, vector<1x16x64xbf16>
    %80 = vector.shape_cast %79 : vector<1x16x64xbf16> to vector<16x64xbf16>
    %cst_75 = arith.constant dense<0.000000e+00> : vector<88x64xf32>
    %81 = tpu.matmul %78, %80, %cst_75 {dimension_numbers = #tpu.dot_dimension_numbers<[1], [0], [0], [1], [0, 0, 1, 1], [], []>} : vector<88x16xbf16>, vector<16x64xbf16>, vector<88x64xf32> -> vector<88x64xf32>
    %82 = arith.addf %76, %81 : vector<88x64xf32>
    %c0_76 = arith.constant 0 : index
    %c35 = arith.constant 35 : index
    %c0_77 = arith.constant 0 : index
    %83 = vector.load %arg1[%c0_76, %c35, %c0_77] : memref<1x132x16xbf16, #tpu.memory_space<vmem>>, vector<1x88x16xbf16>
    %84 = vector.shape_cast %83 : vector<1x88x16xbf16> to vector<88x16xbf16>
    %c14_78 = arith.constant 14 : index
    %c0_79 = arith.constant 0 : index
    %c0_80 = arith.constant 0 : index
    %85 = vector.load %arg2[%c14_78, %c0_79, %c0_80] : memref<16x16x64xbf16, #tpu.memory_space<vmem>>, vector<1x16x64xbf16>
    %86 = vector.shape_cast %85 : vector<1x16x64xbf16> to vector<16x64xbf16>
    %cst_81 = arith.constant dense<0.000000e+00> : vector<88x64xf32>
    %87 = tpu.matmul %84, %86, %cst_81 {dimension_numbers = #tpu.dot_dimension_numbers<[1], [0], [0], [1], [0, 0, 1, 1], [], []>} : vector<88x16xbf16>, vector<16x64xbf16>, vector<88x64xf32> -> vector<88x64xf32>
    %88 = arith.addf %82, %87 : vector<88x64xf32>
    %c0_82 = arith.constant 0 : index
    %c36 = arith.constant 36 : index
    %c0_83 = arith.constant 0 : index
    %89 = vector.load %arg1[%c0_82, %c36, %c0_83] : memref<1x132x16xbf16, #tpu.memory_space<vmem>>, vector<1x88x16xbf16>
    %90 = vector.shape_cast %89 : vector<1x88x16xbf16> to vector<88x16xbf16>
    %c15 = arith.constant 15 : index
    %c0_84 = arith.constant 0 : index
    %c0_85 = arith.constant 0 : index
    %91 = vector.load %arg2[%c15, %c0_84, %c0_85] : memref<16x16x64xbf16, #tpu.memory_space<vmem>>, vector<1x16x64xbf16>
    %92 = vector.shape_cast %91 : vector<1x16x64xbf16> to vector<16x64xbf16>
    %cst_86 = arith.constant dense<0.000000e+00> : vector<88x64xf32>
    %93 = tpu.matmul %90, %92, %cst_86 {dimension_numbers = #tpu.dot_dimension_numbers<[1], [0], [0], [1], [0, 0, 1, 1], [], []>} : vector<88x16xbf16>, vector<16x64xbf16>, vector<88x64xf32> -> vector<88x64xf32>
    %94 = arith.addf %88, %93 : vector<88x64xf32>
    %c0_87 = arith.constant 0 : index
    %c0_88 = arith.constant 0 : index
    %95 = vector.load %arg3[%c0_87, %c0_88] : memref<1x64xf32, #tpu.memory_space<vmem>>, vector<1x64xf32>
    %96 = vector.broadcast %95 : vector<1x64xf32> to vector<88x64xf32>
    %97 = arith.addf %94, %96 : vector<88x64xf32>
    %cst_89 = arith.constant 0.000000e+00 : f32
    %98 = vector.broadcast %cst_89 : f32 to vector<88x64xf32>
    %99 = arith.maximumf %97, %98 : vector<88x64xf32>
    %100 = arith.truncf %99 : vector<88x64xf32> to vector<88x64xbf16>
    %c0_90 = arith.constant 0 : index
    %c0_91 = arith.constant 0 : index
    %c0_92 = arith.constant 0 : index
    %101 = vector.load %arg4[%c0_90, %c0_91, %c0_92] : memref<1x88x64xbf16, #tpu.memory_space<vmem>>, vector<1x88x64xbf16>
    %102 = vector.shape_cast %101 : vector<1x88x64xbf16> to vector<88x64xbf16>
    %103 = vector.shape_cast %100 : vector<88x64xbf16> to vector<1x88x64xbf16>
    tpu.vector_store %arg4[%c0_90, %c0_91, %c0_92], %103 {strides = array<i32>} : memref<1x88x64xbf16, #tpu.memory_space<vmem>>, vector<1x88x64xbf16>,
    return
  }
  func.func @transform_0(%arg0: i32) -> (i32, i32, i32) {
    %c0_i32 = arith.constant 0 : i32
    %c0_i32_0 = arith.constant 0 : i32
    %c0_i32_1 = arith.constant 0 : i32
    return %arg0, %c0_i32, %c0_i32_0 : i32, i32, i32
  }
  func.func @transform_1(%arg0: i32) -> (i32, i32, i32) {
    %c0_i32 = arith.constant 0 : i32
    %c0_i32_0 = arith.constant 0 : i32
    %c0_i32_1 = arith.constant 0 : i32
    %c0_i32_2 = arith.constant 0 : i32
    return %c0_i32, %c0_i32_0, %c0_i32_1 : i32, i32, i32
  }
  func.func @transform_2(%arg0: i32) -> (i32, i32) {
    %c0_i32 = arith.constant 0 : i32
    %c0_i32_0 = arith.constant 0 : i32
    %c0_i32_1 = arith.constant 0 : i32
    return %c0_i32, %c0_i32_0 : i32, i32
  }
  func.func @transform_3(%arg0: i32) -> (i32, i32, i32) {
    %c0_i32 = arith.constant 0 : i32
    %c0_i32_0 = arith.constant 0 : i32
    %c0_i32_1 = arith.constant 0 : i32
    return %arg0, %c0_i32, %c0_i32_0 : i32, i32, i32
  }
}

module attributes {stable_mosaic.version = 11 : i64} {
  func.func @_maxpool_relu_kernel(%arg0: i32, %arg1: memref<9x32x64xbf16, #tpu.memory_space<vmem>>, %arg2: memref<32x64xbf16, #tpu.memory_space<vmem>>) attributes {dimension_semantics = [#tpu.dimension_semantics<parallel>], iteration_bounds = array<i64: 1>, scalar_prefetch = 0 : i64, scratch_operands = 0 : i64, tpu.core_type = #tpu.core_type<tc>, window_params = [{transform_indices = @transform_0, window_bounds = array<i64: 9, 32, 64>}, {transform_indices = @transform_1, window_bounds = array<i64: 32, 64>}]} {
    %c0 = arith.constant 0 : index
    %c0_0 = arith.constant 0 : index
    %c0_1 = arith.constant 0 : index
    %0 = vector.load %arg1[%c0, %c0_0, %c0_1] : memref<9x32x64xbf16, #tpu.memory_space<vmem>>, vector<9x32x64xbf16>
    %1 = arith.extf %0 : vector<9x32x64xbf16> to vector<9x32x64xf32>
    %cst = arith.constant dense<0xFF800000> : vector<32x64xf32>
    %2 = vector.multi_reduction <maximumf>, %1, %cst [0] : vector<9x32x64xf32> to vector<32x64xf32>
    %cst_2 = arith.constant 0.000000e+00 : f32
    %3 = vector.broadcast %cst_2 : f32 to vector<32x64xf32>
    %4 = arith.maximumf %2, %3 : vector<32x64xf32>
    %5 = arith.truncf %4 : vector<32x64xf32> to vector<32x64xbf16>
    %c0_3 = arith.constant 0 : index
    %c0_4 = arith.constant 0 : index
    %6 = vector.load %arg2[%c0_3, %c0_4] : memref<32x64xbf16, #tpu.memory_space<vmem>>, vector<32x64xbf16>
    tpu.vector_store %arg2[%c0_3, %c0_4], %5 {strides = array<i32>} : memref<32x64xbf16, #tpu.memory_space<vmem>>, vector<32x64xbf16>,
    return
  }
  func.func @transform_0(%arg0: i32) -> (i32, i32, i32) {
    %c0_i32 = arith.constant 0 : i32
    %c0_i32_0 = arith.constant 0 : i32
    %c0_i32_1 = arith.constant 0 : i32
    return %c0_i32, %arg0, %c0_i32_0 : i32, i32, i32
  }
  func.func @transform_1(%arg0: i32) -> (i32, i32) {
    %c0_i32 = arith.constant 0 : i32
    %c0_i32_0 = arith.constant 0 : i32
    return %arg0, %c0_i32 : i32, i32
  }
}

module attributes {stable_mosaic.version = 11 : i64} {
  func.func @_conv_tap_kernel(%arg0: i32, %arg1: memref<1x42x64xbf16, #tpu.memory_space<vmem>>, %arg2: memref<9x64x64xbf16, #tpu.memory_space<vmem>>, %arg3: memref<1x64xf32, #tpu.memory_space<vmem>>, %arg4: memref<1x24x64xbf16, #tpu.memory_space<vmem>>) attributes {dimension_semantics = [#tpu.dimension_semantics<parallel>], iteration_bounds = array<i64: 2>, scalar_prefetch = 0 : i64, scratch_operands = 0 : i64, tpu.core_type = #tpu.core_type<tc>, window_params = [{transform_indices = @transform_0, window_bounds = array<i64: 1, 42, 64>}, {pipeline_mode = #tpu.pipeline_mode<synchronous>, transform_indices = @transform_1, window_bounds = array<i64: 9, 64, 64>}, {pipeline_mode = #tpu.pipeline_mode<synchronous>, transform_indices = @transform_2, window_bounds = array<i64: 1, 64>}, {transform_indices = @transform_3, window_bounds = array<i64: 1, 24, 64>}]} {
    %c0 = arith.constant 0 : index
    %c0_0 = arith.constant 0 : index
    %c0_1 = arith.constant 0 : index
    %0 = vector.load %arg1[%c0, %c0_0, %c0_1] : memref<1x42x64xbf16, #tpu.memory_space<vmem>>, vector<1x24x64xbf16>
    %1 = vector.shape_cast %0 : vector<1x24x64xbf16> to vector<24x64xbf16>
    %c0_2 = arith.constant 0 : index
    %c0_3 = arith.constant 0 : index
    %c0_4 = arith.constant 0 : index
    %2 = vector.load %arg2[%c0_2, %c0_3, %c0_4] : memref<9x64x64xbf16, #tpu.memory_space<vmem>>, vector<1x64x64xbf16>
    %3 = vector.shape_cast %2 : vector<1x64x64xbf16> to vector<64x64xbf16>
    %cst = arith.constant dense<0.000000e+00> : vector<24x64xf32>
    %4 = tpu.matmul %1, %3, %cst {dimension_numbers = #tpu.dot_dimension_numbers<[1], [0], [0], [1], [0, 0, 1, 1], [], []>} : vector<24x64xbf16>, vector<64x64xbf16>, vector<24x64xf32> -> vector<24x64xf32>
    %c0_5 = arith.constant 0 : index
    %c1 = arith.constant 1 : index
    %c0_6 = arith.constant 0 : index
    %5 = vector.load %arg1[%c0_5, %c1, %c0_6] : memref<1x42x64xbf16, #tpu.memory_space<vmem>>, vector<1x24x64xbf16>
    %6 = vector.shape_cast %5 : vector<1x24x64xbf16> to vector<24x64xbf16>
    %c1_7 = arith.constant 1 : index
    %c0_8 = arith.constant 0 : index
    %c0_9 = arith.constant 0 : index
    %7 = vector.load %arg2[%c1_7, %c0_8, %c0_9] : memref<9x64x64xbf16, #tpu.memory_space<vmem>>, vector<1x64x64xbf16>
    %8 = vector.shape_cast %7 : vector<1x64x64xbf16> to vector<64x64xbf16>
    %cst_10 = arith.constant dense<0.000000e+00> : vector<24x64xf32>
    %9 = tpu.matmul %6, %8, %cst_10 {dimension_numbers = #tpu.dot_dimension_numbers<[1], [0], [0], [1], [0, 0, 1, 1], [], []>} : vector<24x64xbf16>, vector<64x64xbf16>, vector<24x64xf32> -> vector<24x64xf32>
    %10 = arith.addf %4, %9 : vector<24x64xf32>
    %c0_11 = arith.constant 0 : index
    %c2 = arith.constant 2 : index
    %c0_12 = arith.constant 0 : index
    %11 = vector.load %arg1[%c0_11, %c2, %c0_12] : memref<1x42x64xbf16, #tpu.memory_space<vmem>>, vector<1x24x64xbf16>
    %12 = vector.shape_cast %11 : vector<1x24x64xbf16> to vector<24x64xbf16>
    %c2_13 = arith.constant 2 : index
    %c0_14 = arith.constant 0 : index
    %c0_15 = arith.constant 0 : index
    %13 = vector.load %arg2[%c2_13, %c0_14, %c0_15] : memref<9x64x64xbf16, #tpu.memory_space<vmem>>, vector<1x64x64xbf16>
    %14 = vector.shape_cast %13 : vector<1x64x64xbf16> to vector<64x64xbf16>
    %cst_16 = arith.constant dense<0.000000e+00> : vector<24x64xf32>
    %15 = tpu.matmul %12, %14, %cst_16 {dimension_numbers = #tpu.dot_dimension_numbers<[1], [0], [0], [1], [0, 0, 1, 1], [], []>} : vector<24x64xbf16>, vector<64x64xbf16>, vector<24x64xf32> -> vector<24x64xf32>
    %16 = arith.addf %10, %15 : vector<24x64xf32>
    %c0_17 = arith.constant 0 : index
    %c6 = arith.constant 6 : index
    %c0_18 = arith.constant 0 : index
    %17 = vector.load %arg1[%c0_17, %c6, %c0_18] : memref<1x42x64xbf16, #tpu.memory_space<vmem>>, vector<1x24x64xbf16>
    %18 = vector.shape_cast %17 : vector<1x24x64xbf16> to vector<24x64xbf16>
    %c3 = arith.constant 3 : index
    %c0_19 = arith.constant 0 : index
    %c0_20 = arith.constant 0 : index
    %19 = vector.load %arg2[%c3, %c0_19, %c0_20] : memref<9x64x64xbf16, #tpu.memory_space<vmem>>, vector<1x64x64xbf16>
    %20 = vector.shape_cast %19 : vector<1x64x64xbf16> to vector<64x64xbf16>
    %cst_21 = arith.constant dense<0.000000e+00> : vector<24x64xf32>
    %21 = tpu.matmul %18, %20, %cst_21 {dimension_numbers = #tpu.dot_dimension_numbers<[1], [0], [0], [1], [0, 0, 1, 1], [], []>} : vector<24x64xbf16>, vector<64x64xbf16>, vector<24x64xf32> -> vector<24x64xf32>
    %22 = arith.addf %16, %21 : vector<24x64xf32>
    %c0_22 = arith.constant 0 : index
    %c7 = arith.constant 7 : index
    %c0_23 = arith.constant 0 : index
    %23 = vector.load %arg1[%c0_22, %c7, %c0_23] : memref<1x42x64xbf16, #tpu.memory_space<vmem>>, vector<1x24x64xbf16>
    %24 = vector.shape_cast %23 : vector<1x24x64xbf16> to vector<24x64xbf16>
    %c4 = arith.constant 4 : index
    %c0_24 = arith.constant 0 : index
    %c0_25 = arith.constant 0 : index
    %25 = vector.load %arg2[%c4, %c0_24, %c0_25] : memref<9x64x64xbf16, #tpu.memory_space<vmem>>, vector<1x64x64xbf16>
    %26 = vector.shape_cast %25 : vector<1x64x64xbf16> to vector<64x64xbf16>
    %cst_26 = arith.constant dense<0.000000e+00> : vector<24x64xf32>
    %27 = tpu.matmul %24, %26, %cst_26 {dimension_numbers = #tpu.dot_dimension_numbers<[1], [0], [0], [1], [0, 0, 1, 1], [], []>} : vector<24x64xbf16>, vector<64x64xbf16>, vector<24x64xf32> -> vector<24x64xf32>
    %28 = arith.addf %22, %27 : vector<24x64xf32>
    %c0_27 = arith.constant 0 : index
    %c8 = arith.constant 8 : index
    %c0_28 = arith.constant 0 : index
    %29 = vector.load %arg1[%c0_27, %c8, %c0_28] : memref<1x42x64xbf16, #tpu.memory_space<vmem>>, vector<1x24x64xbf16>
    %30 = vector.shape_cast %29 : vector<1x24x64xbf16> to vector<24x64xbf16>
    %c5 = arith.constant 5 : index
    %c0_29 = arith.constant 0 : index
    %c0_30 = arith.constant 0 : index
    %31 = vector.load %arg2[%c5, %c0_29, %c0_30] : memref<9x64x64xbf16, #tpu.memory_space<vmem>>, vector<1x64x64xbf16>
    %32 = vector.shape_cast %31 : vector<1x64x64xbf16> to vector<64x64xbf16>
    %cst_31 = arith.constant dense<0.000000e+00> : vector<24x64xf32>
    %33 = tpu.matmul %30, %32, %cst_31 {dimension_numbers = #tpu.dot_dimension_numbers<[1], [0], [0], [1], [0, 0, 1, 1], [], []>} : vector<24x64xbf16>, vector<64x64xbf16>, vector<24x64xf32> -> vector<24x64xf32>
    %34 = arith.addf %28, %33 : vector<24x64xf32>
    %c0_32 = arith.constant 0 : index
    %c12 = arith.constant 12 : index
    %c0_33 = arith.constant 0 : index
    %35 = vector.load %arg1[%c0_32, %c12, %c0_33] : memref<1x42x64xbf16, #tpu.memory_space<vmem>>, vector<1x24x64xbf16>
    %36 = vector.shape_cast %35 : vector<1x24x64xbf16> to vector<24x64xbf16>
    %c6_34 = arith.constant 6 : index
    %c0_35 = arith.constant 0 : index
    %c0_36 = arith.constant 0 : index
    %37 = vector.load %arg2[%c6_34, %c0_35, %c0_36] : memref<9x64x64xbf16, #tpu.memory_space<vmem>>, vector<1x64x64xbf16>
    %38 = vector.shape_cast %37 : vector<1x64x64xbf16> to vector<64x64xbf16>
    %cst_37 = arith.constant dense<0.000000e+00> : vector<24x64xf32>
    %39 = tpu.matmul %36, %38, %cst_37 {dimension_numbers = #tpu.dot_dimension_numbers<[1], [0], [0], [1], [0, 0, 1, 1], [], []>} : vector<24x64xbf16>, vector<64x64xbf16>, vector<24x64xf32> -> vector<24x64xf32>
    %40 = arith.addf %34, %39 : vector<24x64xf32>
    %c0_38 = arith.constant 0 : index
    %c13 = arith.constant 13 : index
    %c0_39 = arith.constant 0 : index
    %41 = vector.load %arg1[%c0_38, %c13, %c0_39] : memref<1x42x64xbf16, #tpu.memory_space<vmem>>, vector<1x24x64xbf16>
    %42 = vector.shape_cast %41 : vector<1x24x64xbf16> to vector<24x64xbf16>
    %c7_40 = arith.constant 7 : index
    %c0_41 = arith.constant 0 : index
    %c0_42 = arith.constant 0 : index
    %43 = vector.load %arg2[%c7_40, %c0_41, %c0_42] : memref<9x64x64xbf16, #tpu.memory_space<vmem>>, vector<1x64x64xbf16>
    %44 = vector.shape_cast %43 : vector<1x64x64xbf16> to vector<64x64xbf16>
    %cst_43 = arith.constant dense<0.000000e+00> : vector<24x64xf32>
    %45 = tpu.matmul %42, %44, %cst_43 {dimension_numbers = #tpu.dot_dimension_numbers<[1], [0], [0], [1], [0, 0, 1, 1], [], []>} : vector<24x64xbf16>, vector<64x64xbf16>, vector<24x64xf32> -> vector<24x64xf32>
    %46 = arith.addf %40, %45 : vector<24x64xf32>
    %c0_44 = arith.constant 0 : index
    %c14 = arith.constant 14 : index
    %c0_45 = arith.constant 0 : index
    %47 = vector.load %arg1[%c0_44, %c14, %c0_45] : memref<1x42x64xbf16, #tpu.memory_space<vmem>>, vector<1x24x64xbf16>
    %48 = vector.shape_cast %47 : vector<1x24x64xbf16> to vector<24x64xbf16>
    %c8_46 = arith.constant 8 : index
    %c0_47 = arith.constant 0 : index
    %c0_48 = arith.constant 0 : index
    %49 = vector.load %arg2[%c8_46, %c0_47, %c0_48] : memref<9x64x64xbf16, #tpu.memory_space<vmem>>, vector<1x64x64xbf16>
    %50 = vector.shape_cast %49 : vector<1x64x64xbf16> to vector<64x64xbf16>
    %cst_49 = arith.constant dense<0.000000e+00> : vector<24x64xf32>
    %51 = tpu.matmul %48, %50, %cst_49 {dimension_numbers = #tpu.dot_dimension_numbers<[1], [0], [0], [1], [0, 0, 1, 1], [], []>} : vector<24x64xbf16>, vector<64x64xbf16>, vector<24x64xf32> -> vector<24x64xf32>
    %52 = arith.addf %46, %51 : vector<24x64xf32>
    %c0_50 = arith.constant 0 : index
    %c0_51 = arith.constant 0 : index
    %53 = vector.load %arg3[%c0_50, %c0_51] : memref<1x64xf32, #tpu.memory_space<vmem>>, vector<1x64xf32>
    %54 = vector.broadcast %53 : vector<1x64xf32> to vector<24x64xf32>
    %55 = arith.addf %52, %54 : vector<24x64xf32>
    %cst_52 = arith.constant 0.000000e+00 : f32
    %56 = vector.broadcast %cst_52 : f32 to vector<24x64xf32>
    %57 = arith.maximumf %55, %56 : vector<24x64xf32>
    %58 = arith.truncf %57 : vector<24x64xf32> to vector<24x64xbf16>
    %c0_53 = arith.constant 0 : index
    %c0_54 = arith.constant 0 : index
    %c0_55 = arith.constant 0 : index
    %59 = vector.load %arg4[%c0_53, %c0_54, %c0_55] : memref<1x24x64xbf16, #tpu.memory_space<vmem>>, vector<1x24x64xbf16>
    %60 = vector.shape_cast %59 : vector<1x24x64xbf16> to vector<24x64xbf16>
    %61 = vector.shape_cast %58 : vector<24x64xbf16> to vector<1x24x64xbf16>
    tpu.vector_store %arg4[%c0_53, %c0_54, %c0_55], %61 {strides = array<i32>} : memref<1x24x64xbf16, #tpu.memory_space<vmem>>, vector<1x24x64xbf16>,
    return
  }
  func.func @transform_0(%arg0: i32) -> (i32, i32, i32) {
    %c0_i32 = arith.constant 0 : i32
    %c0_i32_0 = arith.constant 0 : i32
    %c0_i32_1 = arith.constant 0 : i32
    return %arg0, %c0_i32, %c0_i32_0 : i32, i32, i32
  }
  func.func @transform_1(%arg0: i32) -> (i32, i32, i32) {
    %c0_i32 = arith.constant 0 : i32
    %c0_i32_0 = arith.constant 0 : i32
    %c0_i32_1 = arith.constant 0 : i32
    %c0_i32_2 = arith.constant 0 : i32
    return %c0_i32, %c0_i32_0, %c0_i32_1 : i32, i32, i32
  }
  func.func @transform_2(%arg0: i32) -> (i32, i32) {
    %c0_i32 = arith.constant 0 : i32
    %c0_i32_0 = arith.constant 0 : i32
    %c0_i32_1 = arith.constant 0 : i32
    return %c0_i32, %c0_i32_0 : i32, i32
  }
  func.func @transform_3(%arg0: i32) -> (i32, i32, i32) {
    %c0_i32 = arith.constant 0 : i32
    %c0_i32_0 = arith.constant 0 : i32
    %c0_i32_1 = arith.constant 0 : i32
    return %arg0, %c0_i32, %c0_i32_0 : i32, i32, i32
  }
}

module attributes {stable_mosaic.version = 11 : i64} {
  func.func @_conv_tap_kernel(%arg0: i32, %arg1: memref<1x42x64xbf16, #tpu.memory_space<vmem>>, %arg2: memref<9x64x64xbf16, #tpu.memory_space<vmem>>, %arg3: memref<1x64xf32, #tpu.memory_space<vmem>>, %arg4: memref<1x24x64xbf16, #tpu.memory_space<vmem>>) attributes {dimension_semantics = [#tpu.dimension_semantics<parallel>], iteration_bounds = array<i64: 2>, scalar_prefetch = 0 : i64, scratch_operands = 0 : i64, tpu.core_type = #tpu.core_type<tc>, window_params = [{transform_indices = @transform_0, window_bounds = array<i64: 1, 42, 64>}, {pipeline_mode = #tpu.pipeline_mode<synchronous>, transform_indices = @transform_1, window_bounds = array<i64: 9, 64, 64>}, {pipeline_mode = #tpu.pipeline_mode<synchronous>, transform_indices = @transform_2, window_bounds = array<i64: 1, 64>}, {transform_indices = @transform_3, window_bounds = array<i64: 1, 24, 64>}]} {
    %c0 = arith.constant 0 : index
    %c0_0 = arith.constant 0 : index
    %c0_1 = arith.constant 0 : index
    %0 = vector.load %arg1[%c0, %c0_0, %c0_1] : memref<1x42x64xbf16, #tpu.memory_space<vmem>>, vector<1x24x64xbf16>
    %1 = vector.shape_cast %0 : vector<1x24x64xbf16> to vector<24x64xbf16>
    %c0_2 = arith.constant 0 : index
    %c0_3 = arith.constant 0 : index
    %c0_4 = arith.constant 0 : index
    %2 = vector.load %arg2[%c0_2, %c0_3, %c0_4] : memref<9x64x64xbf16, #tpu.memory_space<vmem>>, vector<1x64x64xbf16>
    %3 = vector.shape_cast %2 : vector<1x64x64xbf16> to vector<64x64xbf16>
    %cst = arith.constant dense<0.000000e+00> : vector<24x64xf32>
    %4 = tpu.matmul %1, %3, %cst {dimension_numbers = #tpu.dot_dimension_numbers<[1], [0], [0], [1], [0, 0, 1, 1], [], []>} : vector<24x64xbf16>, vector<64x64xbf16>, vector<24x64xf32> -> vector<24x64xf32>
    %c0_5 = arith.constant 0 : index
    %c1 = arith.constant 1 : index
    %c0_6 = arith.constant 0 : index
    %5 = vector.load %arg1[%c0_5, %c1, %c0_6] : memref<1x42x64xbf16, #tpu.memory_space<vmem>>, vector<1x24x64xbf16>
    %6 = vector.shape_cast %5 : vector<1x24x64xbf16> to vector<24x64xbf16>
    %c1_7 = arith.constant 1 : index
    %c0_8 = arith.constant 0 : index
    %c0_9 = arith.constant 0 : index
    %7 = vector.load %arg2[%c1_7, %c0_8, %c0_9] : memref<9x64x64xbf16, #tpu.memory_space<vmem>>, vector<1x64x64xbf16>
    %8 = vector.shape_cast %7 : vector<1x64x64xbf16> to vector<64x64xbf16>
    %cst_10 = arith.constant dense<0.000000e+00> : vector<24x64xf32>
    %9 = tpu.matmul %6, %8, %cst_10 {dimension_numbers = #tpu.dot_dimension_numbers<[1], [0], [0], [1], [0, 0, 1, 1], [], []>} : vector<24x64xbf16>, vector<64x64xbf16>, vector<24x64xf32> -> vector<24x64xf32>
    %10 = arith.addf %4, %9 : vector<24x64xf32>
    %c0_11 = arith.constant 0 : index
    %c2 = arith.constant 2 : index
    %c0_12 = arith.constant 0 : index
    %11 = vector.load %arg1[%c0_11, %c2, %c0_12] : memref<1x42x64xbf16, #tpu.memory_space<vmem>>, vector<1x24x64xbf16>
    %12 = vector.shape_cast %11 : vector<1x24x64xbf16> to vector<24x64xbf16>
    %c2_13 = arith.constant 2 : index
    %c0_14 = arith.constant 0 : index
    %c0_15 = arith.constant 0 : index
    %13 = vector.load %arg2[%c2_13, %c0_14, %c0_15] : memref<9x64x64xbf16, #tpu.memory_space<vmem>>, vector<1x64x64xbf16>
    %14 = vector.shape_cast %13 : vector<1x64x64xbf16> to vector<64x64xbf16>
    %cst_16 = arith.constant dense<0.000000e+00> : vector<24x64xf32>
    %15 = tpu.matmul %12, %14, %cst_16 {dimension_numbers = #tpu.dot_dimension_numbers<[1], [0], [0], [1], [0, 0, 1, 1], [], []>} : vector<24x64xbf16>, vector<64x64xbf16>, vector<24x64xf32> -> vector<24x64xf32>
    %16 = arith.addf %10, %15 : vector<24x64xf32>
    %c0_17 = arith.constant 0 : index
    %c6 = arith.constant 6 : index
    %c0_18 = arith.constant 0 : index
    %17 = vector.load %arg1[%c0_17, %c6, %c0_18] : memref<1x42x64xbf16, #tpu.memory_space<vmem>>, vector<1x24x64xbf16>
    %18 = vector.shape_cast %17 : vector<1x24x64xbf16> to vector<24x64xbf16>
    %c3 = arith.constant 3 : index
    %c0_19 = arith.constant 0 : index
    %c0_20 = arith.constant 0 : index
    %19 = vector.load %arg2[%c3, %c0_19, %c0_20] : memref<9x64x64xbf16, #tpu.memory_space<vmem>>, vector<1x64x64xbf16>
    %20 = vector.shape_cast %19 : vector<1x64x64xbf16> to vector<64x64xbf16>
    %cst_21 = arith.constant dense<0.000000e+00> : vector<24x64xf32>
    %21 = tpu.matmul %18, %20, %cst_21 {dimension_numbers = #tpu.dot_dimension_numbers<[1], [0], [0], [1], [0, 0, 1, 1], [], []>} : vector<24x64xbf16>, vector<64x64xbf16>, vector<24x64xf32> -> vector<24x64xf32>
    %22 = arith.addf %16, %21 : vector<24x64xf32>
    %c0_22 = arith.constant 0 : index
    %c7 = arith.constant 7 : index
    %c0_23 = arith.constant 0 : index
    %23 = vector.load %arg1[%c0_22, %c7, %c0_23] : memref<1x42x64xbf16, #tpu.memory_space<vmem>>, vector<1x24x64xbf16>
    %24 = vector.shape_cast %23 : vector<1x24x64xbf16> to vector<24x64xbf16>
    %c4 = arith.constant 4 : index
    %c0_24 = arith.constant 0 : index
    %c0_25 = arith.constant 0 : index
    %25 = vector.load %arg2[%c4, %c0_24, %c0_25] : memref<9x64x64xbf16, #tpu.memory_space<vmem>>, vector<1x64x64xbf16>
    %26 = vector.shape_cast %25 : vector<1x64x64xbf16> to vector<64x64xbf16>
    %cst_26 = arith.constant dense<0.000000e+00> : vector<24x64xf32>
    %27 = tpu.matmul %24, %26, %cst_26 {dimension_numbers = #tpu.dot_dimension_numbers<[1], [0], [0], [1], [0, 0, 1, 1], [], []>} : vector<24x64xbf16>, vector<64x64xbf16>, vector<24x64xf32> -> vector<24x64xf32>
    %28 = arith.addf %22, %27 : vector<24x64xf32>
    %c0_27 = arith.constant 0 : index
    %c8 = arith.constant 8 : index
    %c0_28 = arith.constant 0 : index
    %29 = vector.load %arg1[%c0_27, %c8, %c0_28] : memref<1x42x64xbf16, #tpu.memory_space<vmem>>, vector<1x24x64xbf16>
    %30 = vector.shape_cast %29 : vector<1x24x64xbf16> to vector<24x64xbf16>
    %c5 = arith.constant 5 : index
    %c0_29 = arith.constant 0 : index
    %c0_30 = arith.constant 0 : index
    %31 = vector.load %arg2[%c5, %c0_29, %c0_30] : memref<9x64x64xbf16, #tpu.memory_space<vmem>>, vector<1x64x64xbf16>
    %32 = vector.shape_cast %31 : vector<1x64x64xbf16> to vector<64x64xbf16>
    %cst_31 = arith.constant dense<0.000000e+00> : vector<24x64xf32>
    %33 = tpu.matmul %30, %32, %cst_31 {dimension_numbers = #tpu.dot_dimension_numbers<[1], [0], [0], [1], [0, 0, 1, 1], [], []>} : vector<24x64xbf16>, vector<64x64xbf16>, vector<24x64xf32> -> vector<24x64xf32>
    %34 = arith.addf %28, %33 : vector<24x64xf32>
    %c0_32 = arith.constant 0 : index
    %c12 = arith.constant 12 : index
    %c0_33 = arith.constant 0 : index
    %35 = vector.load %arg1[%c0_32, %c12, %c0_33] : memref<1x42x64xbf16, #tpu.memory_space<vmem>>, vector<1x24x64xbf16>
    %36 = vector.shape_cast %35 : vector<1x24x64xbf16> to vector<24x64xbf16>
    %c6_34 = arith.constant 6 : index
    %c0_35 = arith.constant 0 : index
    %c0_36 = arith.constant 0 : index
    %37 = vector.load %arg2[%c6_34, %c0_35, %c0_36] : memref<9x64x64xbf16, #tpu.memory_space<vmem>>, vector<1x64x64xbf16>
    %38 = vector.shape_cast %37 : vector<1x64x64xbf16> to vector<64x64xbf16>
    %cst_37 = arith.constant dense<0.000000e+00> : vector<24x64xf32>
    %39 = tpu.matmul %36, %38, %cst_37 {dimension_numbers = #tpu.dot_dimension_numbers<[1], [0], [0], [1], [0, 0, 1, 1], [], []>} : vector<24x64xbf16>, vector<64x64xbf16>, vector<24x64xf32> -> vector<24x64xf32>
    %40 = arith.addf %34, %39 : vector<24x64xf32>
    %c0_38 = arith.constant 0 : index
    %c13 = arith.constant 13 : index
    %c0_39 = arith.constant 0 : index
    %41 = vector.load %arg1[%c0_38, %c13, %c0_39] : memref<1x42x64xbf16, #tpu.memory_space<vmem>>, vector<1x24x64xbf16>
    %42 = vector.shape_cast %41 : vector<1x24x64xbf16> to vector<24x64xbf16>
    %c7_40 = arith.constant 7 : index
    %c0_41 = arith.constant 0 : index
    %c0_42 = arith.constant 0 : index
    %43 = vector.load %arg2[%c7_40, %c0_41, %c0_42] : memref<9x64x64xbf16, #tpu.memory_space<vmem>>, vector<1x64x64xbf16>
    %44 = vector.shape_cast %43 : vector<1x64x64xbf16> to vector<64x64xbf16>
    %cst_43 = arith.constant dense<0.000000e+00> : vector<24x64xf32>
    %45 = tpu.matmul %42, %44, %cst_43 {dimension_numbers = #tpu.dot_dimension_numbers<[1], [0], [0], [1], [0, 0, 1, 1], [], []>} : vector<24x64xbf16>, vector<64x64xbf16>, vector<24x64xf32> -> vector<24x64xf32>
    %46 = arith.addf %40, %45 : vector<24x64xf32>
    %c0_44 = arith.constant 0 : index
    %c14 = arith.constant 14 : index
    %c0_45 = arith.constant 0 : index
    %47 = vector.load %arg1[%c0_44, %c14, %c0_45] : memref<1x42x64xbf16, #tpu.memory_space<vmem>>, vector<1x24x64xbf16>
    %48 = vector.shape_cast %47 : vector<1x24x64xbf16> to vector<24x64xbf16>
    %c8_46 = arith.constant 8 : index
    %c0_47 = arith.constant 0 : index
    %c0_48 = arith.constant 0 : index
    %49 = vector.load %arg2[%c8_46, %c0_47, %c0_48] : memref<9x64x64xbf16, #tpu.memory_space<vmem>>, vector<1x64x64xbf16>
    %50 = vector.shape_cast %49 : vector<1x64x64xbf16> to vector<64x64xbf16>
    %cst_49 = arith.constant dense<0.000000e+00> : vector<24x64xf32>
    %51 = tpu.matmul %48, %50, %cst_49 {dimension_numbers = #tpu.dot_dimension_numbers<[1], [0], [0], [1], [0, 0, 1, 1], [], []>} : vector<24x64xbf16>, vector<64x64xbf16>, vector<24x64xf32> -> vector<24x64xf32>
    %52 = arith.addf %46, %51 : vector<24x64xf32>
    %c0_50 = arith.constant 0 : index
    %c0_51 = arith.constant 0 : index
    %53 = vector.load %arg3[%c0_50, %c0_51] : memref<1x64xf32, #tpu.memory_space<vmem>>, vector<1x64xf32>
    %54 = vector.broadcast %53 : vector<1x64xf32> to vector<24x64xf32>
    %55 = arith.addf %52, %54 : vector<24x64xf32>
    %56 = arith.truncf %55 : vector<24x64xf32> to vector<24x64xbf16>
    %c0_52 = arith.constant 0 : index
    %c0_53 = arith.constant 0 : index
    %c0_54 = arith.constant 0 : index
    %57 = vector.load %arg4[%c0_52, %c0_53, %c0_54] : memref<1x24x64xbf16, #tpu.memory_space<vmem>>, vector<1x24x64xbf16>
    %58 = vector.shape_cast %57 : vector<1x24x64xbf16> to vector<24x64xbf16>
    %59 = vector.shape_cast %56 : vector<24x64xbf16> to vector<1x24x64xbf16>
    tpu.vector_store %arg4[%c0_52, %c0_53, %c0_54], %59 {strides = array<i32>} : memref<1x24x64xbf16, #tpu.memory_space<vmem>>, vector<1x24x64xbf16>,
    return
  }
  func.func @transform_0(%arg0: i32) -> (i32, i32, i32) {
    %c0_i32 = arith.constant 0 : i32
    %c0_i32_0 = arith.constant 0 : i32
    %c0_i32_1 = arith.constant 0 : i32
    return %arg0, %c0_i32, %c0_i32_0 : i32, i32, i32
  }
  func.func @transform_1(%arg0: i32) -> (i32, i32, i32) {
    %c0_i32 = arith.constant 0 : i32
    %c0_i32_0 = arith.constant 0 : i32
    %c0_i32_1 = arith.constant 0 : i32
    %c0_i32_2 = arith.constant 0 : i32
    return %c0_i32, %c0_i32_0, %c0_i32_1 : i32, i32, i32
  }
  func.func @transform_2(%arg0: i32) -> (i32, i32) {
    %c0_i32 = arith.constant 0 : i32
    %c0_i32_0 = arith.constant 0 : i32
    %c0_i32_1 = arith.constant 0 : i32
    return %c0_i32, %c0_i32_0 : i32, i32
  }
  func.func @transform_3(%arg0: i32) -> (i32, i32, i32) {
    %c0_i32 = arith.constant 0 : i32
    %c0_i32_0 = arith.constant 0 : i32
    %c0_i32_1 = arith.constant 0 : i32
    return %arg0, %c0_i32, %c0_i32_0 : i32, i32, i32
  }
}

module attributes {stable_mosaic.version = 11 : i64} {
  func.func @_add_act_kernel(%arg0: i32, %arg1: memref<32x64xbf16, #tpu.memory_space<vmem>>, %arg2: memref<32x64xbf16, #tpu.memory_space<vmem>>, %arg3: memref<32x64xbf16, #tpu.memory_space<vmem>>) attributes {dimension_semantics = [#tpu.dimension_semantics<parallel>], iteration_bounds = array<i64: 1>, scalar_prefetch = 0 : i64, scratch_operands = 0 : i64, tpu.core_type = #tpu.core_type<tc>, window_params = [{transform_indices = @transform_0, window_bounds = array<i64: 32, 64>}, {transform_indices = @transform_1, window_bounds = array<i64: 32, 64>}, {transform_indices = @transform_2, window_bounds = array<i64: 32, 64>}]} {
    %c0 = arith.constant 0 : index
    %c0_0 = arith.constant 0 : index
    %0 = vector.load %arg1[%c0, %c0_0] : memref<32x64xbf16, #tpu.memory_space<vmem>>, vector<32x64xbf16>
    %1 = arith.extf %0 : vector<32x64xbf16> to vector<32x64xf32>
    %c0_1 = arith.constant 0 : index
    %c0_2 = arith.constant 0 : index
    %2 = vector.load %arg2[%c0_1, %c0_2] : memref<32x64xbf16, #tpu.memory_space<vmem>>, vector<32x64xbf16>
    %3 = arith.extf %2 : vector<32x64xbf16> to vector<32x64xf32>
    %4 = arith.addf %1, %3 : vector<32x64xf32>
    %cst = arith.constant 0.000000e+00 : f32
    %5 = vector.broadcast %cst : f32 to vector<32x64xf32>
    %6 = arith.maximumf %4, %5 : vector<32x64xf32>
    %7 = arith.truncf %6 : vector<32x64xf32> to vector<32x64xbf16>
    %c0_3 = arith.constant 0 : index
    %c0_4 = arith.constant 0 : index
    %8 = vector.load %arg3[%c0_3, %c0_4] : memref<32x64xbf16, #tpu.memory_space<vmem>>, vector<32x64xbf16>
    tpu.vector_store %arg3[%c0_3, %c0_4], %7 {strides = array<i32>} : memref<32x64xbf16, #tpu.memory_space<vmem>>, vector<32x64xbf16>,
    return
  }
  func.func @transform_0(%arg0: i32) -> (i32, i32) {
    %c0_i32 = arith.constant 0 : i32
    %c0_i32_0 = arith.constant 0 : i32
    return %arg0, %c0_i32 : i32, i32
  }
  func.func @transform_1(%arg0: i32) -> (i32, i32) {
    %c0_i32 = arith.constant 0 : i32
    %c0_i32_0 = arith.constant 0 : i32
    return %arg0, %c0_i32 : i32, i32
  }
  func.func @transform_2(%arg0: i32) -> (i32, i32) {
    %c0_i32 = arith.constant 0 : i32
    %c0_i32_0 = arith.constant 0 : i32
    return %arg0, %c0_i32 : i32, i32
  }
}

module attributes {stable_mosaic.version = 11 : i64} {
  func.func @_conv_tap_kernel(%arg0: i32, %arg1: memref<1x12x256xbf16, #tpu.memory_space<vmem>>, %arg2: memref<4x256x128xbf16, #tpu.memory_space<vmem>>, %arg3: memref<1x128xf32, #tpu.memory_space<vmem>>, %arg4: memref<1x8x128xbf16, #tpu.memory_space<vmem>>) attributes {dimension_semantics = [#tpu.dimension_semantics<parallel>], iteration_bounds = array<i64: 2>, scalar_prefetch = 0 : i64, scratch_operands = 0 : i64, tpu.core_type = #tpu.core_type<tc>, window_params = [{transform_indices = @transform_0, window_bounds = array<i64: 1, 12, 256>}, {pipeline_mode = #tpu.pipeline_mode<synchronous>, transform_indices = @transform_1, window_bounds = array<i64: 4, 256, 128>}, {pipeline_mode = #tpu.pipeline_mode<synchronous>, transform_indices = @transform_2, window_bounds = array<i64: 1, 128>}, {transform_indices = @transform_3, window_bounds = array<i64: 1, 8, 128>}]} {
    %c0 = arith.constant 0 : index
    %c0_0 = arith.constant 0 : index
    %c0_1 = arith.constant 0 : index
    %0 = vector.load %arg1[%c0, %c0_0, %c0_1] : memref<1x12x256xbf16, #tpu.memory_space<vmem>>, vector<1x8x256xbf16>
    %1 = vector.shape_cast %0 : vector<1x8x256xbf16> to vector<8x256xbf16>
    %c0_2 = arith.constant 0 : index
    %c0_3 = arith.constant 0 : index
    %c0_4 = arith.constant 0 : index
    %2 = vector.load %arg2[%c0_2, %c0_3, %c0_4] : memref<4x256x128xbf16, #tpu.memory_space<vmem>>, vector<1x256x128xbf16>
    %3 = vector.shape_cast %2 : vector<1x256x128xbf16> to vector<256x128xbf16>
    %cst = arith.constant dense<0.000000e+00> : vector<8x128xf32>
    %4 = tpu.matmul %1, %3, %cst {dimension_numbers = #tpu.dot_dimension_numbers<[1], [0], [0], [1], [0, 0, 1, 1], [], []>} : vector<8x256xbf16>, vector<256x128xbf16>, vector<8x128xf32> -> vector<8x128xf32>
    %c0_5 = arith.constant 0 : index
    %c1 = arith.constant 1 : index
    %c0_6 = arith.constant 0 : index
    %5 = vector.load %arg1[%c0_5, %c1, %c0_6] : memref<1x12x256xbf16, #tpu.memory_space<vmem>>, vector<1x8x256xbf16>
    %6 = vector.shape_cast %5 : vector<1x8x256xbf16> to vector<8x256xbf16>
    %c1_7 = arith.constant 1 : index
    %c0_8 = arith.constant 0 : index
    %c0_9 = arith.constant 0 : index
    %7 = vector.load %arg2[%c1_7, %c0_8, %c0_9] : memref<4x256x128xbf16, #tpu.memory_space<vmem>>, vector<1x256x128xbf16>
    %8 = vector.shape_cast %7 : vector<1x256x128xbf16> to vector<256x128xbf16>
    %cst_10 = arith.constant dense<0.000000e+00> : vector<8x128xf32>
    %9 = tpu.matmul %6, %8, %cst_10 {dimension_numbers = #tpu.dot_dimension_numbers<[1], [0], [0], [1], [0, 0, 1, 1], [], []>} : vector<8x256xbf16>, vector<256x128xbf16>, vector<8x128xf32> -> vector<8x128xf32>
    %10 = arith.addf %4, %9 : vector<8x128xf32>
    %c0_11 = arith.constant 0 : index
    %c3 = arith.constant 3 : index
    %c0_12 = arith.constant 0 : index
    %11 = vector.load %arg1[%c0_11, %c3, %c0_12] : memref<1x12x256xbf16, #tpu.memory_space<vmem>>, vector<1x8x256xbf16>
    %12 = vector.shape_cast %11 : vector<1x8x256xbf16> to vector<8x256xbf16>
    %c2 = arith.constant 2 : index
    %c0_13 = arith.constant 0 : index
    %c0_14 = arith.constant 0 : index
    %13 = vector.load %arg2[%c2, %c0_13, %c0_14] : memref<4x256x128xbf16, #tpu.memory_space<vmem>>, vector<1x256x128xbf16>
    %14 = vector.shape_cast %13 : vector<1x256x128xbf16> to vector<256x128xbf16>
    %cst_15 = arith.constant dense<0.000000e+00> : vector<8x128xf32>
    %15 = tpu.matmul %12, %14, %cst_15 {dimension_numbers = #tpu.dot_dimension_numbers<[1], [0], [0], [1], [0, 0, 1, 1], [], []>} : vector<8x256xbf16>, vector<256x128xbf16>, vector<8x128xf32> -> vector<8x128xf32>
    %16 = arith.addf %10, %15 : vector<8x128xf32>
    %c0_16 = arith.constant 0 : index
    %c4 = arith.constant 4 : index
    %c0_17 = arith.constant 0 : index
    %17 = vector.load %arg1[%c0_16, %c4, %c0_17] : memref<1x12x256xbf16, #tpu.memory_space<vmem>>, vector<1x8x256xbf16>
    %18 = vector.shape_cast %17 : vector<1x8x256xbf16> to vector<8x256xbf16>
    %c3_18 = arith.constant 3 : index
    %c0_19 = arith.constant 0 : index
    %c0_20 = arith.constant 0 : index
    %19 = vector.load %arg2[%c3_18, %c0_19, %c0_20] : memref<4x256x128xbf16, #tpu.memory_space<vmem>>, vector<1x256x128xbf16>
    %20 = vector.shape_cast %19 : vector<1x256x128xbf16> to vector<256x128xbf16>
    %cst_21 = arith.constant dense<0.000000e+00> : vector<8x128xf32>
    %21 = tpu.matmul %18, %20, %cst_21 {dimension_numbers = #tpu.dot_dimension_numbers<[1], [0], [0], [1], [0, 0, 1, 1], [], []>} : vector<8x256xbf16>, vector<256x128xbf16>, vector<8x128xf32> -> vector<8x128xf32>
    %22 = arith.addf %16, %21 : vector<8x128xf32>
    %c0_22 = arith.constant 0 : index
    %c0_23 = arith.constant 0 : index
    %23 = vector.load %arg3[%c0_22, %c0_23] : memref<1x128xf32, #tpu.memory_space<vmem>>, vector<1x128xf32>
    %24 = vector.broadcast %23 : vector<1x128xf32> to vector<8x128xf32>
    %25 = arith.addf %22, %24 : vector<8x128xf32>
    %cst_24 = arith.constant 0.000000e+00 : f32
    %26 = vector.broadcast %cst_24 : f32 to vector<8x128xf32>
    %27 = arith.maximumf %25, %26 : vector<8x128xf32>
    %28 = arith.truncf %27 : vector<8x128xf32> to vector<8x128xbf16>
    %c0_25 = arith.constant 0 : index
    %c0_26 = arith.constant 0 : index
    %c0_27 = arith.constant 0 : index
    %29 = vector.load %arg4[%c0_25, %c0_26, %c0_27] : memref<1x8x128xbf16, #tpu.memory_space<vmem>>, vector<1x8x128xbf16>
    %30 = vector.shape_cast %29 : vector<1x8x128xbf16> to vector<8x128xbf16>
    %31 = vector.shape_cast %28 : vector<8x128xbf16> to vector<1x8x128xbf16>
    tpu.vector_store %arg4[%c0_25, %c0_26, %c0_27], %31 {strides = array<i32>} : memref<1x8x128xbf16, #tpu.memory_space<vmem>>, vector<1x8x128xbf16>,
    return
  }
  func.func @transform_0(%arg0: i32) -> (i32, i32, i32) {
    %c0_i32 = arith.constant 0 : i32
    %c0_i32_0 = arith.constant 0 : i32
    %c0_i32_1 = arith.constant 0 : i32
    return %arg0, %c0_i32, %c0_i32_0 : i32, i32, i32
  }
  func.func @transform_1(%arg0: i32) -> (i32, i32, i32) {
    %c0_i32 = arith.constant 0 : i32
    %c0_i32_0 = arith.constant 0 : i32
    %c0_i32_1 = arith.constant 0 : i32
    %c0_i32_2 = arith.constant 0 : i32
    return %c0_i32, %c0_i32_0, %c0_i32_1 : i32, i32, i32
  }
  func.func @transform_2(%arg0: i32) -> (i32, i32) {
    %c0_i32 = arith.constant 0 : i32
    %c0_i32_0 = arith.constant 0 : i32
    %c0_i32_1 = arith.constant 0 : i32
    return %c0_i32, %c0_i32_0 : i32, i32
  }
  func.func @transform_3(%arg0: i32) -> (i32, i32, i32) {
    %c0_i32 = arith.constant 0 : i32
    %c0_i32_0 = arith.constant 0 : i32
    %c0_i32_1 = arith.constant 0 : i32
    return %arg0, %c0_i32, %c0_i32_0 : i32, i32, i32
  }
}

module attributes {stable_mosaic.version = 11 : i64} {
  func.func @_add_act_kernel(%arg0: i32, %arg1: memref<8x128xbf16, #tpu.memory_space<vmem>>, %arg2: memref<8x128xbf16, #tpu.memory_space<vmem>>, %arg3: memref<8x128xbf16, #tpu.memory_space<vmem>>) attributes {dimension_semantics = [#tpu.dimension_semantics<parallel>], iteration_bounds = array<i64: 1>, scalar_prefetch = 0 : i64, scratch_operands = 0 : i64, tpu.core_type = #tpu.core_type<tc>, window_params = [{transform_indices = @transform_0, window_bounds = array<i64: 8, 128>}, {transform_indices = @transform_1, window_bounds = array<i64: 8, 128>}, {transform_indices = @transform_2, window_bounds = array<i64: 8, 128>}]} {
    %c0 = arith.constant 0 : index
    %c0_0 = arith.constant 0 : index
    %0 = vector.load %arg1[%c0, %c0_0] : memref<8x128xbf16, #tpu.memory_space<vmem>>, vector<8x128xbf16>
    %1 = arith.extf %0 : vector<8x128xbf16> to vector<8x128xf32>
    %c0_1 = arith.constant 0 : index
    %c0_2 = arith.constant 0 : index
    %2 = vector.load %arg2[%c0_1, %c0_2] : memref<8x128xbf16, #tpu.memory_space<vmem>>, vector<8x128xbf16>
    %3 = arith.extf %2 : vector<8x128xbf16> to vector<8x128xf32>
    %4 = arith.addf %1, %3 : vector<8x128xf32>
    %cst = arith.constant 0.000000e+00 : f32
    %5 = vector.broadcast %cst : f32 to vector<8x128xf32>
    %6 = arith.maximumf %4, %5 : vector<8x128xf32>
    %7 = arith.truncf %6 : vector<8x128xf32> to vector<8x128xbf16>
    %c0_3 = arith.constant 0 : index
    %c0_4 = arith.constant 0 : index
    %8 = vector.load %arg3[%c0_3, %c0_4] : memref<8x128xbf16, #tpu.memory_space<vmem>>, vector<8x128xbf16>
    tpu.vector_store %arg3[%c0_3, %c0_4], %7 {strides = array<i32>} : memref<8x128xbf16, #tpu.memory_space<vmem>>, vector<8x128xbf16>,
    return
  }
  func.func @transform_0(%arg0: i32) -> (i32, i32) {
    %c0_i32 = arith.constant 0 : i32
    %c0_i32_0 = arith.constant 0 : i32
    return %arg0, %c0_i32 : i32, i32
  }
  func.func @transform_1(%arg0: i32) -> (i32, i32) {
    %c0_i32 = arith.constant 0 : i32
    %c0_i32_0 = arith.constant 0 : i32
    return %arg0, %c0_i32 : i32, i32
  }
  func.func @transform_2(%arg0: i32) -> (i32, i32) {
    %c0_i32 = arith.constant 0 : i32
    %c0_i32_0 = arith.constant 0 : i32
    return %arg0, %c0_i32 : i32, i32
  }
}

module attributes {stable_mosaic.version = 11 : i64} {
  func.func @_conv_tap_kernel(%arg0: i32, %arg1: memref<1x20x128xbf16, #tpu.memory_space<vmem>>, %arg2: memref<9x128x128xbf16, #tpu.memory_space<vmem>>, %arg3: memref<1x128xf32, #tpu.memory_space<vmem>>, %arg4: memref<1x8x128xbf16, #tpu.memory_space<vmem>>) attributes {dimension_semantics = [#tpu.dimension_semantics<parallel>], iteration_bounds = array<i64: 2>, scalar_prefetch = 0 : i64, scratch_operands = 0 : i64, tpu.core_type = #tpu.core_type<tc>, window_params = [{transform_indices = @transform_0, window_bounds = array<i64: 1, 20, 128>}, {pipeline_mode = #tpu.pipeline_mode<synchronous>, transform_indices = @transform_1, window_bounds = array<i64: 9, 128, 128>}, {pipeline_mode = #tpu.pipeline_mode<synchronous>, transform_indices = @transform_2, window_bounds = array<i64: 1, 128>}, {transform_indices = @transform_3, window_bounds = array<i64: 1, 8, 128>}]} {
    %c0 = arith.constant 0 : index
    %c0_0 = arith.constant 0 : index
    %c0_1 = arith.constant 0 : index
    %0 = vector.load %arg1[%c0, %c0_0, %c0_1] : memref<1x20x128xbf16, #tpu.memory_space<vmem>>, vector<1x8x128xbf16>
    %1 = vector.shape_cast %0 : vector<1x8x128xbf16> to vector<8x128xbf16>
    %c0_2 = arith.constant 0 : index
    %c0_3 = arith.constant 0 : index
    %c0_4 = arith.constant 0 : index
    %2 = vector.load %arg2[%c0_2, %c0_3, %c0_4] : memref<9x128x128xbf16, #tpu.memory_space<vmem>>, vector<1x128x128xbf16>
    %3 = vector.shape_cast %2 : vector<1x128x128xbf16> to vector<128x128xbf16>
    %cst = arith.constant dense<0.000000e+00> : vector<8x128xf32>
    %4 = tpu.matmul %1, %3, %cst {dimension_numbers = #tpu.dot_dimension_numbers<[1], [0], [0], [1], [0, 0, 1, 1], [], []>} : vector<8x128xbf16>, vector<128x128xbf16>, vector<8x128xf32> -> vector<8x128xf32>
    %c0_5 = arith.constant 0 : index
    %c1 = arith.constant 1 : index
    %c0_6 = arith.constant 0 : index
    %5 = vector.load %arg1[%c0_5, %c1, %c0_6] : memref<1x20x128xbf16, #tpu.memory_space<vmem>>, vector<1x8x128xbf16>
    %6 = vector.shape_cast %5 : vector<1x8x128xbf16> to vector<8x128xbf16>
    %c1_7 = arith.constant 1 : index
    %c0_8 = arith.constant 0 : index
    %c0_9 = arith.constant 0 : index
    %7 = vector.load %arg2[%c1_7, %c0_8, %c0_9] : memref<9x128x128xbf16, #tpu.memory_space<vmem>>, vector<1x128x128xbf16>
    %8 = vector.shape_cast %7 : vector<1x128x128xbf16> to vector<128x128xbf16>
    %cst_10 = arith.constant dense<0.000000e+00> : vector<8x128xf32>
    %9 = tpu.matmul %6, %8, %cst_10 {dimension_numbers = #tpu.dot_dimension_numbers<[1], [0], [0], [1], [0, 0, 1, 1], [], []>} : vector<8x128xbf16>, vector<128x128xbf16>, vector<8x128xf32> -> vector<8x128xf32>
    %10 = arith.addf %4, %9 : vector<8x128xf32>
    %c0_11 = arith.constant 0 : index
    %c2 = arith.constant 2 : index
    %c0_12 = arith.constant 0 : index
    %11 = vector.load %arg1[%c0_11, %c2, %c0_12] : memref<1x20x128xbf16, #tpu.memory_space<vmem>>, vector<1x8x128xbf16>
    %12 = vector.shape_cast %11 : vector<1x8x128xbf16> to vector<8x128xbf16>
    %c2_13 = arith.constant 2 : index
    %c0_14 = arith.constant 0 : index
    %c0_15 = arith.constant 0 : index
    %13 = vector.load %arg2[%c2_13, %c0_14, %c0_15] : memref<9x128x128xbf16, #tpu.memory_space<vmem>>, vector<1x128x128xbf16>
    %14 = vector.shape_cast %13 : vector<1x128x128xbf16> to vector<128x128xbf16>
    %cst_16 = arith.constant dense<0.000000e+00> : vector<8x128xf32>
    %15 = tpu.matmul %12, %14, %cst_16 {dimension_numbers = #tpu.dot_dimension_numbers<[1], [0], [0], [1], [0, 0, 1, 1], [], []>} : vector<8x128xbf16>, vector<128x128xbf16>, vector<8x128xf32> -> vector<8x128xf32>
    %16 = arith.addf %10, %15 : vector<8x128xf32>
    %c0_17 = arith.constant 0 : index
    %c4 = arith.constant 4 : index
    %c0_18 = arith.constant 0 : index
    %17 = vector.load %arg1[%c0_17, %c4, %c0_18] : memref<1x20x128xbf16, #tpu.memory_space<vmem>>, vector<1x8x128xbf16>
    %18 = vector.shape_cast %17 : vector<1x8x128xbf16> to vector<8x128xbf16>
    %c3 = arith.constant 3 : index
    %c0_19 = arith.constant 0 : index
    %c0_20 = arith.constant 0 : index
    %19 = vector.load %arg2[%c3, %c0_19, %c0_20] : memref<9x128x128xbf16, #tpu.memory_space<vmem>>, vector<1x128x128xbf16>
    %20 = vector.shape_cast %19 : vector<1x128x128xbf16> to vector<128x128xbf16>
    %cst_21 = arith.constant dense<0.000000e+00> : vector<8x128xf32>
    %21 = tpu.matmul %18, %20, %cst_21 {dimension_numbers = #tpu.dot_dimension_numbers<[1], [0], [0], [1], [0, 0, 1, 1], [], []>} : vector<8x128xbf16>, vector<128x128xbf16>, vector<8x128xf32> -> vector<8x128xf32>
    %22 = arith.addf %16, %21 : vector<8x128xf32>
    %c0_22 = arith.constant 0 : index
    %c5 = arith.constant 5 : index
    %c0_23 = arith.constant 0 : index
    %23 = vector.load %arg1[%c0_22, %c5, %c0_23] : memref<1x20x128xbf16, #tpu.memory_space<vmem>>, vector<1x8x128xbf16>
    %24 = vector.shape_cast %23 : vector<1x8x128xbf16> to vector<8x128xbf16>
    %c4_24 = arith.constant 4 : index
    %c0_25 = arith.constant 0 : index
    %c0_26 = arith.constant 0 : index
    %25 = vector.load %arg2[%c4_24, %c0_25, %c0_26] : memref<9x128x128xbf16, #tpu.memory_space<vmem>>, vector<1x128x128xbf16>
    %26 = vector.shape_cast %25 : vector<1x128x128xbf16> to vector<128x128xbf16>
    %cst_27 = arith.constant dense<0.000000e+00> : vector<8x128xf32>
    %27 = tpu.matmul %24, %26, %cst_27 {dimension_numbers = #tpu.dot_dimension_numbers<[1], [0], [0], [1], [0, 0, 1, 1], [], []>} : vector<8x128xbf16>, vector<128x128xbf16>, vector<8x128xf32> -> vector<8x128xf32>
    %28 = arith.addf %22, %27 : vector<8x128xf32>
    %c0_28 = arith.constant 0 : index
    %c6 = arith.constant 6 : index
    %c0_29 = arith.constant 0 : index
    %29 = vector.load %arg1[%c0_28, %c6, %c0_29] : memref<1x20x128xbf16, #tpu.memory_space<vmem>>, vector<1x8x128xbf16>
    %30 = vector.shape_cast %29 : vector<1x8x128xbf16> to vector<8x128xbf16>
    %c5_30 = arith.constant 5 : index
    %c0_31 = arith.constant 0 : index
    %c0_32 = arith.constant 0 : index
    %31 = vector.load %arg2[%c5_30, %c0_31, %c0_32] : memref<9x128x128xbf16, #tpu.memory_space<vmem>>, vector<1x128x128xbf16>
    %32 = vector.shape_cast %31 : vector<1x128x128xbf16> to vector<128x128xbf16>
    %cst_33 = arith.constant dense<0.000000e+00> : vector<8x128xf32>
    %33 = tpu.matmul %30, %32, %cst_33 {dimension_numbers = #tpu.dot_dimension_numbers<[1], [0], [0], [1], [0, 0, 1, 1], [], []>} : vector<8x128xbf16>, vector<128x128xbf16>, vector<8x128xf32> -> vector<8x128xf32>
    %34 = arith.addf %28, %33 : vector<8x128xf32>
    %c0_34 = arith.constant 0 : index
    %c8 = arith.constant 8 : index
    %c0_35 = arith.constant 0 : index
    %35 = vector.load %arg1[%c0_34, %c8, %c0_35] : memref<1x20x128xbf16, #tpu.memory_space<vmem>>, vector<1x8x128xbf16>
    %36 = vector.shape_cast %35 : vector<1x8x128xbf16> to vector<8x128xbf16>
    %c6_36 = arith.constant 6 : index
    %c0_37 = arith.constant 0 : index
    %c0_38 = arith.constant 0 : index
    %37 = vector.load %arg2[%c6_36, %c0_37, %c0_38] : memref<9x128x128xbf16, #tpu.memory_space<vmem>>, vector<1x128x128xbf16>
    %38 = vector.shape_cast %37 : vector<1x128x128xbf16> to vector<128x128xbf16>
    %cst_39 = arith.constant dense<0.000000e+00> : vector<8x128xf32>
    %39 = tpu.matmul %36, %38, %cst_39 {dimension_numbers = #tpu.dot_dimension_numbers<[1], [0], [0], [1], [0, 0, 1, 1], [], []>} : vector<8x128xbf16>, vector<128x128xbf16>, vector<8x128xf32> -> vector<8x128xf32>
    %40 = arith.addf %34, %39 : vector<8x128xf32>
    %c0_40 = arith.constant 0 : index
    %c9 = arith.constant 9 : index
    %c0_41 = arith.constant 0 : index
    %41 = vector.load %arg1[%c0_40, %c9, %c0_41] : memref<1x20x128xbf16, #tpu.memory_space<vmem>>, vector<1x8x128xbf16>
    %42 = vector.shape_cast %41 : vector<1x8x128xbf16> to vector<8x128xbf16>
    %c7 = arith.constant 7 : index
    %c0_42 = arith.constant 0 : index
    %c0_43 = arith.constant 0 : index
    %43 = vector.load %arg2[%c7, %c0_42, %c0_43] : memref<9x128x128xbf16, #tpu.memory_space<vmem>>, vector<1x128x128xbf16>
    %44 = vector.shape_cast %43 : vector<1x128x128xbf16> to vector<128x128xbf16>
    %cst_44 = arith.constant dense<0.000000e+00> : vector<8x128xf32>
    %45 = tpu.matmul %42, %44, %cst_44 {dimension_numbers = #tpu.dot_dimension_numbers<[1], [0], [0], [1], [0, 0, 1, 1], [], []>} : vector<8x128xbf16>, vector<128x128xbf16>, vector<8x128xf32> -> vector<8x128xf32>
    %46 = arith.addf %40, %45 : vector<8x128xf32>
    %c0_45 = arith.constant 0 : index
    %c10 = arith.constant 10 : index
    %c0_46 = arith.constant 0 : index
    %47 = vector.load %arg1[%c0_45, %c10, %c0_46] : memref<1x20x128xbf16, #tpu.memory_space<vmem>>, vector<1x8x128xbf16>
    %48 = vector.shape_cast %47 : vector<1x8x128xbf16> to vector<8x128xbf16>
    %c8_47 = arith.constant 8 : index
    %c0_48 = arith.constant 0 : index
    %c0_49 = arith.constant 0 : index
    %49 = vector.load %arg2[%c8_47, %c0_48, %c0_49] : memref<9x128x128xbf16, #tpu.memory_space<vmem>>, vector<1x128x128xbf16>
    %50 = vector.shape_cast %49 : vector<1x128x128xbf16> to vector<128x128xbf16>
    %cst_50 = arith.constant dense<0.000000e+00> : vector<8x128xf32>
    %51 = tpu.matmul %48, %50, %cst_50 {dimension_numbers = #tpu.dot_dimension_numbers<[1], [0], [0], [1], [0, 0, 1, 1], [], []>} : vector<8x128xbf16>, vector<128x128xbf16>, vector<8x128xf32> -> vector<8x128xf32>
    %52 = arith.addf %46, %51 : vector<8x128xf32>
    %c0_51 = arith.constant 0 : index
    %c0_52 = arith.constant 0 : index
    %53 = vector.load %arg3[%c0_51, %c0_52] : memref<1x128xf32, #tpu.memory_space<vmem>>, vector<1x128xf32>
    %54 = vector.broadcast %53 : vector<1x128xf32> to vector<8x128xf32>
    %55 = arith.addf %52, %54 : vector<8x128xf32>
    %56 = arith.truncf %55 : vector<8x128xf32> to vector<8x128xbf16>
    %c0_53 = arith.constant 0 : index
    %c0_54 = arith.constant 0 : index
    %c0_55 = arith.constant 0 : index
    %57 = vector.load %arg4[%c0_53, %c0_54, %c0_55] : memref<1x8x128xbf16, #tpu.memory_space<vmem>>, vector<1x8x128xbf16>
    %58 = vector.shape_cast %57 : vector<1x8x128xbf16> to vector<8x128xbf16>
    %59 = vector.shape_cast %56 : vector<8x128xbf16> to vector<1x8x128xbf16>
    tpu.vector_store %arg4[%c0_53, %c0_54, %c0_55], %59 {strides = array<i32>} : memref<1x8x128xbf16, #tpu.memory_space<vmem>>, vector<1x8x128xbf16>,
    return
  }
  func.func @transform_0(%arg0: i32) -> (i32, i32, i32) {
    %c0_i32 = arith.constant 0 : i32
    %c0_i32_0 = arith.constant 0 : i32
    %c0_i32_1 = arith.constant 0 : i32
    return %arg0, %c0_i32, %c0_i32_0 : i32, i32, i32
  }
  func.func @transform_1(%arg0: i32) -> (i32, i32, i32) {
    %c0_i32 = arith.constant 0 : i32
    %c0_i32_0 = arith.constant 0 : i32
    %c0_i32_1 = arith.constant 0 : i32
    %c0_i32_2 = arith.constant 0 : i32
    return %c0_i32, %c0_i32_0, %c0_i32_1 : i32, i32, i32
  }
  func.func @transform_2(%arg0: i32) -> (i32, i32) {
    %c0_i32 = arith.constant 0 : i32
    %c0_i32_0 = arith.constant 0 : i32
    %c0_i32_1 = arith.constant 0 : i32
    return %c0_i32, %c0_i32_0 : i32, i32
  }
  func.func @transform_3(%arg0: i32) -> (i32, i32, i32) {
    %c0_i32 = arith.constant 0 : i32
    %c0_i32_0 = arith.constant 0 : i32
    %c0_i32_1 = arith.constant 0 : i32
    return %arg0, %c0_i32, %c0_i32_0 : i32, i32, i32
  }
}

module attributes {stable_mosaic.version = 11 : i64} {
  func.func @_conv_tap_kernel(%arg0: i32, %arg1: memref<1x8x64xbf16, #tpu.memory_space<vmem>>, %arg2: memref<1x64x128xbf16, #tpu.memory_space<vmem>>, %arg3: memref<1x128xf32, #tpu.memory_space<vmem>>, %arg4: memref<1x8x128xbf16, #tpu.memory_space<vmem>>) attributes {dimension_semantics = [#tpu.dimension_semantics<parallel>], iteration_bounds = array<i64: 2>, scalar_prefetch = 0 : i64, scratch_operands = 0 : i64, tpu.core_type = #tpu.core_type<tc>, window_params = [{transform_indices = @transform_0, window_bounds = array<i64: 1, 8, 64>}, {pipeline_mode = #tpu.pipeline_mode<synchronous>, transform_indices = @transform_1, window_bounds = array<i64: 1, 64, 128>}, {pipeline_mode = #tpu.pipeline_mode<synchronous>, transform_indices = @transform_2, window_bounds = array<i64: 1, 128>}, {transform_indices = @transform_3, window_bounds = array<i64: 1, 8, 128>}]} {
    %c0 = arith.constant 0 : index
    %c0_0 = arith.constant 0 : index
    %c0_1 = arith.constant 0 : index
    %0 = vector.load %arg1[%c0, %c0_0, %c0_1] : memref<1x8x64xbf16, #tpu.memory_space<vmem>>, vector<1x8x64xbf16>
    %1 = vector.shape_cast %0 : vector<1x8x64xbf16> to vector<8x64xbf16>
    %c0_2 = arith.constant 0 : index
    %c0_3 = arith.constant 0 : index
    %c0_4 = arith.constant 0 : index
    %2 = vector.load %arg2[%c0_2, %c0_3, %c0_4] : memref<1x64x128xbf16, #tpu.memory_space<vmem>>, vector<1x64x128xbf16>
    %3 = vector.shape_cast %2 : vector<1x64x128xbf16> to vector<64x128xbf16>
    %cst = arith.constant dense<0.000000e+00> : vector<8x128xf32>
    %4 = tpu.matmul %1, %3, %cst {dimension_numbers = #tpu.dot_dimension_numbers<[1], [0], [0], [1], [0, 0, 1, 1], [], []>} : vector<8x64xbf16>, vector<64x128xbf16>, vector<8x128xf32> -> vector<8x128xf32>
    %c0_5 = arith.constant 0 : index
    %c0_6 = arith.constant 0 : index
    %5 = vector.load %arg3[%c0_5, %c0_6] : memref<1x128xf32, #tpu.memory_space<vmem>>, vector<1x128xf32>
    %6 = vector.broadcast %5 : vector<1x128xf32> to vector<8x128xf32>
    %7 = arith.addf %4, %6 : vector<8x128xf32>
    %8 = arith.truncf %7 : vector<8x128xf32> to vector<8x128xbf16>
    %c0_7 = arith.constant 0 : index
    %c0_8 = arith.constant 0 : index
    %c0_9 = arith.constant 0 : index
    %9 = vector.load %arg4[%c0_7, %c0_8, %c0_9] : memref<1x8x128xbf16, #tpu.memory_space<vmem>>, vector<1x8x128xbf16>
    %10 = vector.shape_cast %9 : vector<1x8x128xbf16> to vector<8x128xbf16>
    %11 = vector.shape_cast %8 : vector<8x128xbf16> to vector<1x8x128xbf16>
    tpu.vector_store %arg4[%c0_7, %c0_8, %c0_9], %11 {strides = array<i32>} : memref<1x8x128xbf16, #tpu.memory_space<vmem>>, vector<1x8x128xbf16>,
    return
  }
  func.func @transform_0(%arg0: i32) -> (i32, i32, i32) {
    %c0_i32 = arith.constant 0 : i32
    %c0_i32_0 = arith.constant 0 : i32
    %c0_i32_1 = arith.constant 0 : i32
    return %arg0, %c0_i32, %c0_i32_0 : i32, i32, i32
  }
  func.func @transform_1(%arg0: i32) -> (i32, i32, i32) {
    %c0_i32 = arith.constant 0 : i32
    %c0_i32_0 = arith.constant 0 : i32
    %c0_i32_1 = arith.constant 0 : i32
    %c0_i32_2 = arith.constant 0 : i32
    return %c0_i32, %c0_i32_0, %c0_i32_1 : i32, i32, i32
  }
  func.func @transform_2(%arg0: i32) -> (i32, i32) {
    %c0_i32 = arith.constant 0 : i32
    %c0_i32_0 = arith.constant 0 : i32
    %c0_i32_1 = arith.constant 0 : i32
    return %c0_i32, %c0_i32_0 : i32, i32
  }
  func.func @transform_3(%arg0: i32) -> (i32, i32, i32) {
    %c0_i32 = arith.constant 0 : i32
    %c0_i32_0 = arith.constant 0 : i32
    %c0_i32_1 = arith.constant 0 : i32
    return %arg0, %c0_i32, %c0_i32_0 : i32, i32, i32
  }
}

module attributes {stable_mosaic.version = 11 : i64} {
  func.func @_conv_tap_kernel(%arg0: i32, %arg1: memref<1x20x128xbf16, #tpu.memory_space<vmem>>, %arg2: memref<9x128x128xbf16, #tpu.memory_space<vmem>>, %arg3: memref<1x128xf32, #tpu.memory_space<vmem>>, %arg4: memref<1x8x128xbf16, #tpu.memory_space<vmem>>) attributes {dimension_semantics = [#tpu.dimension_semantics<parallel>], iteration_bounds = array<i64: 2>, scalar_prefetch = 0 : i64, scratch_operands = 0 : i64, tpu.core_type = #tpu.core_type<tc>, window_params = [{transform_indices = @transform_0, window_bounds = array<i64: 1, 20, 128>}, {pipeline_mode = #tpu.pipeline_mode<synchronous>, transform_indices = @transform_1, window_bounds = array<i64: 9, 128, 128>}, {pipeline_mode = #tpu.pipeline_mode<synchronous>, transform_indices = @transform_2, window_bounds = array<i64: 1, 128>}, {transform_indices = @transform_3, window_bounds = array<i64: 1, 8, 128>}]} {
    %c0 = arith.constant 0 : index
    %c0_0 = arith.constant 0 : index
    %c0_1 = arith.constant 0 : index
    %0 = vector.load %arg1[%c0, %c0_0, %c0_1] : memref<1x20x128xbf16, #tpu.memory_space<vmem>>, vector<1x8x128xbf16>
    %1 = vector.shape_cast %0 : vector<1x8x128xbf16> to vector<8x128xbf16>
    %c0_2 = arith.constant 0 : index
    %c0_3 = arith.constant 0 : index
    %c0_4 = arith.constant 0 : index
    %2 = vector.load %arg2[%c0_2, %c0_3, %c0_4] : memref<9x128x128xbf16, #tpu.memory_space<vmem>>, vector<1x128x128xbf16>
    %3 = vector.shape_cast %2 : vector<1x128x128xbf16> to vector<128x128xbf16>
    %cst = arith.constant dense<0.000000e+00> : vector<8x128xf32>
    %4 = tpu.matmul %1, %3, %cst {dimension_numbers = #tpu.dot_dimension_numbers<[1], [0], [0], [1], [0, 0, 1, 1], [], []>} : vector<8x128xbf16>, vector<128x128xbf16>, vector<8x128xf32> -> vector<8x128xf32>
    %c0_5 = arith.constant 0 : index
    %c1 = arith.constant 1 : index
    %c0_6 = arith.constant 0 : index
    %5 = vector.load %arg1[%c0_5, %c1, %c0_6] : memref<1x20x128xbf16, #tpu.memory_space<vmem>>, vector<1x8x128xbf16>
    %6 = vector.shape_cast %5 : vector<1x8x128xbf16> to vector<8x128xbf16>
    %c1_7 = arith.constant 1 : index
    %c0_8 = arith.constant 0 : index
    %c0_9 = arith.constant 0 : index
    %7 = vector.load %arg2[%c1_7, %c0_8, %c0_9] : memref<9x128x128xbf16, #tpu.memory_space<vmem>>, vector<1x128x128xbf16>
    %8 = vector.shape_cast %7 : vector<1x128x128xbf16> to vector<128x128xbf16>
    %cst_10 = arith.constant dense<0.000000e+00> : vector<8x128xf32>
    %9 = tpu.matmul %6, %8, %cst_10 {dimension_numbers = #tpu.dot_dimension_numbers<[1], [0], [0], [1], [0, 0, 1, 1], [], []>} : vector<8x128xbf16>, vector<128x128xbf16>, vector<8x128xf32> -> vector<8x128xf32>
    %10 = arith.addf %4, %9 : vector<8x128xf32>
    %c0_11 = arith.constant 0 : index
    %c2 = arith.constant 2 : index
    %c0_12 = arith.constant 0 : index
    %11 = vector.load %arg1[%c0_11, %c2, %c0_12] : memref<1x20x128xbf16, #tpu.memory_space<vmem>>, vector<1x8x128xbf16>
    %12 = vector.shape_cast %11 : vector<1x8x128xbf16> to vector<8x128xbf16>
    %c2_13 = arith.constant 2 : index
    %c0_14 = arith.constant 0 : index
    %c0_15 = arith.constant 0 : index
    %13 = vector.load %arg2[%c2_13, %c0_14, %c0_15] : memref<9x128x128xbf16, #tpu.memory_space<vmem>>, vector<1x128x128xbf16>
    %14 = vector.shape_cast %13 : vector<1x128x128xbf16> to vector<128x128xbf16>
    %cst_16 = arith.constant dense<0.000000e+00> : vector<8x128xf32>
    %15 = tpu.matmul %12, %14, %cst_16 {dimension_numbers = #tpu.dot_dimension_numbers<[1], [0], [0], [1], [0, 0, 1, 1], [], []>} : vector<8x128xbf16>, vector<128x128xbf16>, vector<8x128xf32> -> vector<8x128xf32>
    %16 = arith.addf %10, %15 : vector<8x128xf32>
    %c0_17 = arith.constant 0 : index
    %c4 = arith.constant 4 : index
    %c0_18 = arith.constant 0 : index
    %17 = vector.load %arg1[%c0_17, %c4, %c0_18] : memref<1x20x128xbf16, #tpu.memory_space<vmem>>, vector<1x8x128xbf16>
    %18 = vector.shape_cast %17 : vector<1x8x128xbf16> to vector<8x128xbf16>
    %c3 = arith.constant 3 : index
    %c0_19 = arith.constant 0 : index
    %c0_20 = arith.constant 0 : index
    %19 = vector.load %arg2[%c3, %c0_19, %c0_20] : memref<9x128x128xbf16, #tpu.memory_space<vmem>>, vector<1x128x128xbf16>
    %20 = vector.shape_cast %19 : vector<1x128x128xbf16> to vector<128x128xbf16>
    %cst_21 = arith.constant dense<0.000000e+00> : vector<8x128xf32>
    %21 = tpu.matmul %18, %20, %cst_21 {dimension_numbers = #tpu.dot_dimension_numbers<[1], [0], [0], [1], [0, 0, 1, 1], [], []>} : vector<8x128xbf16>, vector<128x128xbf16>, vector<8x128xf32> -> vector<8x128xf32>
    %22 = arith.addf %16, %21 : vector<8x128xf32>
    %c0_22 = arith.constant 0 : index
    %c5 = arith.constant 5 : index
    %c0_23 = arith.constant 0 : index
    %23 = vector.load %arg1[%c0_22, %c5, %c0_23] : memref<1x20x128xbf16, #tpu.memory_space<vmem>>, vector<1x8x128xbf16>
    %24 = vector.shape_cast %23 : vector<1x8x128xbf16> to vector<8x128xbf16>
    %c4_24 = arith.constant 4 : index
    %c0_25 = arith.constant 0 : index
    %c0_26 = arith.constant 0 : index
    %25 = vector.load %arg2[%c4_24, %c0_25, %c0_26] : memref<9x128x128xbf16, #tpu.memory_space<vmem>>, vector<1x128x128xbf16>
    %26 = vector.shape_cast %25 : vector<1x128x128xbf16> to vector<128x128xbf16>
    %cst_27 = arith.constant dense<0.000000e+00> : vector<8x128xf32>
    %27 = tpu.matmul %24, %26, %cst_27 {dimension_numbers = #tpu.dot_dimension_numbers<[1], [0], [0], [1], [0, 0, 1, 1], [], []>} : vector<8x128xbf16>, vector<128x128xbf16>, vector<8x128xf32> -> vector<8x128xf32>
    %28 = arith.addf %22, %27 : vector<8x128xf32>
    %c0_28 = arith.constant 0 : index
    %c6 = arith.constant 6 : index
    %c0_29 = arith.constant 0 : index
    %29 = vector.load %arg1[%c0_28, %c6, %c0_29] : memref<1x20x128xbf16, #tpu.memory_space<vmem>>, vector<1x8x128xbf16>
    %30 = vector.shape_cast %29 : vector<1x8x128xbf16> to vector<8x128xbf16>
    %c5_30 = arith.constant 5 : index
    %c0_31 = arith.constant 0 : index
    %c0_32 = arith.constant 0 : index
    %31 = vector.load %arg2[%c5_30, %c0_31, %c0_32] : memref<9x128x128xbf16, #tpu.memory_space<vmem>>, vector<1x128x128xbf16>
    %32 = vector.shape_cast %31 : vector<1x128x128xbf16> to vector<128x128xbf16>
    %cst_33 = arith.constant dense<0.000000e+00> : vector<8x128xf32>
    %33 = tpu.matmul %30, %32, %cst_33 {dimension_numbers = #tpu.dot_dimension_numbers<[1], [0], [0], [1], [0, 0, 1, 1], [], []>} : vector<8x128xbf16>, vector<128x128xbf16>, vector<8x128xf32> -> vector<8x128xf32>
    %34 = arith.addf %28, %33 : vector<8x128xf32>
    %c0_34 = arith.constant 0 : index
    %c8 = arith.constant 8 : index
    %c0_35 = arith.constant 0 : index
    %35 = vector.load %arg1[%c0_34, %c8, %c0_35] : memref<1x20x128xbf16, #tpu.memory_space<vmem>>, vector<1x8x128xbf16>
    %36 = vector.shape_cast %35 : vector<1x8x128xbf16> to vector<8x128xbf16>
    %c6_36 = arith.constant 6 : index
    %c0_37 = arith.constant 0 : index
    %c0_38 = arith.constant 0 : index
    %37 = vector.load %arg2[%c6_36, %c0_37, %c0_38] : memref<9x128x128xbf16, #tpu.memory_space<vmem>>, vector<1x128x128xbf16>
    %38 = vector.shape_cast %37 : vector<1x128x128xbf16> to vector<128x128xbf16>
    %cst_39 = arith.constant dense<0.000000e+00> : vector<8x128xf32>
    %39 = tpu.matmul %36, %38, %cst_39 {dimension_numbers = #tpu.dot_dimension_numbers<[1], [0], [0], [1], [0, 0, 1, 1], [], []>} : vector<8x128xbf16>, vector<128x128xbf16>, vector<8x128xf32> -> vector<8x128xf32>
    %40 = arith.addf %34, %39 : vector<8x128xf32>
    %c0_40 = arith.constant 0 : index
    %c9 = arith.constant 9 : index
    %c0_41 = arith.constant 0 : index
    %41 = vector.load %arg1[%c0_40, %c9, %c0_41] : memref<1x20x128xbf16, #tpu.memory_space<vmem>>, vector<1x8x128xbf16>
    %42 = vector.shape_cast %41 : vector<1x8x128xbf16> to vector<8x128xbf16>
    %c7 = arith.constant 7 : index
    %c0_42 = arith.constant 0 : index
    %c0_43 = arith.constant 0 : index
    %43 = vector.load %arg2[%c7, %c0_42, %c0_43] : memref<9x128x128xbf16, #tpu.memory_space<vmem>>, vector<1x128x128xbf16>
    %44 = vector.shape_cast %43 : vector<1x128x128xbf16> to vector<128x128xbf16>
    %cst_44 = arith.constant dense<0.000000e+00> : vector<8x128xf32>
    %45 = tpu.matmul %42, %44, %cst_44 {dimension_numbers = #tpu.dot_dimension_numbers<[1], [0], [0], [1], [0, 0, 1, 1], [], []>} : vector<8x128xbf16>, vector<128x128xbf16>, vector<8x128xf32> -> vector<8x128xf32>
    %46 = arith.addf %40, %45 : vector<8x128xf32>
    %c0_45 = arith.constant 0 : index
    %c10 = arith.constant 10 : index
    %c0_46 = arith.constant 0 : index
    %47 = vector.load %arg1[%c0_45, %c10, %c0_46] : memref<1x20x128xbf16, #tpu.memory_space<vmem>>, vector<1x8x128xbf16>
    %48 = vector.shape_cast %47 : vector<1x8x128xbf16> to vector<8x128xbf16>
    %c8_47 = arith.constant 8 : index
    %c0_48 = arith.constant 0 : index
    %c0_49 = arith.constant 0 : index
    %49 = vector.load %arg2[%c8_47, %c0_48, %c0_49] : memref<9x128x128xbf16, #tpu.memory_space<vmem>>, vector<1x128x128xbf16>
    %50 = vector.shape_cast %49 : vector<1x128x128xbf16> to vector<128x128xbf16>
    %cst_50 = arith.constant dense<0.000000e+00> : vector<8x128xf32>
    %51 = tpu.matmul %48, %50, %cst_50 {dimension_numbers = #tpu.dot_dimension_numbers<[1], [0], [0], [1], [0, 0, 1, 1], [], []>} : vector<8x128xbf16>, vector<128x128xbf16>, vector<8x128xf32> -> vector<8x128xf32>
    %52 = arith.addf %46, %51 : vector<8x128xf32>
    %c0_51 = arith.constant 0 : index
    %c0_52 = arith.constant 0 : index
    %53 = vector.load %arg3[%c0_51, %c0_52] : memref<1x128xf32, #tpu.memory_space<vmem>>, vector<1x128xf32>
    %54 = vector.broadcast %53 : vector<1x128xf32> to vector<8x128xf32>
    %55 = arith.addf %52, %54 : vector<8x128xf32>
    %cst_53 = arith.constant 0.000000e+00 : f32
    %56 = vector.broadcast %cst_53 : f32 to vector<8x128xf32>
    %57 = arith.maximumf %55, %56 : vector<8x128xf32>
    %58 = arith.truncf %57 : vector<8x128xf32> to vector<8x128xbf16>
    %c0_54 = arith.constant 0 : index
    %c0_55 = arith.constant 0 : index
    %c0_56 = arith.constant 0 : index
    %59 = vector.load %arg4[%c0_54, %c0_55, %c0_56] : memref<1x8x128xbf16, #tpu.memory_space<vmem>>, vector<1x8x128xbf16>
    %60 = vector.shape_cast %59 : vector<1x8x128xbf16> to vector<8x128xbf16>
    %61 = vector.shape_cast %58 : vector<8x128xbf16> to vector<1x8x128xbf16>
    tpu.vector_store %arg4[%c0_54, %c0_55, %c0_56], %61 {strides = array<i32>} : memref<1x8x128xbf16, #tpu.memory_space<vmem>>, vector<1x8x128xbf16>,
    return
  }
  func.func @transform_0(%arg0: i32) -> (i32, i32, i32) {
    %c0_i32 = arith.constant 0 : i32
    %c0_i32_0 = arith.constant 0 : i32
    %c0_i32_1 = arith.constant 0 : i32
    return %arg0, %c0_i32, %c0_i32_0 : i32, i32, i32
  }
  func.func @transform_1(%arg0: i32) -> (i32, i32, i32) {
    %c0_i32 = arith.constant 0 : i32
    %c0_i32_0 = arith.constant 0 : i32
    %c0_i32_1 = arith.constant 0 : i32
    %c0_i32_2 = arith.constant 0 : i32
    return %c0_i32, %c0_i32_0, %c0_i32_1 : i32, i32, i32
  }
  func.func @transform_2(%arg0: i32) -> (i32, i32) {
    %c0_i32 = arith.constant 0 : i32
    %c0_i32_0 = arith.constant 0 : i32
    %c0_i32_1 = arith.constant 0 : i32
    return %c0_i32, %c0_i32_0 : i32, i32
  }
  func.func @transform_3(%arg0: i32) -> (i32, i32, i32) {
    %c0_i32 = arith.constant 0 : i32
    %c0_i32_0 = arith.constant 0 : i32
    %c0_i32_1 = arith.constant 0 : i32
    return %arg0, %c0_i32, %c0_i32_0 : i32, i32, i32
  }
}

</mosaic_0001>

<bundles_post_ra>
// kernel: _lambda_.16
= control target key start
LH: loop header
LB: loop body
LE: loop exit
PB: predicated region body
PF: predicated region fallthrough
CT: control target
= control target key end

     0   :  { %vm80_vm0 = vcmask 523264   ;;  %vm169_vm1 = vcmask 519168   ;;  %s411_s0 = inlined_call_operand.vmem [shape: bf16[9,32,64], index: 0, kind: input, shape index: {}]   ;;  %s412_s1 = inlined_call_operand.vmem [shape: bf16[32,64], index: 1, kind: output, shape index: {}]  }
   0x1   :  { %v187_v0 = vld [vmem:[%s411_s0] sm:$0xff]   ;;  %v259_v1 = vld [vmem:[%s411_s0 + $0x10] sm:$0xff]   ;;  %v258_v33 = vld [vmem:[%s411_s0 + $0x8] sm:$0xff]  }
   0x2   :  { %v261_v2 = vld [vmem:[%s411_s0 + $0x20] sm:$0xff]   ;;  %v188_v3 = vunpack.c.l.bf16 %v187_v0  ;;  %v196_v4 = vunpack.c.l.bf16 %v259_v1  ;;  %v263_v6 = vld [vmem:[%s411_s0 + $0x30] sm:$0xff]   ;;  %v189_v17 = vunpack.c.h.bf16 %v187_v0  ;;  %v197_v18 = vunpack.c.h.bf16 %v259_v1  ;;  %v329_v34 = vld [vmem:[%s411_s0 + $0x18] sm:$0xff]  }
   0x3   :  { %v204_v5 = vunpack.c.l.bf16 %v261_v2  ;;  %v265_v7 = vld [vmem:[%s411_s0 + $0x40] sm:$0xff]   ;;  %v212_v8 = vunpack.c.l.bf16 %v263_v6  ;;  %v267_v9 = vld [vmem:[%s411_s0 + $0x50] sm:$0xff]   ;;  %v205_v24 = vunpack.c.h.bf16 %v261_v2  ;;  %v213_v25 = vunpack.c.h.bf16 %v263_v6  ;;  %v262_v39 = vld [vmem:[%s411_s0 + $0x28] sm:$0xff]  }
   0x4   :  { %v269_v10 = vld [vmem:[%s411_s0 + $0x60] sm:$0xff]   ;;  %v220_v11 = vunpack.c.l.bf16 %v265_v7  ;;  %v271_v12 = vld [vmem:[%s411_s0 + $0x70] sm:$0xff]   ;;  %v81_v13 = vsel %vm80_vm0, %v188_v3, -inf  ;;  %v82_v15 = vsel %vm80_vm0, %v196_v4, -inf  ;;  %v228_v19 = vunpack.c.l.bf16 %v267_v9  ;;  %v338_v40 = vld [vmem:[%s411_s0 + $0x38] sm:$0xff]  }
   0x5   :  { %v313_v14 = vld [vmem:[%s411_s0 + $0x80] sm:$0xff]   ;;  %v84_v16 = vsel %vm80_vm0, %v204_v5, -inf  ;;  %v236_v20 = vunpack.c.l.bf16 %v269_v10  ;;  %v83_v21 = vmax.f32 %v81_v13, %v82_v15  ;;  %v244_v22 = vunpack.c.l.bf16 %v271_v12  ;;  %v347_v49 = vld [vmem:[%s411_s0 + $0x48] sm:$0xff]   ;;  %v268_v58 = vld [vmem:[%s411_s0 + $0x58] sm:$0xff]  }
   0x6   :  { %v86_v23 = vsel %vm80_vm0, %v212_v8, -inf  ;;  %v252_v26 = vunpack.c.l.bf16 %v313_v14  ;;  %v88_v28 = vsel %vm80_vm0, %v220_v11, -inf  ;;  %v221_v29 = vunpack.c.h.bf16 %v265_v7  ;;  %v360_v60 = vld [vmem:[%s411_s0 + $0x68] sm:$0xff]   ;;  %v272_v11 = vld [vmem:[%s411_s0 + $0x78] sm:$0xff]  }
   0x7   :  { %v85_v27 = vmax.f32 %v83_v21, %v84_v16  ;;  %v98_v30 = vsel %vm80_vm0, %v189_v17, -inf  ;;  %v99_v31 = vsel %vm80_vm0, %v197_v18, -inf  ;;  %v101_v32 = vsel %vm80_vm0, %v205_v24, -inf }
   0x8   :  { %v90_v36 = vsel %vm80_vm0, %v228_v19, -inf  ;;  %v229_v37 = vunpack.c.h.bf16 %v267_v9  ;;  %v100_v38 = vmax.f32 %v98_v30, %v99_v31  ;;  %v92_v41 = vsel %vm80_vm0, %v236_v20, -inf }
   0x9   :  { %v87_v35 = vmax.f32 %v85_v27, %v86_v23  ;;  %v94_v42 = vsel %vm80_vm0, %v244_v22, -inf  ;;  %v237_v43 = vunpack.c.h.bf16 %v269_v10  ;;  %v103_v44 = vsel %vm80_vm0, %v213_v25, -inf }
   0xa   :  { %v102_v46 = vmax.f32 %v100_v38, %v101_v32  ;;  %v192_v47 = vunpack.c.l.bf16 %v258_v33  ;;  %v200_v48 = vunpack.c.l.bf16 %v329_v34  ;;  %v245_v50 = vunpack.c.h.bf16 %v271_v12  ;;  %v274_v12 = vld [vmem:[%s411_s0 + $0x88] sm:$0xff]  }
   0xb   :  { %v89_v45 = vmax.f32 %v87_v35, %v88_v28  ;;  %v105_v51 = vsel %vm80_vm0, %v221_v29, -inf  ;;  %v208_v52 = vunpack.c.l.bf16 %v262_v39  ;;  %v216_v53 = vunpack.c.l.bf16 %v338_v40 }
   0xc   :  { %v96_v55 = vsel %vm80_vm0, %v252_v26, -inf  ;;  %v104_v56 = vmax.f32 %v102_v46, %v103_v44  ;;  %v107_v57 = vsel %vm80_vm0, %v229_v37, -inf  ;;  %v224_v59 = vunpack.c.l.bf16 %v347_v49 }
   0xd   :  { %v91_v54 = vmax.f32 %v89_v45, %v90_v36  ;;  %v115_v61 = vsel %vm80_vm0, %v192_v47, -inf  ;;  %v116_v62 = vsel %vm80_vm0, %v200_v48, -inf  ;;  %v118_v63 = vsel %vm80_vm0, %v208_v52, -inf }
   0xe   :  { %v253_v1 = vunpack.c.h.bf16 %v313_v14  ;;  %v106_v2 = vmax.f32 %v104_v56, %v105_v51  ;;  %v117_v3 = vmax.f32 %v115_v61, %v116_v62  ;;  %v109_v4 = vsel %vm80_vm0, %v237_v43, -inf }
   0xf   :  { %v93_v0 = vmax.f32 %v91_v54, %v92_v41  ;;  %v111_v5 = vsel %vm80_vm0, %v245_v50, -inf  ;;  %v232_v6 = vunpack.c.l.bf16 %v268_v58  ;;  %v120_v7 = vsel %vm80_vm0, %v216_v53, -inf }
  0x10   :  { %v108_v9 = vmax.f32 %v106_v2, %v107_v57  ;;  %v240_v10 = vunpack.c.l.bf16 %v360_v60  ;;  %v119_v13 = vmax.f32 %v117_v3, %v118_v63  ;;  %v122_v14 = vsel %vm80_vm0, %v224_v59, -inf }
  0x11   :  { %v95_v8 = vmax.f32 %v93_v0, %v94_v42  ;;  %v193_v15 = vunpack.c.h.bf16 %v258_v33  ;;  %v201_v16 = vunpack.c.h.bf16 %v329_v34  ;;  %v209_v17 = vunpack.c.h.bf16 %v262_v39 }
  0x12   :  { %v110_v19 = vmax.f32 %v108_v9, %v109_v4  ;;  %v113_v20 = vsel %vm80_vm0, %v253_v1, -inf  ;;  %v121_v21 = vmax.f32 %v119_v13, %v120_v7  ;;  %v248_v22 = vunpack.c.l.bf16 %v272_v11 }
  0x13   :  { %v97_v18 = vmax.f32 %v95_v8, %v96_v55  ;;  %v256_v23 = vunpack.c.l.bf16 %v274_v12  ;;  %v124_v24 = vsel %vm80_vm0, %v232_v6, -inf  ;;  %v217_v25 = vunpack.c.h.bf16 %v338_v40 }
  0x14   :  { %v112_v27 = vmax.f32 %v110_v19, %v111_v5  ;;  %v123_v28 = vmax.f32 %v121_v21, %v122_v14  ;;  %v132_v29 = vsel %vm80_vm0, %v193_v15, -inf  ;;  %v126_v30 = vsel %vm80_vm0, %v240_v10, -inf }
  0x15   :  { %v149_v26 = vmax.f32 %v97_v18, 0.0  ;;  %v225_v31 = vunpack.c.h.bf16 %v347_v49  ;;  %v133_v32 = vsel %vm80_vm0, %v201_v16, -inf  ;;  %v135_v33 = vsel %vm80_vm0, %v209_v17, -inf }
  0x16   :  { %v114_v35 = vmax.f32 %v112_v27, %v113_v20  ;;  %v125_v36 = vmax.f32 %v123_v28, %v124_v24  ;;  %v134_v37 = vmax.f32 %v132_v29, %v133_v32  ;;  %v128_v38 = vsel %vm80_vm0, %v248_v22, -inf }
  0x17   :  { %v182_v34 = vpack.c.bf16 %v149_v26, %v149_v26  ;;  %v233_v39 = vunpack.c.h.bf16 %v268_v58  ;;  %v137_v40 = vsel %vm80_vm0, %v217_v25, -inf  ;;  %v130_v44 = vsel %vm80_vm0, %v256_v23, -inf }
  0x18   :  { %v150_v41 = vmax.f32 %v114_v35, 0.0  ;;  %v127_v42 = vmax.f32 %v125_v36, %v126_v30  ;;  %v136_v43 = vmax.f32 %v134_v37, %v135_v33  ;;  %v241_v45 = vunpack.c.h.bf16 %v360_v60 }
  0x19   :  { %170 = vst.msk [vmem:[%s412_s1] sm:$0xf] %vm169_vm1, %v182_v34  ;;  %v139_v46 = vsel %vm80_vm0, %v225_v31, -inf  ;;  %v249_v50 = vunpack.c.h.bf16 %v272_v11  ;;  %v141_v51 = vsel %vm80_vm0, %v233_v39, -inf  ;;  %v257_v54 = vunpack.c.h.bf16 %v274_v12 }
  0x1a   :  { %v183_v47 = vpack.c.bf16 %v150_v41, %v150_v41  ;;  %v129_v48 = vmax.f32 %v127_v42, %v128_v38  ;;  %v138_v49 = vmax.f32 %v136_v43, %v137_v40  ;;  %v143_v55 = vsel %vm80_vm0, %v241_v45, -inf }
  0x1b   :  { %v145_v58 = vsel %vm80_vm0, %v249_v50, -inf  ;;  %v147_v61 = vsel %vm80_vm0, %v257_v54, -inf }
  0x1c   :  { %171 = vst.msk [vmem:[%s412_s1 + $0x4] sm:$0xf] %vm169_vm1, %v183_v47  ;;  %v131_v52 = vmax.f32 %v129_v48, %v130_v44  ;;  %v140_v53 = vmax.f32 %v138_v49, %v139_v46 }
  0x1e   :  { %v151_v56 = vmax.f32 %v131_v52, 0.0  ;;  %v142_v57 = vmax.f32 %v140_v53, %v141_v51 }
  0x20   :  { %v184_v59 = vpack.c.bf16 %v151_v56, %v151_v56  ;;  %v144_v60 = vmax.f32 %v142_v57, %v143_v55 }
  0x22   :  { %172 = vst.msk [vmem:[%s412_s1 + $0x8] sm:$0xf] %vm169_vm1, %v184_v59  ;;  %v146_v62 = vmax.f32 %v144_v60, %v145_v58 }
  0x24   :  { %v148_v63 = vmax.f32 %v146_v62, %v147_v61 }
  0x26   :  { %v152_v0 = vmax.f32 %v148_v63, 0.0 }
  0x28   :  { %v185_v1 = vpack.c.bf16 %v152_v0, %v152_v0 }
  0x2a   :  { %173 = vst.msk [vmem:[%s412_s1 + $0xc] sm:$0xf] %vm169_vm1, %v185_v1 }

// kernel: _lambda_.17
= control target key start
LH: loop header
LB: loop body
LE: loop exit
PB: predicated region body
PF: predicated region fallthrough
CT: control target
= control target key end

     0   :  { %s1578_s12 = smov 0   ;;  %s1781_s0 = inlined_call_operand.vmem [shape: bf16[2,42,64], index: 0, kind: input, shape index: {}]   ;;  %s1782_s1 = inlined_call_operand.vmem [shape: bf16[9,64,64], index: 1, kind: input, shape index: {}]   ;;  %s1783_s2 = inlined_call_operand.vmem [shape: f32[1,64], index: 2, kind: input, shape index: {}]   ;;  %s1784_s3 = inlined_call_operand.vmem [shape: bf16[2,24,64], index: 3, kind: output, shape index: {}]  }
   0x1 LB: > { %s1182_s13 = sadd.s32 4294967295, %s1556_s12   ;;  %p1186_p0 = scmp.ge.s32.totalorder %s1556_s12, 1  ;;  %s1556_s12 = sphi %s1578_s12, %s13_s12  }
   0x2   : > { %p137_p1 = scmp.lt.s32.totalorder %s1556_s12, 3 }
   0x4   : > { %p138_p2 = pnand %p1186_p0, %p137_p1 }
   0x5   : > { %p161_p3 = scmp.lt.s32.totalorder (!%p138_p2), %s1182_s13, 1 }
   0x6   : > { %141 = sbr.rel (%p138_p2) target bundleno = 300 (0x12c), region = 32 }
   0xb   : > { %v1501_v0 = vld [vmem:[%s1782_s1 + $0x38] sm:$0xff]   ;;  %v1503_v2 = vld [vmem:[%s1782_s1 + $0x30] sm:$0xff]   ;;  %s1786_s13 = smov (!%p161_p3, %s1182_s13), 1  ;;  %v1505_v4 = vld [vmem:[%s1782_s1 + $0x28] sm:$0xff]   ;;  %vm243_vm0 = vcmask 523264   ;;  %vm389_vm2 = vcmask 1046528  }
   0xc   : > { %v1502_v1 = vld [vmem:[%s1782_s1 + $0x18] sm:$0xff]   ;;  %1383 = vmatprep.subr.bf16.mxu0 %v1501_v0  ;;  %v1504_v3 = vld [vmem:[%s1782_s1 + $0x10] sm:$0xff]   ;;  %s1491_s24 = smul.u32 24, %s1786_s13  ;;  %v1506_v5 = vld [vmem:[%s1782_s1 + $0x8] sm:$0xff]   ;;  %vm203_vm1 = vsmask.f32 7424 }
   0xd   : > { %1395 = vmatprep.subr.bf16.mxu1 %v1502_v1  ;;  %1384 = vmatpush3.bf16.msra.mxu0 %v1501_v0  ;;  %v1507_v6 = vld [vmem:[%s1782_s1 + $0x20] sm:$0xff]   ;;  %v1512_v16 = vld [vmem:[%s1782_s1 + $0x58] sm:$0xff]   ;;  %v1514_v25 = vld [vmem:[%s1782_s1 + $0x50] sm:$0xff]   ;;  %vm491_vm3 = vcmask 1044480   ;;  %vm589_vm4 = vsmask.f32 4352 }
   0xe   : > { %1396 = vmatpush3.bf16.msra.mxu1 %v1502_v1  ;;  %1385 = vmatprep.subr.bf16.mxu0 %v1503_v2  ;;  %s1610_s29 = scalar_lea.vmem %s1781_s0, %s1491_s24  ;;  %v1508_v10 = vld [vmem:[%s1782_s1] sm:$0xff]   ;;  %v1513_v20 = vld [vmem:[%s1782_s1 + $0x78] sm:$0xff]   ;;  %v1515_v27 = vld [vmem:[%s1782_s1 + $0x70] sm:$0xff]   ;;  %vm803_vm5 = vcmask 1045504   ;;  %vm901_vm6 = vsmask.f32 5376 }
   0xf   : > { %1397 = vmatprep.subr.bf16.mxu1 %v1504_v3  ;;  %v172_v7 = vld [vmem:[%s1610_s29] sm:$0xf]  ;;  %v1617_v8 = vld [vmem:[%s1610_s29 + $0x4] sm:$0xf]  ;;  %v1620_v9 = vld [vmem:[%s1610_s29 + $0x8] sm:$0xf] }
  0x10   : > { %v183_v11 = vld [vmem:[%s1610_s29 + $0xc] sm:$0x1]  ;;  %v1197_v12 = vcombine.low %v172_v7, %v1617_v8  ;;  %v1205_v23 = vcombine.low %v1620_v9, %v1620_v9  ;;  %v376_v28 = vld [vmem:[%s1610_s29] sm:$0xe]  ;;  %v1521_v46 = vld [vmem:[%s1782_s1 + $0x98] sm:$0xff]   ;;  %v1266_v60 = vcombine.low %v1617_v8, %v1620_v9  ;;  %s1492_s18 = smul.u32 12, %s1786_s13 }
  0x11   : > { %1386 = vmatpush3.bf16.msra.mxu0 %v1503_v2  ;;  %v1628_v13 = vcombine.low %v1620_v9, %v183_v11  ;;  %v1220_v29 = vcombine.low %v376_v28, %v1617_v8  ;;  %v474_v31 = vld [vmem:[%s1610_s29] sm:$0x8]  ;;  %v475_v32 = vld [vmem:[%s1610_s29 + $0xc] sm:$0x7]  ;;  %v1524_v51 = vld [vmem:[%s1782_s1 + $0xb8] sm:$0xff]   ;;  %vm1123_vm7 = vcmask 519168  }
  0x12   : > { %1398 = vmatpush3.bf16.msra.mxu1 %v1504_v3  ;;  %1387 = vmatprep.subr.bf16.mxu0 %v1505_v4  ;;  %v205_v14 = vshrl.u32 %v1197_v12, 16  ;;  %v207_v15 = vshll.u32 %v1197_v12, 16  ;;  %v1516_v33 = vld [vmem:[%s1782_s1 + $0x48] sm:$0xff]   ;;  %v1235_v34 = vcombine.low %v474_v31, %v1617_v8  ;;  %v1236_v35 = vcombine.low %v1620_v9, %v475_v32  ;;  %v1518_v42 = vld [vmem:[%s1782_s1 + $0x40] sm:$0xff]   ;;  %v1525_v54 = vld [vmem:[%s1782_s1 + $0x90] sm:$0xff]   ;;  %s170_s21 = scalar_lea.vmem %s1784_s3, %s1492_s18 }
  0x13   : > { %1399 = vmatprep.subr.bf16.mxu1 %v1506_v5  ;;  %1403 = vmatprep.mubr.msk.bf16.mxu1 %vm243_vm0, %v1197_v12  ;;  %v212_v17 = vshll.u32 %v1628_v13, 16  ;;  %v216_v18 = vshrl.u32 %v1628_v13, 16  ;;  %v391_v30 = vrot.slane %v1628_v13, 1  ;;  %v1517_v36 = vld [vmem:[%s1782_s1 + $0x68] sm:$0xff]   ;;  %v390_v37 = vrot.slane %v1220_v29, 1  ;;  %v1519_v45 = vld [vmem:[%s1782_s1 + $0x60] sm:$0xff]  }
  0x14   : > { %v209_v19 = vrot.slane %v207_v15, 1  ;;  %v492_v38 = vrot.slane %v1235_v34, 3  ;;  %v493_v39 = vrot.slane %v1236_v35, 3  ;;  %v591_v41 = vshrl.u32 %v1235_v34, 16  ;;  %v1678_v47 = vld [vmem:[%s1610_s29 + $0xc] sm:$0xf] }
  0x15   : > { %1388 = vmatpush3.bf16.msra.mxu0 %v1505_v4  ;;  %v214_v21 = vrot.slane %v212_v17, 1  ;;  %v392_v40 = vsel %vm389_vm2, %v390_v37, %v391_v30  ;;  %v594_v44 = vshll.u32 %v1235_v34, 16  ;;  %v1251_v50 = vcombine.low %v1620_v9, %v1678_v47  ;;  %v1526_v55 = vld [vmem:[%s1782_s1 + $0xb0] sm:$0xff]   ;;  %v1527_v61 = vld [vmem:[%s1782_s1 + $0x88] sm:$0xff]   ;;  %v780_v62 = vld [vmem:[%s1610_s29 + $0x4] sm:$0xc] }
  0x16   : > { %1400 = vmatpush3.bf16.msra.mxu1 %v1506_v5  ;;  %1389 = vmatprep.subr.bf16.mxu0 %v1507_v6  ;;  %v210_v22 = vor.u32 %v209_v19, %v205_v14  ;;  %v494_v43 = vsel %vm491_vm3, %v492_v38, %v493_v39  ;;  %v593_v48 = vrot.slane %v591_v41, 3  ;;  %v1528_v63 = vld [vmem:[%s1782_s1 + $0xa8] sm:$0xff]   ;;  %v888_v4 = vld [vmem:[%s1610_s29 + $0x10] sm:$0x7]  ;;  %v1529_v11 = vld [vmem:[%s1782_s1 + $0x80] sm:$0xff]  }
  0x17   : > { %1401 = vmatprep.subr.bf16.mxu1 %v1508_v10  ;;  %v218_v24 = vor.u32 %v216_v18, %v214_v21  ;;  %v596_v49 = vrot.slane %v594_v44, 4  ;;  %v599_v52 = vshrl.u32 %v1251_v50, 16  ;;  %v602_v53 = vshll.u32 %v1251_v50, 16  ;;  %v1703_v1 = vld [vmem:[%s1610_s29 + $0x8] sm:$0xf]  ;;  %v1530_v12 = vld [vmem:[%s1782_s1 + $0xa0] sm:$0xff]  }
  0x18   : > { %v215_v26 = vsel %vm203_vm1, %v210_v22, %v214_v21  ;;  %v782_v2 = vld [vmem:[%s1610_s29 + $0xc] sm:$0xf]  ;;  %v1282_v3 = vcombine.low %v780_v62, %v1703_v1  ;;  %v1532_v18 = vld [vmem:[%s1782_s1 + $0xd8] sm:$0xff]   ;;  %v1000_v31 = vld [vmem:[%s1610_s29 + $0x4] sm:$0x8] }
  0x19   : > { %1390 = vmatpush3.bf16.msra.mxu0 %v1507_v6  ;;  %1391 = vmatprep.mubr.msk.bf16.mxu0 %vm243_vm0, %v215_v26  ;;  %v597_v56 = vor.u32 %v596_v49, %v593_v48  ;;  %v601_v57 = vrot.slane %v599_v52, 3  ;;  %v604_v58 = vrot.slane %v602_v53, 4  ;;  %v1710_v5 = vcombine.low %v782_v2, %v888_v4  ;;  %v783_v6 = vld [vmem:[%s1610_s29 + $0x10] sm:$0x3]  ;;  %v1535_v19 = vld [vmem:[%s1782_s1 + $0xf8] sm:$0xff]   ;;  %v1538_v29 = vld [vmem:[%s1782_s1 + $0xc8] sm:$0xff]  }
  0x1a   : > { %1402 = vmatpush3.bf16.msra.mxu1 %v1508_v10  ;;  %1407 = vmatprep.subr.bf16.mxu0 %v1512_v16  ;;  %v903_v7 = vshrl.u32 %v1282_v3, 16  ;;  %v906_v8 = vshll.u32 %v1282_v3, 16  ;;  %v1283_v13 = vcombine.low %v782_v2, %v783_v6  ;;  %v804_v21 = vrot.slane %v1282_v3, 2  ;;  %v1537_v26 = vld [vmem:[%s1782_s1 + $0xf0] sm:$0xff]   ;;  %v1540_v32 = vld [vmem:[%s1782_s1 + $0xc0] sm:$0xff]   ;;  %v1545_v35 = vld [vmem:[%s1782_s1 + $0x118] sm:$0xff]  }
  0x1b   : > { %1419 = vmatprep.subr.bf16.mxu1 %v1513_v20  ;;  %v605_v59 = vor.u32 %v604_v58, %v601_v57  ;;  %v911_v9 = vshrl.u32 %v1710_v5, 16  ;;  %v914_v10 = vshll.u32 %v1710_v5, 16  ;;  %v1313_v34 = vcombine.low %v1000_v31, %v1703_v1  ;;  %v1546_v38 = vld [vmem:[%s1782_s1 + $0x110] sm:$0xff]   ;;  %v1548_v41 = vld [vmem:[%s1782_s1 + $0x100] sm:$0xff]  }
  0x1c   : > { %1392 = vmatmul.mubr.msk.bf16.vlgmr.msra.gmra.mxu0 %vm243_vm0, %v218_v24  ;;  %v905_v14 = vrot.slane %v903_v7, 2  ;;  %v908_v15 = vrot.slane %v906_v8, 3  ;;  %v805_v22 = vrot.slane %v1283_v13, 2  ;;  %v1014_v37 = vrot.slane %v1710_v5, 3 }
  0x1d   : > { %1404 = vmatmul.mubr.msk.bf16.vlgmr.msra.gmra.mxu1 %vm243_vm0, %v1205_v23  ;;  %1408 = vmatpush3.bf16.msra.mxu0 %v1512_v16  ;;  %v606_v0 = vsel %vm589_vm4, %v597_v56, %v605_v59  ;;  %v913_v16 = vrot.slane %v911_v9, 2  ;;  %v916_v17 = vrot.slane %v914_v10, 3 }
  0x1e   : > { %1420 = vmatpush3.bf16.msra.mxu1 %v1513_v20  ;;  %1409 = vmatprep.subr.bf16.mxu0 %v1514_v25  ;;  %v1267_v20 = vcombine.low %v1678_v47, %v1678_v47  ;;  %v909_v23 = vor.u32 %v908_v15, %v905_v14 }
  0x1f   : > { %1421 = vmatprep.subr.bf16.mxu1 %v1515_v27  ;;  %1415 = vmatprep.mubr.msk.bf16.mxu0 %vm243_vm0, %v392_v40  ;;  %v917_v24 = vor.u32 %v916_v17, %v913_v16  ;;  %v1547_v40 = vld [vmem:[%s1782_s1 + $0x108] sm:$0xff]  }
  0x20   : > { %1427 = vmatprep.mubr.msk.bf16.mxu1 %vm243_vm0, %v494_v43 }
  0x21   : > { %1410 = vmatpush3.bf16.msra.mxu0 %v1514_v25  ;;  %v1536_v25 = vld [vmem:[%s1782_s1 + $0xd0] sm:$0xff]   ;;  %v918_v28 = vsel %vm901_vm6, %v909_v23, %v917_v24 }
  0x22   : > { %1422 = vmatpush3.bf16.msra.mxu1 %v1515_v27  ;;  %1411 = vmatprep.subr.bf16.mxu0 %v1516_v33  ;;  %v806_v27 = vsel %vm803_vm5, %v804_v21, %v805_v22 }
  0x23   : > { %1423 = vmatprep.subr.bf16.mxu1 %v1517_v36 }
  0x25   : > { %1412 = vmatpush3.bf16.msra.mxu0 %v1516_v33  ;;  %v1541_v33 = vld [vmem:[%s1782_s1 + $0xe0] sm:$0xff]  }
  0x26   : > { %1424 = vmatpush3.bf16.msra.mxu1 %v1517_v36  ;;  %1413 = vmatprep.subr.bf16.mxu0 %v1518_v42  ;;  %v1013_v36 = vrot.slane %v1313_v34, 3 }
  0x27   : > { %1425 = vmatprep.subr.bf16.mxu1 %v1519_v45 }
  0x29   : > { %1414 = vmatpush3.bf16.msra.mxu0 %v1518_v42 }
  0x2a   : > { %1426 = vmatpush3.bf16.msra.mxu1 %v1519_v45  ;;  %1431 = vmatprep.subr.bf16.mxu0 %v1521_v46 }
  0x2b   : > { %1443 = vmatprep.subr.bf16.mxu1 %v1524_v51 }
  0x2c   : > { %1416 = vmatmul.mubr.msk.bf16.vlgmr.msra.gmra.mxu0 %vm243_vm0, %v391_v30  ;;  %v1539_v30 = vld [vmem:[%s1782_s1 + $0xe8] sm:$0xff]  }
  0x2d   : > { %1428 = vmatmul.mubr.msk.bf16.vlgmr.msra.gmra.mxu1 %vm243_vm0, %v493_v39  ;;  %1432 = vmatpush3.bf16.msra.mxu0 %v1521_v46  ;;  %v1015_v39 = vsel %vm491_vm3, %v1013_v36, %v1014_v37 }
  0x2e   : > { %1444 = vmatpush3.bf16.msra.mxu1 %v1524_v51  ;;  %1433 = vmatprep.subr.bf16.mxu0 %v1525_v54 }
  0x2f   : > { %1445 = vmatprep.subr.bf16.mxu1 %v1526_v55  ;;  %1439 = vmatprep.mubr.msk.bf16.mxu0 %vm243_vm0, %v606_v0 }
  0x30   : > { %1451 = vmatprep.mubr.msk.bf16.mxu1 %vm243_vm0, %v1266_v60 }
  0x31   : > { %1434 = vmatpush3.bf16.msra.mxu0 %v1525_v54 }
  0x32   : > { %1446 = vmatpush3.bf16.msra.mxu1 %v1526_v55  ;;  %1435 = vmatprep.subr.bf16.mxu0 %v1527_v61 }
  0x33   : > { %1447 = vmatprep.subr.bf16.mxu1 %v1528_v63 }
  0x35   : > { %1436 = vmatpush3.bf16.msra.mxu0 %v1527_v61 }
  0x36   : > { %1448 = vmatpush3.bf16.msra.mxu1 %v1528_v63  ;;  %1437 = vmatprep.subr.bf16.mxu0 %v1529_v11 }
  0x37   : > { %1449 = vmatprep.subr.bf16.mxu1 %v1530_v12 }
  0x39   : > { %1438 = vmatpush3.bf16.msra.mxu0 %v1529_v11 }
  0x3a   : > { %1450 = vmatpush3.bf16.msra.mxu1 %v1530_v12  ;;  %1455 = vmatprep.subr.bf16.mxu0 %v1532_v18 }
  0x3b   : > { %1467 = vmatprep.subr.bf16.mxu1 %v1535_v19 }
  0x3c   : > { %1440 = vmatmul.mubr.msk.bf16.vlgmr.msra.gmra.mxu0 %vm243_vm0, %v605_v59 }
  0x3d   : > { %1452 = vmatmul.mubr.msk.bf16.vlgmr.msra.gmra.mxu1 %vm243_vm0, %v1267_v20  ;;  %1456 = vmatpush3.bf16.msra.mxu0 %v1532_v18 }
  0x3e   : > { %1468 = vmatpush3.bf16.msra.mxu1 %v1535_v19  ;;  %1457 = vmatprep.subr.bf16.mxu0 %v1536_v25 }
  0x3f   : > { %1469 = vmatprep.subr.bf16.mxu1 %v1537_v26  ;;  %1463 = vmatprep.mubr.msk.bf16.mxu0 %vm243_vm0, %v806_v27 }
  0x40   : > { %1475 = vmatprep.mubr.msk.bf16.mxu1 %vm243_vm0, %v918_v28  ;;  %v1320_v28 = vld [vmem:[%s1783_s2] ss:$0 sm:$0xff] }
  0x41   : > { %1458 = vmatpush3.bf16.msra.mxu0 %v1536_v25 }
  0x42   : > { %1470 = vmatpush3.bf16.msra.mxu1 %v1537_v26  ;;  %1459 = vmatprep.subr.bf16.mxu0 %v1538_v29 }
  0x43   : > { %1471 = vmatprep.subr.bf16.mxu1 %v1539_v30 }
  0x45   : > { %1460 = vmatpush3.bf16.msra.mxu0 %v1538_v29 }
  0x46   : > { %1472 = vmatpush3.bf16.msra.mxu1 %v1539_v30  ;;  %1461 = vmatprep.subr.bf16.mxu0 %v1540_v32 }
  0x47   : > { %1473 = vmatprep.subr.bf16.mxu1 %v1541_v33 }
  0x49   : > { %1462 = vmatpush3.bf16.msra.mxu0 %v1540_v32 }
  0x4a   : > { %1474 = vmatpush3.bf16.msra.mxu1 %v1541_v33  ;;  %1479 = vmatprep.subr.bf16.mxu0 %v1545_v35 }
  0x4c   : > { %1464 = vmatmul.mubr.msk.bf16.vlgmr.msra.gmra.mxu0 %vm243_vm0, %v805_v22 }
  0x4d   : > { %1476 = vmatmul.mubr.msk.bf16.vlgmr.msra.gmra.mxu1 %vm243_vm0, %v917_v24  ;;  %1480 = vmatpush3.bf16.msra.mxu0 %v1545_v35 }
  0x4e   : > { %1487 = vmatprep.mubr.msk.bf16.mxu0 %vm243_vm0, %v1015_v39  ;;  %1481 = vmatprep.subr.bf16.mxu0 %v1546_v38 }
  0x51   : > { %1482 = vmatpush3.bf16.msra.mxu0 %v1546_v38 }
  0x52   : > { %1483 = vmatprep.subr.bf16.mxu0 %v1547_v40 }
  0x55   : > { %1484 = vmatpush3.bf16.msra.mxu0 %v1547_v40 }
  0x56   : > { %1485 = vmatprep.subr.bf16.mxu0 %v1548_v41 }
  0x59   : > { %1486 = vmatpush3.bf16.msra.mxu0 %v1548_v41 }
  0x5c   : > { %1488 = vmatmul.mubr.msk.bf16.vlgmr.msra.gmra.mxu0 %vm243_vm0, %v1014_v37 }
  0xdc   : > { %v1393_v42 = vpop.f32.mrf.mxu0 }
  0xdd   : > { %v1405_v43 = vpop.f32.mrf.mxu1 }
  0xde   : > { %v284_v44 = vpop.f32.mrf.mxu0  ;;  %v371_v0 = vadd.f32 %v1405_v43, %v1393_v42 }
  0xdf   : > { %v362_v45 = vpop.f32.mrf.mxu1 }
  0xe0   : > { %v1394_v46 = vpop.f32.mrf.mxu0  ;;  %v363_v3 = vadd.f32 %v362_v45, %v284_v44 }
  0xe1   : > { %v1406_v47 = vpop.f32.mrf.mxu1 }
  0xe2   : > { %v287_v48 = vpop.f32.mrf.mxu0 }
  0xe3   : > { %v365_v49 = vpop.f32.mrf.mxu1 }
  0xe4   : > { %v366_v10 = vadd.f32 %v365_v49, %v287_v48 }
  0xec   : > { %v1417_v50 = vpop.f32.mrf.mxu0 }
  0xed   : > { %v1429_v51 = vpop.f32.mrf.mxu1  ;;  %v473_v4 = vadd.f32 %v1417_v50, %v371_v0 }
  0xee   : > { %v457_v52 = vpop.f32.mrf.mxu0 }
  0xef   : > { %v559_v53 = vpop.f32.mrf.mxu1  ;;  %v471_v7 = vadd.f32 %v457_v52, %v363_v3  ;;  %v575_v11 = vadd.f32 %v1429_v51, %v473_v4 }
  0xf0   : > { %v1418_v54 = vpop.f32.mrf.mxu0 }
  0xf1   : > { %v1430_v55 = vpop.f32.mrf.mxu1  ;;  %v573_v14 = vadd.f32 %v559_v53, %v471_v7 }
  0xf2   : > { %v460_v56 = vpop.f32.mrf.mxu0 }
  0xf3   : > { %v562_v57 = vpop.f32.mrf.mxu1  ;;  %v472_v15 = vadd.f32 %v460_v56, %v366_v10 }
  0xf5   : > { %v574_v18 = vadd.f32 %v562_v57, %v472_v15 }
  0xfc   : > { %v1441_v58 = vpop.f32.mrf.mxu0 }
  0xfd   : > { %v1453_v59 = vpop.f32.mrf.mxu1  ;;  %v687_v16 = vadd.f32 %v1441_v58, %v575_v11 }
  0xfe   : > { %v671_v60 = vpop.f32.mrf.mxu0 }
  0xff   : > { %v763_v61 = vpop.f32.mrf.mxu1  ;;  %v685_v17 = vadd.f32 %v671_v60, %v573_v14  ;;  %v779_v19 = vadd.f32 %v1453_v59, %v687_v16 }
 0x100   : > { %v1442_v62 = vpop.f32.mrf.mxu0 }
 0x101   : > { %v1454_v63 = vpop.f32.mrf.mxu1  ;;  %v777_v20 = vadd.f32 %v763_v61, %v685_v17 }
 0x102   : > { %v674_v1 = vpop.f32.mrf.mxu0 }
 0x103   : > { %v766_v2 = vpop.f32.mrf.mxu1  ;;  %v686_v21 = vadd.f32 %v674_v1, %v574_v18 }
 0x105   : > { %v778_v25 = vadd.f32 %v766_v2, %v686_v21 }
 0x10c   : > { %v1465_v5 = vpop.f32.mrf.mxu0 }
 0x10d   : > { %v1477_v6 = vpop.f32.mrf.mxu1  ;;  %v887_v22 = vadd.f32 %v1465_v5, %v779_v19 }
 0x10e   : > { %v871_v8 = vpop.f32.mrf.mxu0 }
 0x10f   : > { %v983_v9 = vpop.f32.mrf.mxu1  ;;  %v885_v23 = vadd.f32 %v871_v8, %v777_v20  ;;  %v999_v26 = vadd.f32 %v1477_v6, %v887_v22 }
 0x110   : > { %v1466_v12 = vpop.f32.mrf.mxu0 }
 0x111   : > { %v1478_v13 = vpop.f32.mrf.mxu1  ;;  %v997_v29 = vadd.f32 %v983_v9, %v885_v23 }
 0x112   : > { %v874_v24 = vpop.f32.mrf.mxu0 }
 0x113   : > { %v886_v30 = vadd.f32 %v874_v24, %v778_v25  ;;  %v986_v32 = vpop.f32.mrf.mxu1 }
 0x115   : > { %v998_v37 = vadd.f32 %v986_v32, %v886_v30 }
 0x11c   : > { %v1489_v27 = vpop.f32.mrf.mxu0 }
 0x11d   : > { %v1096_v31 = vadd.f32 %v1489_v27, %v999_v26 }
 0x11e   : > { %v1080_v33 = vpop.f32.mrf.mxu0 }
 0x11f   : > { %v1106_v34 = vadd.f32 %v1320_v28, %v1096_v31  ;;  %v1094_v35 = vadd.f32 %v1080_v33, %v997_v29 }
 0x120   : > { %v1490_v36 = vpop.f32.mrf.mxu0 }
 0x121   : > { %v1109_v38 = vmax.f32 %v1106_v34, 0.0  ;;  %v1104_v39 = vadd.f32 %v1320_v28, %v1094_v35 }
 0x122   : > { %v1083_v40 = vpop.f32.mrf.mxu0 }
 0x123   : > { %v1328_v41 = vpack.c.bf16 %v1109_v38, %v1109_v38  ;;  %v1107_v42 = vmax.f32 %v1104_v39, 0.0  ;;  %v1095_v43 = vadd.f32 %v1083_v40, %v998_v37 }
 0x125   : > { %1126 = vst.msk [vmem:[%s170_s21 + $0x8] sm:$0xf] %vm1123_vm7, %v1328_v41  ;;  %v1326_v44 = vpack.c.bf16 %v1107_v42, %v1107_v42  ;;  %v1105_v45 = vadd.f32 %v1320_v28, %v1095_v43 }
 0x127   : > { %1124 = vst.msk [vmem:[%s170_s21] sm:$0xf] %vm1123_vm7, %v1326_v44  ;;  %v1108_v46 = vmax.f32 %v1105_v45, 0.0 }
 0x129   : > { %v1327_v47 = vpack.c.bf16 %v1108_v46, %v1108_v46 }
 0x12b   : > { %1125 = vst.msk [vmem:[%s170_s21 + $0x4] sm:$0xf] %vm1123_vm7, %v1327_v47 }
 0x12c PF: > { %s13_s12 = sadd.s32 1, %s1556_s12  }
 0x12d   : > { %p10_p4 = scmp.ge.s32.totalorder %s13_s12, 4  }
 0x12f   :  { %12 = sbr.rel (!%p10_p4) target bundleno = 1 (0x1), region = 70 }

// kernel: _lambda_.15
= control target key start
LH: loop header
LB: loop body
LE: loop exit
PB: predicated region body
PF: predicated region fallthrough
CT: control target
= control target key end

     0   :  { %s3502_s12 = smov 0   ;;  %s4234_s0 = inlined_call_operand.vmem [shape: bf16[2,132,16], index: 0, kind: input, shape index: {}]   ;;  %s4235_s1 = inlined_call_operand.vmem [shape: bf16[16,16,64], index: 1, kind: input, shape index: {}]   ;;  %s4236_s2 = inlined_call_operand.vmem [shape: f32[1,64], index: 2, kind: input, shape index: {}]   ;;  %s4237_s3 = inlined_call_operand.vmem [shape: bf16[2,88,64], index: 3, kind: output, shape index: {}]  }
   0x1 LB: > { %s2846_s13 = sadd.s32 4294967295, %s3480_s12   ;;  %p2850_p0 = scmp.ge.s32.totalorder %s3480_s12, 1  ;;  %s3480_s12 = sphi %s3502_s12, %s13_s12  }
   0x2   : > { %p137_p1 = scmp.lt.s32.totalorder %s3480_s12, 3 }
   0x4   : > { %p138_p2 = pnand %p2850_p0, %p137_p1 }
   0x6   : > { %141 = sbr.rel (%p138_p2) target bundleno = 422 (0x1a6), region = 32 }
   0xb   : > { %v3412_v0 = vld [vmem:[%s4235_s1] sm:$0xff]   ;;  %p161_p3 = scmp.lt.s32.totalorder %s2846_s13, 1  ;;  %v3413_v1 = vld [vmem:[%s4235_s1 + $0x8] sm:$0xff]   ;;  %v3417_v2 = vld [vmem:[%s4235_s1 + $0x10] sm:$0xff]   ;;  %vm273_vm0 = vcmask 130048   ;;  %vm479_vm3 = vcmask 1046528  }
   0xc   : > { %3192 = vmatprep.subr.bf16.mxu1 %v3412_v0  ;;  %3178 = vmatprep.subr.bf16.mxu0 %v3413_v1  ;;  %v3419_v3 = vld [vmem:[%s4235_s1 + $0x18] sm:$0xff]   ;;  %v3536_v7 = vld [vmem:[%s4235_s1 + $0x28] sm:$0xff]   ;;  %vm219_vm1 = vsmask.f32 7424  ;;  %v3579_v40 = vld [vmem:[%s4235_s1 + $0x20] sm:$0xff]   ;;  %vm982_vm4 = vcmask 1045504  }
   0xd   : > { %s4245_s13 = smov (!%p161_p3, %s2846_s13), 1  ;;  %3193 = vmatpush3.bf16.msra.mxu1 %v3412_v0  ;;  %3179 = vmatpush3.bf16.msra.mxu0 %v3413_v1  ;;  %vm613_vm2 = vsmask.f32 6400  ;;  %vm1272_vm5 = vcmask 1044480   ;;  %vm1116_vm6 = vsmask.f32 5376 }
   0xe   : > { %s3402_s20 = smul.u32 68, %s4245_s13  ;;  %3206 = vmatprep.subr.bf16.mxu0 %v3417_v2  ;;  %3220 = vmatprep.subr.bf16.mxu1 %v3419_v3  ;;  %vm1577_vm7 = vsmask.f32 4352  ;;  %vm2779_vm8 = vcmask 519168  }
   0xf   : > { %s3403_s27 = smul.u32 44, %s4245_s13 }
  0x10   : > { %s3528_s25 = scalar_lea.vmem %s4234_s0, %s3402_s20 }
  0x11   : > { %v172_v4 = vld [vmem:[%s3528_s25] sm:$0xf]  ;;  %v173_v5 = vld [vmem:[%s3528_s25 + $0x4] sm:$0xf]  ;;  %v3539_v9 = vld [vmem:[%s3528_s25 + $0x8] sm:$0xff]   ;;  %s4184_s29 = scalar_lea.vmem %s4237_s3, %s3403_s27 }
  0x12   : > { %v472_v6 = vld [vmem:[%s3528_s25] sm:$0xe]  ;;  %v2855_v8 = vcombine.low %v172_v4, %v173_v5  ;;  %v3544_v11 = vld [vmem:[%s3528_s25 + $0x10] sm:$0xff]   ;;  %v228_v14 = vshll.u32 %v3539_v9, 16  ;;  %v232_v15 = vshrl.u32 %v3539_v9, 16  ;;  %v3553_v17 = vld [vmem:[%s3528_s25 + $0x18] sm:$0xff]  }
  0x13   : > { %v3541_v10 = vcombine.low %v472_v6, %v173_v5  ;;  %v236_v16 = vshll.u32 %v3544_v11, 16  ;;  %v240_v18 = vshrl.u32 %v3544_v11, 16  ;;  %v3557_v19 = vld [vmem:[%s3528_s25 + $0x20] sm:$0xff]   ;;  %v244_v23 = vshll.u32 %v3553_v17, 16  ;;  %v182_v27 = vld [vmem:[%s3528_s25 + $0x28] sm:$0xf] }
  0x14   : > { %3194 = vmatprep.mubr.msk.bf16.mxu1 %vm273_vm0, %v2855_v8  ;;  %v221_v12 = vshrl.u32 %v2855_v8, 16  ;;  %v223_v13 = vshll.u32 %v2855_v8, 16  ;;  %v230_v21 = vrot.slane %v228_v14, 1  ;;  %v252_v26 = vshll.u32 %v3557_v19, 16  ;;  %v185_v28 = vld [vmem:[%s3528_s25 + $0x2c] sm:$0x1] }
  0x15   : > { %3195 = vmatmul.mubr.msk.bf16.vlgmr.msra.gmra.mxu1 %vm273_vm0, %v3539_v9  ;;  %v238_v22 = vrot.slane %v236_v16, 1  ;;  %v615_v29 = vshrl.u32 %v3541_v10, 16  ;;  %v246_v31 = vrot.slane %v244_v23, 1  ;;  %v248_v32 = vshrl.u32 %v3553_v17, 16  ;;  %v606_v50 = vld [vmem:[%s3528_s25 + $0x2c] sm:$0x3] }
  0x16   : > { %v225_v20 = vrot.slane %v223_v13, 1  ;;  %3221 = vmatpush3.bf16.msra.mxu1 %v3419_v3  ;;  %3198 = vmatprep.mubr.msk.bf16.mxu1 %vm273_vm0, %v3544_v11  ;;  %v234_v25 = vor.u32 %v232_v15, %v230_v21  ;;  %v3568_v33 = vcombine.low %v182_v27, %v185_v28  ;;  %v623_v36 = vrot.slane %v228_v14, 2  ;;  %v3635_v28 = vld [vmem:[%s4235_s1 + $0x30] sm:$0xff]  }
  0x17   : > { %3248 = vmatprep.subr.bf16.mxu1 %v3536_v7  ;;  %v242_v30 = vor.u32 %v240_v18, %v238_v22  ;;  %v256_v38 = vshrl.u32 %v3557_v19, 16  ;;  %v254_v41 = vrot.slane %v252_v26, 1  ;;  %v617_v42 = vrot.slane %v615_v29, 1 }
  0x18   : > { %v226_v24 = vor.u32 %v225_v20, %v221_v12  ;;  %v239_v35 = vsel %vm219_vm1, %v234_v25, %v238_v22  ;;  %v260_v39 = vshll.u32 %v3568_v33, 16  ;;  %v618_v43 = vshll.u32 %v3541_v10, 16  ;;  %v762_v22 = vld [vmem:[%s3528_s25 + $0x4] sm:$0xe]  ;;  %v3623_v25 = vld [vmem:[%s3528_s25 + $0xc] sm:$0xff]  }
  0x19   : > { %v247_v37 = vsel %vm219_vm1, %v242_v30, %v246_v31  ;;  %v622_v44 = vrot.slane %v232_v15, 1  ;;  %v250_v45 = vor.u32 %v248_v32, %v246_v31  ;;  %v258_v46 = vor.u32 %v256_v38, %v254_v41 }
  0x1a   : > { %v231_v34 = vsel %vm219_vm1, %v226_v24, %v230_v21  ;;  %v262_v47 = vrot.slane %v260_v39, 1  ;;  %v620_v48 = vrot.slane %v618_v43, 2  ;;  %v2868_v53 = vcombine.low %v182_v27, %v182_v27  ;;  %v3616_v21 = vld [vmem:[%s3528_s25 + $0x8] sm:$0xf] }
  0x1b   : > { %3180 = vmatprep.mubr.msk.bf16.mxu0 %vm273_vm0, %v231_v34  ;;  %v624_v49 = vor.u32 %v623_v36, %v622_v44  ;;  %v255_v52 = vsel %vm219_vm1, %v250_v45, %v254_v41  ;;  %v627_v54 = vrot.slane %v236_v16, 2  ;;  %v626_v55 = vrot.slane %v240_v18, 1  ;;  %v3660_v44 = vld [vmem:[%s3528_s25 + $0x1c] sm:$0xff]  }
  0x1c   : > { %3181 = vmatmul.mubr.msk.bf16.vlgmr.msra.gmra.mxu0 %vm273_vm0, %v239_v35  ;;  %v621_v51 = vor.u32 %v620_v48, %v617_v42  ;;  %v263_v56 = vsel %vm219_vm1, %v258_v46, %v262_v47  ;;  %v2888_v57 = vcombine.low %v182_v27, %v606_v50  ;;  %v630_v59 = vrot.slane %v248_v32, 1 }
  0x1d   : > { %3207 = vmatpush3.bf16.msra.mxu0 %v3417_v2  ;;  %3199 = vmatmul.mubr.msk.bf16.gmra.mxu1 %vm273_vm0, %v3553_v17  ;;  %v631_v60 = vrot.slane %v244_v23, 2  ;;  %v264_v61 = vshrl.u32 %v3568_v33, 16  ;;  %v628_v62 = vor.u32 %v627_v54, %v626_v55  ;;  %v480_v63 = vrot.slane %v3541_v10, 1  ;;  %v975_v23 = vld [vmem:[%s3528_s25 + $0x4] sm:$0xc] }
  0x1e   : > { %3184 = vmatprep.mubr.msk.bf16.mxu0 %vm273_vm0, %v247_v37  ;;  %3202 = vmatprep.mubr.msk.bf16.mxu1 %vm273_vm0, %v3557_v19  ;;  %v625_v58 = vsel %vm613_vm2, %v621_v51, %v624_v49  ;;  %v481_v0 = vrot.slane %v3539_v9, 1  ;;  %v639_v2 = vshrl.u32 %v2888_v57, 16  ;;  %v642_v3 = vshll.u32 %v2888_v57, 16  ;;  %v3606_v9 = vld [vmem:[%s4235_s1 + $0x38] sm:$0xff]   ;;  %v773_v51 = vld [vmem:[%s3528_s25 + $0x30] sm:$0x3] }
  0x1f   : > { %3234 = vmatprep.subr.bf16.mxu0 %v3579_v40  ;;  %v632_v1 = vor.u32 %v631_v60, %v630_v59  ;;  %v266_v4 = vor.u32 %v264_v61, %v262_v47  ;;  %v629_v5 = vsel %vm613_vm2, %v624_v49, %v628_v62  ;;  %v634_v8 = vrot.slane %v256_v38, 1  ;;  %v3668_v47 = vld [vmem:[%s3528_s25 + $0x2c] sm:$0xf]  ;;  %v3677_v55 = vld [vmem:[%s3528_s25 + $0x24] sm:$0xff]  }
  0x20   : > { %v482_v6 = vsel %vm479_vm3, %v480_v63, %v481_v0  ;;  %v635_v12 = vrot.slane %v252_v26, 2  ;;  %v641_v14 = vrot.slane %v639_v2, 1  ;;  %v644_v10 = vrot.slane %v642_v3, 2 }
  0x21   : > { %v633_v13 = vsel %vm613_vm2, %v628_v62, %v632_v1  ;;  %v483_v15 = vrot.slane %v3544_v11, 1  ;;  %v485_v18 = vrot.slane %v3553_v17, 1  ;;  %v3630_v17 = vcombine.low %v975_v23, %v3616_v21 }
  0x22   : > { %v636_v16 = vor.u32 %v635_v12, %v634_v8  ;;  %v645_v20 = vor.u32 %v644_v10, %v641_v14  ;;  %v487_v29 = vrot.slane %v3557_v19, 1  ;;  %v489_v30 = vrot.slane %v3568_v33, 1  ;;  %v3650_v19 = vld [vmem:[%s3528_s25 + $0x14] sm:$0xff]   ;;  %v1265_v10 = vld [vmem:[%s3528_s25 + $0x4] sm:$0x8] }
  0x23   : > { %v484_v24 = vsel %vm479_vm3, %v481_v0, %v483_v15  ;;  %v486_v26 = vsel %vm479_vm3, %v483_v15, %v485_v18  ;;  %v816_v31 = vshrl.u32 %v3623_v25, 16  ;;  %v819_v32 = vshll.u32 %v3623_v25, 16 }
  0x24   : > { %3185 = vmatmul.mubr.msk.bf16.gmra.mxu0 %vm273_vm0, %v255_v52  ;;  %v637_v11 = vsel %vm613_vm2, %v632_v1, %v636_v16  ;;  %v646_v27 = vsel %vm613_vm2, %v636_v16, %v645_v20  ;;  %v983_v36 = vrot.slane %v3630_v17, 2  ;;  %v984_v37 = vrot.slane %v3623_v25, 2 }
  0x25   : > { %3203 = vmatmul.mubr.msk.bf16.gmra.mxu1 %vm273_vm0, %v2868_v53  ;;  %3188 = vmatprep.mubr.msk.bf16.mxu0 %vm273_vm0, %v263_v56  ;;  %v488_v33 = vsel %vm479_vm3, %v485_v18, %v487_v29  ;;  %v490_v38 = vsel %vm479_vm3, %v487_v29, %v489_v30  ;;  %v818_v41 = vrot.slane %v816_v31, 1  ;;  %v821_v42 = vrot.slane %v819_v32, 2  ;;  %v3736_v29 = vld [vmem:[%s3528_s25 + $0x14] sm:$0xf] }
  0x26   : > { %3222 = vmatprep.mubr.msk.bf16.mxu1 %vm273_vm0, %v625_v58  ;;  %v985_v43 = vsel %vm982_vm4, %v983_v36, %v984_v37  ;;  %v825_v45 = vshrl.u32 %v3650_v19, 16  ;;  %v828_v46 = vshll.u32 %v3650_v19, 16  ;;  %v986_v48 = vrot.slane %v3650_v19, 2  ;;  %v3686_v58 = vld [vmem:[%s4235_s1 + $0x48] sm:$0xff]  }
  0x27   : > { %v822_v50 = vor.u32 %v821_v42, %v818_v41  ;;  %v988_v52 = vrot.slane %v3660_v44, 2  ;;  %v834_v53 = vshrl.u32 %v3660_v44, 16  ;;  %v837_v54 = vshll.u32 %v3660_v44, 16 }
  0x28   : > { %v827_v56 = vrot.slane %v825_v45, 1  ;;  %v830_v57 = vrot.slane %v828_v46, 2  ;;  %v987_v59 = vsel %vm982_vm4, %v984_v37, %v986_v48  ;;  %v3691_v61 = vcombine.low %v3668_v47, %v773_v51 }
  0x29   : > { %v989_v62 = vsel %vm982_vm4, %v986_v48, %v988_v52  ;;  %v836_v63 = vrot.slane %v834_v53, 1  ;;  %v839_v0 = vrot.slane %v837_v54, 2  ;;  %v843_v1 = vshrl.u32 %v3677_v55, 16  ;;  %v3759_v48 = vld [vmem:[%s3528_s25 + $0x30] sm:$0xff]  }
  0x2a   : > { %v846_v2 = vshll.u32 %v3677_v55, 16  ;;  %v831_v3 = vor.u32 %v830_v57, %v827_v56  ;;  %v992_v12 = vrot.slane %v3691_v61, 2  ;;  %v2933_v23 = vcombine.low %v1265_v10, %v3616_v21 }
  0x2b   : > { %v840_v8 = vor.u32 %v839_v0, %v836_v63  ;;  %v1125_v36 = vrot.slane %v816_v31, 2  ;;  %v1130_v51 = vrot.slane %v828_v46, 3  ;;  %v1133_v46 = vrot.slane %v834_v53, 2  ;;  %v3792_v63 = vld [vmem:[%s3528_s25 + $0x14] sm:$0xf] }
  0x2c   : > { %3189 = vmatmul.mubr.msk.bf16.gmra.mxu0 %vm273_vm0, %v266_v4  ;;  %v990_v4 = vrot.slane %v3677_v55, 2  ;;  %v848_v14 = vrot.slane %v846_v2, 2 }
  0x2d   : > { %3223 = vmatmul.mubr.msk.bf16.vlgmr.msra.gmra.mxu1 %vm273_vm0, %v629_v5  ;;  %3208 = vmatprep.mubr.msk.bf16.mxu0 %vm273_vm0, %v482_v6  ;;  %v852_v5 = vshrl.u32 %v3691_v61, 16  ;;  %v855_v6 = vshll.u32 %v3691_v61, 16  ;;  %v3778_v61 = vld [vmem:[%s3528_s25 + $0xc] sm:$0xf] }
  0x2e   : > { %3249 = vmatpush3.bf16.msra.mxu1 %v3536_v7  ;;  %3226 = vmatprep.mubr.msk.bf16.mxu1 %vm273_vm0, %v633_v13  ;;  %v2898_v7 = vcombine.low %v762_v22, %v3616_v21  ;;  %v845_v13 = vrot.slane %v843_v1, 1  ;;  %v991_v15 = vsel %vm982_vm4, %v988_v52, %v990_v4  ;;  %v993_v22 = vsel %vm982_vm4, %v990_v4, %v992_v12  ;;  %v1399_v52 = vld [vmem:[%s3528_s25 + $0x8] sm:$0x8]  ;;  %v2087_v4 = vld [vmem:[%s3528_s25 + $0x38] sm:$0xf] }
  0x2f   : > { %3276 = vmatprep.subr.bf16.mxu1 %v3606_v9  ;;  %v854_v16 = vrot.slane %v852_v5, 1  ;;  %v857_v18 = vrot.slane %v855_v6, 2  ;;  %v2088_v5 = vld [vmem:[%s3528_s25 + $0x3c] sm:$0x1]  ;;  %v2572_v6 = vld [vmem:[%s3528_s25 + $0x10] sm:$0xc] }
  0x30   : > { %v808_v34 = vshrl.u32 %v2898_v7, 16  ;;  %v811_v35 = vshll.u32 %v2898_v7, 16  ;;  %v1118_v7 = vshrl.u32 %v3630_v17, 16  ;;  %v3033_v10 = vcombine.low %v2572_v6, %v3736_v29 }
  0x31   : > { %v858_v21 = vor.u32 %v857_v18, %v854_v16  ;;  %v1280_v18 = vrot.slane %v3677_v55, 3  ;;  %v3878_v55 = vld [vmem:[%s3528_s25 + $0x20] sm:$0xf] }
  0x32   : > { %v810_v39 = vrot.slane %v808_v34, 1  ;;  %v3740_v34 = vld [vmem:[%s3528_s25 + $0x20] sm:$0xff]   ;;  %v1120_v37 = vrot.slane %v1118_v7, 2  ;;  %v3834_v7 = vld [vmem:[%s3528_s25 + $0x18] sm:$0xf] }
  0x33   : > { %v2294_v42 = vrot.slane %v3740_v34, 1 }
  0x34   : > { %3209 = vmatmul.mubr.msk.bf16.vlgmr.msra.gmra.mxu0 %vm273_vm0, %v484_v24  ;;  %v3723_v24 = vld [vmem:[%s4235_s1 + $0x40] sm:$0xff]  }
  0x35   : > { %3235 = vmatpush3.bf16.msra.mxu0 %v3579_v40  ;;  %3227 = vmatmul.mubr.msk.bf16.gmra.mxu1 %vm273_vm0, %v637_v11  ;;  %v813_v40 = vrot.slane %v811_v35, 2  ;;  %v849_v11 = vor.u32 %v848_v14, %v845_v13  ;;  %v1274_v35 = vrot.slane %v3623_v25, 3  ;;  %v1276_v25 = vrot.slane %v3650_v19, 3 }
  0x36   : > { %3212 = vmatprep.mubr.msk.bf16.mxu0 %vm273_vm0, %v486_v26  ;;  %3230 = vmatprep.mubr.msk.bf16.mxu1 %vm273_vm0, %v646_v27  ;;  %v1121_v26 = vshll.u32 %v3630_v17, 16  ;;  %v3731_v27 = vld [vmem:[%s3528_s25 + $0x18] sm:$0xff]   ;;  %v3811_v13 = vcombine.low %v1399_v52, %v3778_v61 }
  0x37   : > { %3262 = vmatprep.subr.bf16.mxu0 %v3635_v28  ;;  %v814_v49 = vor.u32 %v813_v40, %v810_v39  ;;  %v850_v17 = vsel %vm613_vm2, %v840_v8, %v849_v11  ;;  %v859_v40 = vsel %vm613_vm2, %v849_v11, %v858_v21  ;;  %v2292_v41 = vrot.slane %v3731_v27, 1 }
  0x39   : > { %v823_v60 = vsel %vm613_vm2, %v814_v49, %v822_v50  ;;  %v3772_v56 = vsel %vm479_vm3, %v2292_v41, %v2294_v42 }
  0x3c   : > { %3213 = vmatmul.mubr.msk.bf16.gmra.mxu0 %vm273_vm0, %v488_v33  ;;  %v1123_v33 = vrot.slane %v1121_v26, 3 }
  0x3d   : > { %3231 = vmatmul.mubr.msk.bf16.gmra.mxu1 %vm273_vm0, %v645_v20  ;;  %3216 = vmatprep.mubr.msk.bf16.mxu0 %vm273_vm0, %v490_v38  ;;  %v841_v20 = vsel %vm613_vm2, %v831_v3, %v840_v8  ;;  %v1126_v38 = vrot.slane %v819_v32, 3  ;;  %v1109_v32 = vld [vmem:[%s3528_s25 + $0x30] sm:$0x7] }
  0x3e   : > { %3250 = vmatprep.mubr.msk.bf16.mxu1 %vm273_vm0, %v985_v43  ;;  %v3756_v43 = vld [vmem:[%s3528_s25 + $0x28] sm:$0xff]   ;;  %v1124_v57 = vor.u32 %v1123_v33, %v1120_v37  ;;  %v3800_v8 = vcombine.low %v3668_v47, %v1109_v32  ;;  %v3817_v47 = vcombine.low %v2087_v4, %v2088_v5 }
  0x3f   : > { %v2296_v0 = vrot.slane %v3756_v43, 1 }
  0x40   : > { %v1142_v11 = vshrl.u32 %v3800_v8, 16  ;;  %v2300_v26 = vrot.slane %v3817_v47, 1 }
  0x44   : > { %3217 = vmatmul.mubr.msk.bf16.gmra.mxu0 %vm273_vm0, %v489_v30  ;;  %v2284_v30 = vld [vmem:[%s3528_s25 + $0x10] sm:$0xe] }
  0x45   : > { %3251 = vmatmul.mubr.msk.bf16.vlgmr.msra.gmra.mxu1 %vm273_vm0, %v987_v59  ;;  %3236 = vmatprep.mubr.msk.bf16.mxu0 %vm273_vm0, %v823_v60  ;;  %v3750_v39 = vcombine.low %v2284_v30, %v3736_v29  ;;  %v1127_v59 = vor.u32 %v1126_v38, %v1125_v36  ;;  %v1278_v60 = vrot.slane %v3660_v44, 3  ;;  %v1277_v44 = vsel %vm1272_vm5, %v1274_v35, %v1276_v25 }
  0x46   : > { %3277 = vmatpush3.bf16.msra.mxu1 %v3606_v9  ;;  %3254 = vmatprep.mubr.msk.bf16.mxu1 %vm273_vm0, %v989_v62  ;;  %v832_v9 = vsel %vm613_vm2, %v822_v50, %v831_v3  ;;  %v1129_v50 = vrot.slane %v825_v45, 2  ;;  %v3781_v45 = vld [vmem:[%s3528_s25 + $0x10] sm:$0xf]  ;;  %v1134_v62 = vrot.slane %v837_v54, 3  ;;  %v2298_v3 = vrot.slane %v3759_v48, 1 }
  0x47   : > { %3304 = vmatprep.subr.bf16.mxu1 %v3686_v58  ;;  %v2291_v49 = vrot.slane %v3750_v39, 1  ;;  %v1128_v54 = vsel %vm1116_vm6, %v1124_v57, %v1127_v59  ;;  %v3815_v14 = vcombine.low %v3781_v45, %v3792_v63  ;;  %v1279_v16 = vsel %vm1272_vm5, %v1276_v25, %v1278_v60 }
  0x48   : > { %v3806_v53 = vsel %vm479_vm3, %v2296_v0, %v2298_v3  ;;  %v2579_v30 = vrot.slane %v3033_v10, 2  ;;  %v2582_v36 = vrot.slane %v3740_v34, 2  ;;  %v3853_v38 = vsel %vm479_vm3, %v2298_v3, %v2300_v26  ;;  %v3889_v3 = vld [vmem:[%s4235_s1 + $0x50] sm:$0xff]  }
  0x49   : > { %v3784_v19 = vsel %vm479_vm3, %v2291_v49, %v2292_v41  ;;  %v1587_v37 = vshrl.u32 %v3815_v14, 16  ;;  %v1590_v33 = vshll.u32 %v3815_v14, 16  ;;  %v1281_v41 = vsel %vm1272_vm5, %v1278_v60, %v1280_v18 }
  0x4a   : > { %v2584_v57 = vrot.slane %v3756_v43, 2 }
  0x4c   : > { %3237 = vmatmul.mubr.msk.bf16.vlgmr.msra.gmra.mxu0 %vm273_vm0, %v832_v9  ;;  %v2580_v9 = vrot.slane %v3731_v27, 2  ;;  %v3896_v6 = vsel %vm982_vm4, %v2582_v36, %v2584_v57 }
  0x4d   : > { %3263 = vmatpush3.bf16.msra.mxu0 %v3635_v28  ;;  %3255 = vmatmul.mubr.msk.bf16.gmra.mxu1 %vm273_vm0, %v991_v15  ;;  %v1273_v28 = vrot.slane %v2933_v23, 3  ;;  %v1131_v15 = vor.u32 %v1130_v51, %v1129_v50  ;;  %v1282_v23 = vrot.slane %v3800_v8, 3  ;;  %v2417_v50 = vld [vmem:[%s3528_s25 + $0x3c] sm:$0x3]  ;;  %v1144_v51 = vrot.slane %v1142_v11, 2 }
  0x4e   : > { %3240 = vmatprep.mubr.msk.bf16.mxu0 %vm273_vm0, %v841_v20  ;;  %3258 = vmatprep.mubr.msk.bf16.mxu1 %vm273_vm0, %v993_v22  ;;  %v3823_v20 = vor.u32 %v1134_v62, %v1133_v46  ;;  %v3828_v22 = vld [vmem:[%s4235_s1 + $0x58] sm:$0xff]   ;;  %v1589_v62 = vrot.slane %v1587_v37, 3  ;;  %v3929_v37 = vld [vmem:[%s3528_s25 + $0x34] sm:$0xf] }
  0x4f   : > { %3290 = vmatprep.subr.bf16.mxu0 %v3723_v24  ;;  %v1275_v31 = vsel %vm1272_vm5, %v1273_v28, %v1274_v35  ;;  %v1145_v28 = vshll.u32 %v3800_v8, 16  ;;  %v3841_v35 = vld [vmem:[%s3528_s25 + $0x1c] sm:$0xf]  ;;  %v1132_v25 = vsel %vm1116_vm6, %v1127_v59, %v1131_v15  ;;  %v1283_v49 = vsel %vm1272_vm5, %v1280_v18, %v1282_v23 }
  0x50   : > { %v1136_v32 = vsel %vm1116_vm6, %v1131_v15, %v3823_v20  ;;  %v2586_v59 = vrot.slane %v3759_v48, 2 }
  0x51   : > { %v1147_v52 = vrot.slane %v1145_v28, 3  ;;  %v3915_v28 = vld [vmem:[%s3528_s25 + $0x28] sm:$0xf] }
  0x53   : > { %v1148_v15 = vor.u32 %v1147_v52, %v1144_v51 }
  0x54   : > { %3241 = vmatmul.mubr.msk.bf16.gmra.mxu0 %vm273_vm0, %v850_v17  ;;  %v1579_v17 = vshrl.u32 %v3811_v13, 16 }
  0x55   : > { %3259 = vmatmul.mubr.msk.bf16.gmra.mxu1 %vm273_vm0, %v992_v12  ;;  %3244 = vmatprep.mubr.msk.bf16.mxu0 %vm273_vm0, %v859_v40  ;;  %v3803_v12 = vsel %vm479_vm3, %v2294_v42, %v2296_v0  ;;  %v3856_v40 = vsel %vm982_vm4, %v2579_v30, %v2580_v9  ;;  %v1138_v42 = vrot.slane %v846_v2, 3  ;;  %v3881_v2 = vld [vmem:[%s3528_s25 + $0x24] sm:$0xf]  ;;  %v1592_v0 = vrot.slane %v1590_v33, 4 }
  0x56   : > { %3278 = vmatprep.mubr.msk.bf16.mxu1 %vm273_vm0, %v1275_v31  ;;  %v3865_v31 = vsel %vm982_vm4, %v2580_v9, %v2582_v36  ;;  %v1581_v60 = vrot.slane %v1579_v17, 3  ;;  %v3893_v5 = vcombine.low %v3878_v55, %v3881_v2  ;;  %v3918_v17 = vld [vmem:[%s3528_s25 + $0x2c] sm:$0xf]  ;;  %v3926_v36 = vld [vmem:[%s3528_s25 + $0x30] sm:$0xf] }
  0x57   : > { %v1593_v11 = vor.u32 %v1592_v0, %v1589_v62  ;;  %v2958_v51 = vcombine.low %v3926_v36, %v3929_v37 }
  0x58   : > { %v1608_v30 = vshll.u32 %v3893_v5, 16 }
  0x59   : > { %v1623_v62 = vshrl.u32 %v2958_v51, 16  ;;  %v1626_v0 = vshll.u32 %v2958_v51, 16 }
  0x5c   : > { %3245 = vmatmul.mubr.msk.bf16.gmra.mxu0 %vm273_vm0, %v858_v21  ;;  %v1582_v21 = vshll.u32 %v3811_v13, 16 }
  0x5d   : > { %3279 = vmatmul.mubr.msk.bf16.vlgmr.msra.gmra.mxu1 %vm273_vm0, %v1277_v44  ;;  %3264 = vmatprep.mubr.msk.bf16.mxu0 %vm273_vm0, %v1128_v54  ;;  %v3899_v44 = vsel %vm982_vm4, %v2584_v57, %v2586_v59  ;;  %v3901_v54 = vcombine.low %v2087_v4, %v2417_v50  ;;  %v1610_v50 = vrot.slane %v1608_v30, 4  ;;  %v1445_v57 = vrot.slane %v3815_v14, 3  ;;  %v3450_v14 = vld [vmem:[%s3528_s25 + $0xc] sm:$0xff]  }
  0x5e   : > { %3305 = vmatpush3.bf16.msra.mxu1 %v3686_v58  ;;  %3282 = vmatprep.mubr.msk.bf16.mxu1 %vm273_vm0, %v1279_v16  ;;  %v1137_v58 = vrot.slane %v843_v1, 2  ;;  %v3875_v1 = vcombine.low %v3834_v7, %v3841_v35  ;;  %v1584_v46 = vrot.slane %v1582_v21, 4  ;;  %v1916_v51 = vshrl.u32 %v3450_v14, 16 }
  0x5f   : > { %3332 = vmatprep.subr.bf16.mxu1 %v3828_v22  ;;  %v2588_v9 = vrot.slane %v3901_v54, 2 }
  0x60   : > { %v1139_v10 = vor.u32 %v1138_v42, %v1137_v58  ;;  %v1585_v4 = vor.u32 %v1584_v46, %v1581_v60  ;;  %v1596_v16 = vshrl.u32 %v3875_v1, 16  ;;  %v1599_v18 = vshll.u32 %v3875_v1, 16 }
  0x61   : > { %v3923_v21 = vsel %vm982_vm4, %v2586_v59, %v2588_v9 }
  0x62   : > { %v1140_v33 = vsel %vm1116_vm6, %v3823_v20, %v1139_v10  ;;  %v1598_v58 = vrot.slane %v1596_v16, 3  ;;  %v1601_v42 = vrot.slane %v1599_v18, 4  ;;  %v1444_v20 = vrot.slane %v3811_v13, 3 }
  0x63   : > { %v1625_v16 = vrot.slane %v1623_v62, 3  ;;  %v1628_v18 = vrot.slane %v1626_v0, 4  ;;  %v3456_v0 = vld [vmem:[%s3528_s25 + $0x24] sm:$0xff]  }
  0x64   : > { %3265 = vmatmul.mubr.msk.bf16.vlgmr.msra.gmra.mxu0 %vm273_vm0, %v1132_v25  ;;  %v3936_v25 = vcombine.low %v3915_v28, %v3918_v17  ;;  %v1602_v52 = vor.u32 %v1601_v42, %v1598_v58  ;;  %v1410_v58 = vld [vmem:[%s3528_s25 + $0x34] sm:$0x7] }
  0x65   : > { %3291 = vmatpush3.bf16.msra.mxu0 %v3723_v24  ;;  %3283 = vmatmul.mubr.msk.bf16.gmra.mxu1 %vm273_vm0, %v1281_v41  ;;  %v1605_v24 = vshrl.u32 %v3893_v5, 16  ;;  %v1149_v41 = vsel %vm1116_vm6, %v1139_v10, %v1148_v15  ;;  %v3451_v42 = vld [vmem:[%s3528_s25 + $0x14] sm:$0xff]  }
  0x66   : > { %3268 = vmatprep.mubr.msk.bf16.mxu0 %vm273_vm0, %v1136_v32  ;;  %3286 = vmatprep.mubr.msk.bf16.mxu1 %vm273_vm0, %v1283_v49  ;;  %v1594_v32 = vsel %vm1577_vm7, %v1585_v4, %v1593_v11  ;;  %v1614_v59 = vshrl.u32 %v3936_v25, 16  ;;  %v1617_v60 = vshll.u32 %v3936_v25, 16  ;;  %v1603_v8 = vsel %vm1577_vm7, %v1593_v11, %v1602_v52 }
  0x67   : > { %3318 = vmatprep.subr.bf16.mxu0 %v3889_v3  ;;  %v1607_v49 = vrot.slane %v1605_v24, 3  ;;  %v3958_v24 = vld [vmem:[%s4235_s1 + $0x68] sm:$0xff]   ;;  %v1447_v11 = vrot.slane %v3875_v1, 3 }
  0x68   : > { %v1616_v10 = vrot.slane %v1614_v59, 3  ;;  %v1619_v13 = vrot.slane %v1617_v60, 4  ;;  %v3452_v59 = vld [vmem:[%s3528_s25 + $0x1c] sm:$0xff]  }
  0x69   : > { %v1611_v46 = vor.u32 %v1610_v50, %v1607_v49 }
  0x6a   : > { %v1620_v30 = vor.u32 %v1619_v13, %v1616_v10  ;;  %v1927_v10 = vshrl.u32 %v3451_v42, 16  ;;  %v1935_v13 = vshrl.u32 %v3452_v59, 16 }
  0x6b   : > { %v1612_v4 = vsel %vm1577_vm7, %v1602_v52, %v1611_v46  ;;  %v3454_v52 = vld [vmem:[%s4235_s1 + $0x60] sm:$0xff]  }
  0x6c   : > { %3269 = vmatmul.mubr.msk.bf16.gmra.mxu0 %vm273_vm0, %v1140_v33  ;;  %v1449_v33 = vrot.slane %v3893_v5, 3  ;;  %v1621_v49 = vsel %vm1577_vm7, %v1611_v46, %v1620_v30 }
  0x6d   : > { %3287 = vmatmul.mubr.msk.bf16.gmra.mxu1 %vm273_vm0, %v1282_v23  ;;  %3272 = vmatprep.mubr.msk.bf16.mxu0 %vm273_vm0, %v1149_v41  ;;  %v1446_v23 = vsel %vm1272_vm5, %v1444_v20, %v1445_v57  ;;  %v1629_v41 = vor.u32 %v1628_v18, %v1625_v16  ;;  %v1923_v20 = vshll.u32 %v3451_v42, 16  ;;  %v3457_v18 = vld [vmem:[%s3528_s25 + $0x2c] sm:$0xff]  }
  0x6e   : > { %3306 = vmatprep.mubr.msk.bf16.mxu1 %vm273_vm0, %v1594_v32  ;;  %v1918_v32 = vshll.u32 %v3450_v14, 16  ;;  %v1450_v1 = vsel %vm1272_vm5, %v1447_v11, %v1449_v33  ;;  %v1947_v42 = vshll.u32 %v3457_v18, 16 }
  0x6f   : > { %v1630_v50 = vsel %vm1577_vm7, %v1620_v30, %v1629_v41  ;;  %v1925_v62 = vrot.slane %v1923_v20, 1  ;;  %v2969_v20 = vcombine.low %v3792_v63, %v3834_v7 }
  0x70   : > { %v1920_v5 = vrot.slane %v1918_v32, 1 }
  0x71   : > { %v1929_v14 = vor.u32 %v1927_v10, %v1925_v62  ;;  %v2146_v10 = vshll.u32 %v3756_v43, 16 }
  0x72   : > { %v1921_v46 = vor.u32 %v1920_v5, %v1916_v51  ;;  %v2077_v5 = vld [vmem:[%s3528_s25 + $0x10] sm:$0xf] }
  0x74   : > { %3273 = vmatmul.mubr.msk.bf16.gmra.mxu0 %vm273_vm0, %v1148_v15  ;;  %v1448_v15 = vsel %vm1272_vm5, %v1445_v57, %v1447_v11  ;;  %v1451_v57 = vrot.slane %v3936_v25, 3  ;;  %v1926_v25 = vsel %vm219_vm1, %v1921_v46, %v1925_v62 }
  0x75   : > { %3307 = vmatmul.mubr.msk.bf16.vlgmr.msra.gmra.mxu1 %vm273_vm0, %v1603_v8  ;;  %3292 = vmatprep.mubr.msk.bf16.mxu0 %vm273_vm0, %v1446_v23  ;;  %v1931_v23 = vshll.u32 %v3452_v59, 16  ;;  %v2970_v59 = vcombine.low %v3841_v35, %v3878_v55  ;;  %v2972_v35 = vcombine.low %v3918_v17, %v3926_v36  ;;  %v2138_v17 = vshll.u32 %v3740_v34, 16 }
  0x76   : > { %3333 = vmatpush3.bf16.msra.mxu1 %v3828_v22  ;;  %3310 = vmatprep.mubr.msk.bf16.mxu1 %vm273_vm0, %v1612_v4  ;;  %v2948_v22 = vcombine.low %v3926_v36, %v1410_v58  ;;  %v1452_v8 = vsel %vm1272_vm5, %v1449_v33, %v1451_v57  ;;  %v1939_v4 = vshll.u32 %v3456_v0, 16  ;;  %v3460_v33 = vld [vmem:[%s3528_s25 + $0x34] sm:$0x1f]   ;;  %v2968_v58 = vcombine.low %v3778_v61, %v3781_v45 }
  0x77   : > { %3360 = vmatprep.subr.bf16.mxu1 %v3958_v24  ;;  %v1933_v16 = vrot.slane %v1931_v23, 1  ;;  %v1949_v61 = vrot.slane %v1947_v42, 1  ;;  %v1959_v62 = vshrl.u32 %v3460_v33, 16 }
  0x78   : > { %v1453_v60 = vrot.slane %v2948_v22, 3  ;;  %v1941_v30 = vrot.slane %v1939_v4, 1  ;;  %v3468_v22 = vld [vmem:[%s4235_s1 + $0x78] sm:$0xff]   ;;  %v2150_v4 = vshrl.u32 %v3756_v43, 16 }
  0x79   : > { %v1937_v11 = vor.u32 %v1935_v13, %v1933_v16  ;;  %v1934_v32 = vsel %vm219_vm1, %v1929_v14, %v1933_v16  ;;  %v2154_v13 = vshll.u32 %v3759_v48, 16  ;;  %v2158_v16 = vshrl.u32 %v3759_v48, 16 }
  0x7b   : > { %v2156_v14 = vrot.slane %v2154_v13, 1 }
  0x7c   : > { %3293 = vmatmul.mubr.msk.bf16.vlgmr.msra.gmra.mxu0 %vm273_vm0, %v1448_v15  ;;  %v1943_v15 = vshrl.u32 %v3456_v0, 16 }
  0x7d   : > { %3319 = vmatpush3.bf16.msra.mxu0 %v3889_v3  ;;  %3311 = vmatmul.mubr.msk.bf16.gmra.mxu1 %vm273_vm0, %v1621_v49  ;;  %v1454_v3 = vsel %vm1272_vm5, %v1451_v57, %v1453_v60  ;;  %v1951_v49 = vshrl.u32 %v3457_v18, 16  ;;  %v2160_v43 = vor.u32 %v2158_v16, %v2156_v14 }
  0x7e   : > { %3296 = vmatprep.mubr.msk.bf16.mxu0 %vm273_vm0, %v1450_v1  ;;  %3314 = vmatprep.mubr.msk.bf16.mxu1 %vm273_vm0, %v1630_v50  ;;  %v1955_v1 = vshll.u32 %v3460_v33, 16  ;;  %v1945_v45 = vor.u32 %v1943_v15, %v1941_v30 }
  0x7f   : > { %3346 = vmatprep.subr.bf16.mxu0 %v3454_v52  ;;  %v1953_v50 = vor.u32 %v1951_v49, %v1949_v61 }
  0x80   : > { %v1957_v51 = vrot.slane %v1955_v1, 1  ;;  %v1950_v57 = vsel %vm219_vm1, %v1945_v45, %v1949_v61  ;;  %v2440_v45 = vrot.slane %v2150_v4, 1 }
  0x82   : > { %v1958_v46 = vsel %vm219_vm1, %v1953_v50, %v1957_v51  ;;  %v1961_v7 = vor.u32 %v1959_v62, %v1957_v51  ;;  %v2441_v50 = vrot.slane %v2146_v10, 2  ;;  %v2452_v51 = vshll.u32 %v3901_v54, 16 }
  0x84   : > { %3297 = vmatmul.mubr.msk.bf16.gmra.mxu0 %vm273_vm0, %v1452_v8 }
  0x85   : > { %3315 = vmatmul.mubr.msk.bf16.gmra.mxu1 %vm273_vm0, %v1629_v41  ;;  %3300 = vmatprep.mubr.msk.bf16.mxu0 %vm273_vm0, %v1454_v3  ;;  %v1942_v41 = vsel %vm219_vm1, %v1937_v11, %v1941_v30  ;;  %v2142_v3 = vshrl.u32 %v3740_v34, 16  ;;  %v2425_v11 = vshrl.u32 %v3750_v39, 16  ;;  %v2428_v30 = vshll.u32 %v3750_v39, 16 }
  0x86   : > { %3334 = vmatprep.mubr.msk.bf16.mxu1 %vm273_vm0, %v1926_v25  ;;  %v2140_v25 = vrot.slane %v2138_v17, 1 }
  0x87   : > { %v2436_v1 = vrot.slane %v2142_v3, 1 }
  0x8c   : > { %3301 = vmatmul.mubr.msk.bf16.gmra.mxu0 %vm273_vm0, %v1453_v60  ;;  %v2998_v60 = vcombine.low %v2077_v5, %v3736_v29  ;;  %v2971_v29 = vcombine.low %v3881_v2, %v3915_v28  ;;  %v2973_v2 = vcombine.low %v3929_v37, %v3929_v37  ;;  %v2134_v28 = vshrl.u32 %v3731_v27, 16 }
  0x8d   : > { %3335 = vmatmul.mubr.msk.bf16.vlgmr.msra.gmra.mxu1 %vm273_vm0, %v1934_v32  ;;  %3320 = vmatprep.mubr.msk.bf16.mxu0 %vm273_vm0, %v2968_v58  ;;  %v2148_v37 = vrot.slane %v2146_v10, 1  ;;  %v2427_v58 = vrot.slane %v2425_v11, 1  ;;  %v2430_v32 = vrot.slane %v2428_v30, 2 }
  0x8e   : > { %3361 = vmatpush3.bf16.msra.mxu1 %v3958_v24  ;;  %3338 = vmatprep.mubr.msk.bf16.mxu1 %vm273_vm0, %v1942_v41  ;;  %v3467_v24 = vld [vmem:[%s4235_s1 + $0x70] sm:$0xff]   ;;  %v2125_v63 = vshll.u32 %v2998_v60, 16  ;;  %v2123_v55 = vshrl.u32 %v2998_v60, 16  ;;  %v2432_v15 = vrot.slane %v2134_v28, 1  ;;  %v2166_v41 = vshrl.u32 %v3817_v47, 16 }
  0x8f   : > { %3388 = vmatprep.subr.bf16.mxu1 %v3468_v22  ;;  %v2431_v39 = vor.u32 %v2430_v32, %v2427_v58 }
  0x90   : > { %v2127_v0 = vrot.slane %v2125_v63, 1 }
  0x92   : > { %v2128_v8 = vor.u32 %v2127_v0, %v2123_v55 }
  0x94   : > { %3321 = vmatmul.mubr.msk.bf16.vlgmr.msra.gmra.mxu0 %vm273_vm0, %v2969_v20  ;;  %v2444_v20 = vrot.slane %v2158_v16, 1 }
  0x95   : > { %3347 = vmatpush3.bf16.msra.mxu0 %v3454_v52  ;;  %3339 = vmatmul.mubr.msk.bf16.gmra.mxu1 %vm273_vm0, %v1950_v57  ;;  %v2130_v52 = vshll.u32 %v3731_v27, 16  ;;  %v2144_v27 = vor.u32 %v2142_v3, %v2140_v25  ;;  %v2445_v57 = vrot.slane %v2154_v13, 2 }
  0x96   : > { %3324 = vmatprep.mubr.msk.bf16.mxu0 %vm273_vm0, %v2970_v59  ;;  %3342 = vmatprep.mubr.msk.bf16.mxu1 %vm273_vm0, %v1958_v46  ;;  %v2454_v46 = vrot.slane %v2452_v51, 2 }
  0x97   : > { %3374 = vmatprep.subr.bf16.mxu0 %v3467_v24  ;;  %v2132_v23 = vrot.slane %v2130_v52, 1  ;;  %v2149_v18 = vsel %vm219_vm1, %v2144_v27, %v2148_v37 }
  0x99   : > { %v2133_v36 = vsel %vm219_vm1, %v2128_v8, %v2132_v23 }
  0x9c   : > { %3325 = vmatmul.mubr.msk.bf16.gmra.mxu0 %vm273_vm0, %v2971_v29 }
  0x9d   : > { %3343 = vmatmul.mubr.msk.bf16.gmra.mxu1 %vm273_vm0, %v1961_v7  ;;  %3328 = vmatprep.mubr.msk.bf16.mxu0 %vm273_vm0, %v2972_v35 }
  0x9e   : > { %3362 = vmatprep.mubr.msk.bf16.mxu1 %vm273_vm0, %v3784_v19  ;;  %v2136_v19 = vor.u32 %v2134_v28, %v2132_v23 }
  0xa0   : > { %v2141_v34 = vsel %vm219_vm1, %v2136_v19, %v2140_v25 }
  0xa4   : > { %3329 = vmatmul.mubr.msk.bf16.gmra.mxu0 %vm273_vm0, %v2973_v2 }
  0xa5   : > { %3363 = vmatmul.mubr.msk.bf16.vlgmr.msra.gmra.mxu1 %vm273_vm0, %v3772_v56  ;;  %3348 = vmatprep.mubr.msk.bf16.mxu0 %vm273_vm0, %v2133_v36  ;;  %v2162_v56 = vshll.u32 %v3817_v47, 16 }
  0xa6   : > { %3389 = vmatpush3.bf16.msra.mxu1 %v3468_v22  ;;  %3366 = vmatprep.mubr.msk.bf16.mxu1 %vm273_vm0, %v3803_v12  ;;  %v2152_v12 = vor.u32 %v2150_v4, %v2148_v37  ;;  %v2437_v22 = vrot.slane %v2138_v17, 2 }
  0xa7   : > { %v2164_v48 = vrot.slane %v2162_v56, 1 }
  0xa8   : > { %v2157_v33 = vsel %vm219_vm1, %v2152_v12, %v2156_v14  ;;  %v2438_v47 = vor.u32 %v2437_v22, %v2436_v1 }
  0xa9   : > { %v2165_v42 = vsel %vm219_vm1, %v2160_v43, %v2164_v48  ;;  %v2168_v49 = vor.u32 %v2166_v41, %v2164_v48 }
  0xac   : > { %3349 = vmatmul.mubr.msk.bf16.vlgmr.msra.gmra.mxu0 %vm273_vm0, %v2141_v34 }
  0xad   : > { %3375 = vmatpush3.bf16.msra.mxu0 %v3467_v24  ;;  %3367 = vmatmul.mubr.msk.bf16.gmra.mxu1 %vm273_vm0, %v3806_v53  ;;  %v2433_v53 = vrot.slane %v2130_v52, 2 }
  0xae   : > { %3352 = vmatprep.mubr.msk.bf16.mxu0 %vm273_vm0, %v2149_v18  ;;  %3370 = vmatprep.mubr.msk.bf16.mxu1 %vm273_vm0, %v3853_v38 }
  0xaf   : > { %v2434_v38 = vor.u32 %v2433_v53, %v2432_v15 }
  0xb1   : > { %v2435_v61 = vsel %vm613_vm2, %v2431_v39, %v2434_v38  ;;  %v2439_v5 = vsel %vm613_vm2, %v2434_v38, %v2438_v47 }
  0xb4   : > { %3353 = vmatmul.mubr.msk.bf16.gmra.mxu0 %vm273_vm0, %v2157_v33 }
  0xb5   : > { %3371 = vmatmul.mubr.msk.bf16.gmra.mxu1 %vm273_vm0, %v2300_v26  ;;  %3356 = vmatprep.mubr.msk.bf16.mxu0 %vm273_vm0, %v2165_v42  ;;  %v2442_v26 = vor.u32 %v2441_v50, %v2440_v45 }
  0xb6   : > { %3390 = vmatprep.mubr.msk.bf16.mxu1 %vm273_vm0, %v3856_v40  ;;  %v2449_v40 = vshrl.u32 %v3901_v54, 16 }
  0xb7   : > { %v2443_v59 = vsel %vm613_vm2, %v2438_v47, %v2442_v26 }
  0xb8   : > { %v2451_v60 = vrot.slane %v2449_v40, 1 }
  0xbc   : > { %3357 = vmatmul.mubr.msk.bf16.gmra.mxu0 %vm273_vm0, %v2168_v49 }
  0xbd   : > { %3391 = vmatmul.mubr.msk.bf16.vlgmr.msra.gmra.mxu1 %vm273_vm0, %v3865_v31  ;;  %3376 = vmatprep.mubr.msk.bf16.mxu0 %vm273_vm0, %v2435_v61  ;;  %v2446_v31 = vor.u32 %v2445_v57, %v2444_v20 }
  0xbe   : > { %3394 = vmatprep.mubr.msk.bf16.mxu1 %vm273_vm0, %v3896_v6  ;;  %v2455_v6 = vor.u32 %v2454_v46, %v2451_v60 }
  0xbf   : > { %v2447_v24 = vsel %vm613_vm2, %v2442_v26, %v2446_v31 }
  0xc0   : > { %v2456_v62 = vsel %vm613_vm2, %v2446_v31, %v2455_v6 }
  0xc4   : > { %3377 = vmatmul.mubr.msk.bf16.vlgmr.msra.gmra.mxu0 %vm273_vm0, %v2439_v5 }
  0xc5   : > { %3395 = vmatmul.mubr.msk.bf16.gmra.mxu1 %vm273_vm0, %v3899_v44  ;;  %3380 = vmatprep.mubr.msk.bf16.mxu0 %vm273_vm0, %v2443_v59 }
  0xc6   : > { %3398 = vmatprep.mubr.msk.bf16.mxu1 %vm273_vm0, %v3923_v21 }
  0xcc   : > { %3381 = vmatmul.mubr.msk.bf16.gmra.mxu0 %vm273_vm0, %v2447_v24 }
  0xcd   : > { %3399 = vmatmul.mubr.msk.bf16.gmra.mxu1 %vm273_vm0, %v2588_v9  ;;  %3384 = vmatprep.mubr.msk.bf16.mxu0 %vm273_vm0, %v2456_v62 }
  0xd4   : > { %3385 = vmatmul.mubr.msk.bf16.gmra.mxu0 %vm273_vm0, %v2455_v6 }
  0xd5   : > { %v3196_v44 = vpop.f32.mrf.mxu1 }
  0xd7   : > { %v426_v63 = vpop.f32.mrf.mxu1 }
  0xd9   : > { %v3197_v29 = vpop.f32.mrf.mxu1 }
  0xdb   : > { %v429_v7 = vpop.f32.mrf.mxu1 }
  0xdc   : > { %v3182_v21 = vpop.f32.mrf.mxu0 }
  0xdd   : > { %v435_v35 = vadd.f32 %v3196_v44, %v3182_v21  ;;  %v3200_v55 = vpop.f32.mrf.mxu1 }
  0xde   : > { %v326_v0 = vpop.f32.mrf.mxu0 }
  0xdf   : > { %v427_v52 = vadd.f32 %v426_v63, %v326_v0  ;;  %v442_v8 = vpop.f32.mrf.mxu1 }
  0xe0   : > { %v3183_v23 = vpop.f32.mrf.mxu0 }
  0xe1   : > { %v438_v2 = vadd.f32 %v3197_v29, %v3183_v23  ;;  %v3201_v28 = vpop.f32.mrf.mxu1 }
  0xe2   : > { %v329_v54 = vpop.f32.mrf.mxu0 }
  0xe3   : > { %v430_v17 = vadd.f32 %v429_v7, %v329_v54  ;;  %v445_v9 = vpop.f32.mrf.mxu1 }
  0xe4   : > { %v3186_v36 = vpop.f32.mrf.mxu0 }
  0xe5   : > { %v451_v3 = vadd.f32 %v3200_v55, %v3186_v36  ;;  %v3204_v10 = vpop.f32.mrf.mxu1 }
  0xe6   : > { %v342_v19 = vpop.f32.mrf.mxu0 }
  0xe7   : > { %v443_v25 = vadd.f32 %v442_v8, %v342_v19  ;;  %v458_v27 = vpop.f32.mrf.mxu1 }
  0xe8   : > { %v3187_v37 = vpop.f32.mrf.mxu0 }
  0xe9   : > { %v454_v13 = vadd.f32 %v3201_v28, %v3187_v37  ;;  %v3205_v34 = vpop.f32.mrf.mxu1 }
  0xea   : > { %v345_v4 = vpop.f32.mrf.mxu0 }
  0xeb   : > { %v446_v16 = vadd.f32 %v445_v9, %v345_v4  ;;  %v461_v56 = vpop.f32.mrf.mxu1 }
  0xec   : > { %v3190_v18 = vpop.f32.mrf.mxu0 }
  0xed   : > { %v467_v14 = vadd.f32 %v3204_v10, %v3190_v18  ;;  %v3224_v12 = vpop.f32.mrf.mxu1 }
  0xee   : > { %v358_v11 = vpop.f32.mrf.mxu0 }
  0xef   : > { %v459_v43 = vadd.f32 %v458_v27, %v358_v11  ;;  %v705_v48 = vpop.f32.mrf.mxu1 }
  0xf0   : > { %v3191_v30 = vpop.f32.mrf.mxu0 }
  0xf1   : > { %v3225_v33 = vpop.f32.mrf.mxu1 }
  0xf2   : > { %v361_v58 = vpop.f32.mrf.mxu0 }
  0xf3   : > { %v462_v42 = vadd.f32 %v461_v56, %v361_v58  ;;  %v708_v32 = vpop.f32.mrf.mxu1 }
  0xf4   : > { %v3210_v15 = vpop.f32.mrf.mxu0 }
  0xf5   : > { %v597_v53 = vadd.f32 %v3210_v15, %v435_v35  ;;  %v3228_v41 = vpop.f32.mrf.mxu1 }
  0xf6   : > { %v549_v39 = vpop.f32.mrf.mxu0 }
  0xf7   : > { %v595_v38 = vadd.f32 %v549_v39, %v427_v52  ;;  %v721_v49 = vpop.f32.mrf.mxu1  ;;  %v753_v1 = vadd.f32 %v3224_v12, %v597_v53 }
  0xf8   : > { %v3211_v22 = vpop.f32.mrf.mxu0 }
  0xf9   : > { %v598_v61 = vadd.f32 %v3211_v22, %v438_v2  ;;  %v3229_v45 = vpop.f32.mrf.mxu1  ;;  %v751_v50 = vadd.f32 %v705_v48, %v595_v38 }
  0xfa   : > { %v552_v47 = vpop.f32.mrf.mxu0 }
  0xfb   : > { %v596_v26 = vadd.f32 %v552_v47, %v430_v17  ;;  %v724_v40 = vpop.f32.mrf.mxu1  ;;  %v754_v51 = vadd.f32 %v3225_v33, %v598_v61 }
  0xfc   : > { %v3214_v5 = vpop.f32.mrf.mxu0 }
  0xfd   : > { %v601_v20 = vadd.f32 %v3214_v5, %v451_v3  ;;  %v3232_v57 = vpop.f32.mrf.mxu1  ;;  %v752_v59 = vadd.f32 %v708_v32, %v596_v26 }
  0xfe   : > { %v565_v60 = vpop.f32.mrf.mxu0 }
  0xff   : > { %v599_v46 = vadd.f32 %v565_v60, %v443_v25  ;;  %v737_v31 = vpop.f32.mrf.mxu1  ;;  %v757_v6 = vadd.f32 %v3228_v41, %v601_v20 }
 0x100   : > { %v3215_v24 = vpop.f32.mrf.mxu0 }
 0x101   : > { %v602_v62 = vadd.f32 %v3215_v24, %v454_v13  ;;  %v3233_v44 = vpop.f32.mrf.mxu1  ;;  %v755_v63 = vadd.f32 %v721_v49, %v599_v46 }
 0x102   : > { %v568_v29 = vpop.f32.mrf.mxu0 }
 0x103   : > { %v600_v7 = vadd.f32 %v568_v29, %v446_v16  ;;  %v740_v21 = vpop.f32.mrf.mxu1  ;;  %v758_v35 = vadd.f32 %v3229_v45, %v602_v62 }
 0x104   : > { %v3218_v55 = vpop.f32.mrf.mxu0 }
 0x105   : > { %v605_v0 = vadd.f32 %v3218_v55, %v467_v14  ;;  %v3252_v52 = vpop.f32.mrf.mxu1  ;;  %v756_v8 = vadd.f32 %v724_v40, %v600_v7 }
 0x106   : > { %v581_v23 = vpop.f32.mrf.mxu0 }
 0x107   : > { %v603_v2 = vadd.f32 %v581_v23, %v459_v43  ;;  %v1052_v28 = vpop.f32.mrf.mxu1  ;;  %v761_v54 = vadd.f32 %v3232_v57, %v605_v0 }
 0x108   : > { %v3219_v17 = vpop.f32.mrf.mxu0 }
 0x109   : > { %v3253_v9 = vpop.f32.mrf.mxu1  ;;  %v759_v36 = vadd.f32 %v737_v31, %v603_v2 }
 0x10a   : > { %v584_v3 = vpop.f32.mrf.mxu0 }
 0x10b   : > { %v604_v10 = vadd.f32 %v584_v3, %v462_v42  ;;  %v1055_v19 = vpop.f32.mrf.mxu1 }
 0x10c   : > { %v3238_v25 = vpop.f32.mrf.mxu0 }
 0x10d   : > { %v966_v27 = vadd.f32 %v3238_v25, %v753_v1  ;;  %v3256_v37 = vpop.f32.mrf.mxu1  ;;  %v760_v13 = vadd.f32 %v740_v21, %v604_v10 }
 0x10e   : > { %v918_v34 = vpop.f32.mrf.mxu0 }
 0x10f   : > { %v964_v4 = vadd.f32 %v918_v34, %v751_v50  ;;  %v1068_v16 = vpop.f32.mrf.mxu1  ;;  %v1100_v56 = vadd.f32 %v3252_v52, %v966_v27 }
 0x110   : > { %v3239_v18 = vpop.f32.mrf.mxu0 }
 0x111   : > { %v967_v14 = vadd.f32 %v3239_v18, %v754_v51  ;;  %v3257_v12 = vpop.f32.mrf.mxu1  ;;  %v1098_v11 = vadd.f32 %v1052_v28, %v964_v4 }
 0x112   : > { %v921_v43 = vpop.f32.mrf.mxu0 }
 0x113   : > { %v965_v48 = vadd.f32 %v921_v43, %v752_v59  ;;  %v1071_v30 = vpop.f32.mrf.mxu1  ;;  %v1101_v33 = vadd.f32 %v3253_v9, %v967_v14 }
 0x114   : > { %v3242_v58 = vpop.f32.mrf.mxu0 }
 0x115   : > { %v970_v32 = vadd.f32 %v3242_v58, %v757_v6  ;;  %v3260_v42 = vpop.f32.mrf.mxu1  ;;  %v1099_v15 = vadd.f32 %v1055_v19, %v965_v48 }
 0x116   : > { %v934_v53 = vpop.f32.mrf.mxu0 }
 0x117   : > { %v968_v41 = vadd.f32 %v934_v53, %v755_v63  ;;  %v1084_v39 = vpop.f32.mrf.mxu1  ;;  %v1104_v38 = vadd.f32 %v3256_v37, %v970_v32 }
 0x118   : > { %v3243_v49 = vpop.f32.mrf.mxu0 }
 0x119   : > { %v971_v1 = vadd.f32 %v3243_v49, %v758_v35  ;;  %v3261_v22 = vpop.f32.mrf.mxu1  ;;  %v1102_v61 = vadd.f32 %v1068_v16, %v968_v41 }
 0x11a   : > { %v937_v45 = vpop.f32.mrf.mxu0 }
 0x11b   : > { %v969_v50 = vadd.f32 %v937_v45, %v756_v8  ;;  %v1087_v47 = vpop.f32.mrf.mxu1  ;;  %v1105_v26 = vadd.f32 %v3257_v12, %v971_v1 }
 0x11c   : > { %v3246_v40 = vpop.f32.mrf.mxu0 }
 0x11d   : > { %v974_v51 = vadd.f32 %v3246_v40, %v761_v54  ;;  %v3280_v5 = vpop.f32.mrf.mxu1  ;;  %v1103_v20 = vadd.f32 %v1071_v30, %v969_v50 }
 0x11e   : > { %v950_v57 = vpop.f32.mrf.mxu0 }
 0x11f   : > { %v972_v59 = vadd.f32 %v950_v57, %v759_v36  ;;  %v1342_v60 = vpop.f32.mrf.mxu1  ;;  %v1108_v46 = vadd.f32 %v3260_v42, %v974_v51 }
 0x120   : > { %v3247_v31 = vpop.f32.mrf.mxu0 }
 0x121   : > { %v3281_v6 = vpop.f32.mrf.mxu1  ;;  %v1106_v24 = vadd.f32 %v1084_v39, %v972_v59 }
 0x122   : > { %v953_v62 = vpop.f32.mrf.mxu0 }
 0x123   : > { %v973_v44 = vadd.f32 %v953_v62, %v760_v13  ;;  %v1345_v63 = vpop.f32.mrf.mxu1 }
 0x124   : > { %v3266_v29 = vpop.f32.mrf.mxu0 }
 0x125   : > { %v1256_v7 = vadd.f32 %v3266_v29, %v1100_v56  ;;  %v3284_v21 = vpop.f32.mrf.mxu1  ;;  %v1107_v35 = vadd.f32 %v1087_v47, %v973_v44 }
 0x126   : > { %v1208_v55 = vpop.f32.mrf.mxu0 }
 0x127   : > { %v1254_v0 = vadd.f32 %v1208_v55, %v1098_v11  ;;  %v1358_v52 = vpop.f32.mrf.mxu1  ;;  %v1390_v8 = vadd.f32 %v3280_v5, %v1256_v7 }
 0x128   : > { %v3267_v23 = vpop.f32.mrf.mxu0 }
 0x129   : > { %v1257_v2 = vadd.f32 %v3267_v23, %v1101_v33  ;;  %v3285_v28 = vpop.f32.mrf.mxu1  ;;  %v1388_v54 = vadd.f32 %v1342_v60, %v1254_v0 }
 0x12a   : > { %v1211_v17 = vpop.f32.mrf.mxu0 }
 0x12b   : > { %v1255_v9 = vadd.f32 %v1211_v17, %v1099_v15  ;;  %v1361_v36 = vpop.f32.mrf.mxu1  ;;  %v1391_v3 = vadd.f32 %v3281_v6, %v1257_v2 }
 0x12c   : > { %v3270_v10 = vpop.f32.mrf.mxu0 }
 0x12d   : > { %v1260_v19 = vadd.f32 %v3270_v10, %v1104_v38  ;;  %v3288_v25 = vpop.f32.mrf.mxu1  ;;  %v1389_v27 = vadd.f32 %v1345_v63, %v1255_v9 }
 0x12e   : > { %v1224_v37 = vpop.f32.mrf.mxu0 }
 0x12f   : > { %v1258_v13 = vadd.f32 %v1224_v37, %v1102_v61  ;;  %v1374_v34 = vpop.f32.mrf.mxu1  ;;  %v1394_v4 = vadd.f32 %v3284_v21, %v1260_v19 }
 0x130   : > { %v3271_v16 = vpop.f32.mrf.mxu0 }
 0x131   : > { %v1261_v56 = vadd.f32 %v3271_v16, %v1105_v26  ;;  %v3289_v18 = vpop.f32.mrf.mxu1  ;;  %v1392_v14 = vadd.f32 %v1358_v52, %v1258_v13 }
 0x132   : > { %v1227_v12 = vpop.f32.mrf.mxu0 }
 0x133   : > { %v1259_v11 = vadd.f32 %v1227_v12, %v1103_v20  ;;  %v1377_v43 = vpop.f32.mrf.mxu1  ;;  %v1395_v48 = vadd.f32 %v3285_v28, %v1261_v56 }
 0x134   : > { %v3274_v30 = vpop.f32.mrf.mxu0 }
 0x135   : > { %v1264_v33 = vadd.f32 %v3274_v30, %v1108_v46  ;;  %v3308_v58 = vpop.f32.mrf.mxu1  ;;  %v1393_v32 = vadd.f32 %v1361_v36, %v1259_v11 }
 0x136   : > { %v1240_v42 = vpop.f32.mrf.mxu0 }
 0x137   : > { %v1262_v15 = vadd.f32 %v1240_v42, %v1106_v24  ;;  %v1689_v53 = vpop.f32.mrf.mxu1  ;;  %v1398_v41 = vadd.f32 %v3288_v25, %v1264_v33 }
 0x138   : > { %v3275_v39 = vpop.f32.mrf.mxu0 }
 0x139   : > { %v3309_v38 = vpop.f32.mrf.mxu1  ;;  %v1396_v49 = vadd.f32 %v1374_v34, %v1262_v15 }
 0x13a   : > { %v1243_v1 = vpop.f32.mrf.mxu0 }
 0x13b   : > { %v1263_v22 = vadd.f32 %v1243_v1, %v1107_v35  ;;  %v1692_v61 = vpop.f32.mrf.mxu1 }
 0x13c   : > { %v3294_v45 = vpop.f32.mrf.mxu0 }
 0x13d   : > { %v1561_v50 = vadd.f32 %v3294_v45, %v1390_v8  ;;  %v3312_v47 = vpop.f32.mrf.mxu1  ;;  %v1397_v26 = vadd.f32 %v1377_v43, %v1263_v22 }
 0x13e   : > { %v1513_v40 = vpop.f32.mrf.mxu0 }
 0x13f   : > { %v1559_v51 = vadd.f32 %v1513_v40, %v1388_v54  ;;  %v1705_v5 = vpop.f32.mrf.mxu1  ;;  %v4094_v20 = vadd.f32 %v3308_v58, %v1561_v50 }
 0x140   : > { %v3295_v57 = vpop.f32.mrf.mxu0 }
 0x141   : > { %v1562_v59 = vadd.f32 %v3295_v57, %v1391_v3  ;;  %v3313_v60 = vpop.f32.mrf.mxu1  ;;  %v4096_v46 = vadd.f32 %v1689_v53, %v1559_v51 }
 0x142   : > { %v1516_v31 = vpop.f32.mrf.mxu0 }
 0x143   : > { %v1560_v6 = vadd.f32 %v1516_v31, %v1389_v27  ;;  %v1708_v24 = vpop.f32.mrf.mxu1  ;;  %v4098_v62 = vadd.f32 %v3309_v38, %v1562_v59 }
 0x144   : > { %v3298_v44 = vpop.f32.mrf.mxu0 }
 0x145   : > { %v1565_v63 = vadd.f32 %v3298_v44, %v1394_v4  ;;  %v3316_v29 = vpop.f32.mrf.mxu1  ;;  %v4100_v7 = vadd.f32 %v1692_v61, %v1560_v6 }
 0x146   : > { %v1529_v21 = vpop.f32.mrf.mxu0 }
 0x147   : > { %v1563_v35 = vadd.f32 %v1529_v21, %v1392_v14  ;;  %v1721_v55 = vpop.f32.mrf.mxu1  ;;  %v4102_v0 = vadd.f32 %v3312_v47, %v1565_v63 }
 0x148   : > { %v3299_v52 = vpop.f32.mrf.mxu0 }
 0x149   : > { %v1566_v8 = vadd.f32 %v3299_v52, %v1395_v48  ;;  %v3317_v23 = vpop.f32.mrf.mxu1  ;;  %v4104_v2 = vadd.f32 %v1705_v5, %v1563_v35 }
 0x14a   : > { %v1532_v28 = vpop.f32.mrf.mxu0 }
 0x14b   : > { %v1564_v54 = vadd.f32 %v1532_v28, %v1393_v32  ;;  %v1724_v17 = vpop.f32.mrf.mxu1  ;;  %v4106_v9 = vadd.f32 %v3313_v60, %v1566_v8 }
 0x14c   : > { %v3302_v36 = vpop.f32.mrf.mxu0 }
 0x14d   : > { %v1569_v3 = vadd.f32 %v3302_v36, %v1398_v41  ;;  %v3336_v10 = vpop.f32.mrf.mxu1  ;;  %v4108_v19 = vadd.f32 %v1708_v24, %v1564_v54 }
 0x14e   : > { %v1545_v25 = vpop.f32.mrf.mxu0 }
 0x14f   : > { %v1567_v27 = vadd.f32 %v1545_v25, %v1396_v49  ;;  %v2020_v37 = vpop.f32.mrf.mxu1  ;;  %v4110_v13 = vadd.f32 %v3316_v29, %v1569_v3 }
 0x150   : > { %v3303_v34 = vpop.f32.mrf.mxu0 }
 0x151   : > { %v3337_v4 = vpop.f32.mrf.mxu1  ;;  %v4112_v16 = vadd.f32 %v1721_v55, %v1567_v27 }
 0x152   : > { %v1548_v56 = vpop.f32.mrf.mxu0 }
 0x153   : > { %v1568_v18 = vadd.f32 %v1548_v56, %v1397_v26  ;;  %v2023_v14 = vpop.f32.mrf.mxu1 }
 0x154   : > { %v3322_v12 = vpop.f32.mrf.mxu0 }
 0x155   : > { %v4114_v11 = vpop.f32.mrf.mxu1  ;;  %v4116_v43 = vadd.f32 %v1724_v17, %v1568_v18  ;;  %v1861_v8 = vadd.f32 %v3322_v12, %v4094_v20 }
 0x156   : > { %v1813_v48 = vpop.f32.mrf.mxu0 }
 0x157   : > { %v4118_v30 = vpop.f32.mrf.mxu1  ;;  %v1859_v54 = vadd.f32 %v1813_v48, %v4096_v46  ;;  %v2068_v25 = vadd.f32 %v3336_v10, %v1861_v8 }
 0x158   : > { %v3323_v33 = vpop.f32.mrf.mxu0 }
 0x159   : > { %v4120_v58 = vpop.f32.mrf.mxu1  ;;  %v1862_v3 = vadd.f32 %v3323_v33, %v4098_v62 }
 0x15a   : > { %v1816_v32 = vpop.f32.mrf.mxu0 }
 0x15b   : > { %v4122_v42 = vpop.f32.mrf.mxu1  ;;  %v1860_v56 = vadd.f32 %v1816_v32, %v4100_v7 }
 0x15c   : > { %v3326_v15 = vpop.f32.mrf.mxu0 }
 0x15d   : > { %v4124_v53 = vpop.f32.mrf.mxu1  ;;  %v1865_v46 = vadd.f32 %v3326_v15, %v4102_v0  ;;  %v2067_v10 = vadd.f32 %v2023_v14, %v1860_v56  ;;  %v4169_v14 = vld [vmem:[%s4236_s2] ss:$0 sm:$0xff] }
 0x15e   : > { %v1829_v41 = vpop.f32.mrf.mxu0 }
 0x15f   : > { %v4126_v39 = vpop.f32.mrf.mxu1  ;;  %v1863_v48 = vadd.f32 %v1829_v41, %v4104_v2  ;;  %v2072_v0 = vadd.f32 %v4114_v11, %v1865_v46 }
 0x160   : > { %v3327_v38 = vpop.f32.mrf.mxu0 }
 0x161   : > { %v3345_v49 = vpop.f32.mrf.mxu1  ;;  %v2070_v2 = vadd.f32 %v4118_v30, %v1863_v48 }
 0x162   : > { %v1832_v1 = vpop.f32.mrf.mxu0  ;;  %v2066_v49 = vadd.f32 %v2020_v37, %v1859_v54 }
 0x163   : > { %v4128_v22 = vpop.f32.mrf.mxu1 }
 0x164   : > { %v3330_v61 = vpop.f32.mrf.mxu0 }
 0x165   : > { %v3364_v45 = vpop.f32.mrf.mxu1 }
 0x166   : > { %v4130_v50 = vpop.f32.mrf.mxu0 }
 0x167   : > { %v2360_v47 = vpop.f32.mrf.mxu1 }
 0x168   : > { %v3331_v26 = vpop.f32.mrf.mxu0 }
 0x169   : > { %v3365_v40 = vpop.f32.mrf.mxu1 }
 0x16a   : > { %v4132_v51 = vpop.f32.mrf.mxu0 }
 0x16b   : > { %v4134_v5 = vpop.f32.mrf.mxu1 }
 0x16c   : > { %v3350_v57 = vpop.f32.mrf.mxu0 }
 0x16d   : > { %v4136_v59 = vpop.f32.mrf.mxu1  ;;  %v2275_v18 = vadd.f32 %v3350_v57, %v2068_v25 }
 0x16e   : > { %v2227_v60 = vpop.f32.mrf.mxu0 }
 0x16f   : > { %v4138_v31 = vpop.f32.mrf.mxu1  ;;  %v2273_v12 = vadd.f32 %v2227_v60, %v2066_v49  ;;  %v2408_v33 = vadd.f32 %v3364_v45, %v2275_v18 }
 0x170   : > { %v3351_v6 = vpop.f32.mrf.mxu0 }
 0x171   : > { %v4140_v24 = vpop.f32.mrf.mxu1  ;;  %v2406_v57 = vadd.f32 %v2360_v47, %v2273_v12 }
 0x172   : > { %v2230_v44 = vpop.f32.mrf.mxu0 }
 0x173   : > { %v4142_v63 = vpop.f32.mrf.mxu1  ;;  %v2274_v32 = vadd.f32 %v2230_v44, %v2067_v10 }
 0x174   : > { %v3354_v29 = vpop.f32.mrf.mxu0 }
 0x175   : > { %v4144_v21 = vpop.f32.mrf.mxu1  ;;  %v2279_v47 = vadd.f32 %v3354_v29, %v2072_v0 }
 0x176   : > { %4238 = vst [vmem:[#allocation2_spill] sm:$0xff] %v4144_v21  ;;  %v2243_v35 = vpop.f32.mrf.mxu0  ;;  %v1866_v21 = vadd.f32 %v3327_v38, %v4106_v9 }
 0x177   : > { %v4146_v55 = vpop.f32.mrf.mxu1  ;;  %v2277_v44 = vadd.f32 %v2243_v35, %v2070_v2 }
 0x178   : > { %4239 = vst [vmem:[#allocation3_spill] sm:$0xff] %v4146_v55  ;;  %v3355_v52 = vpop.f32.mrf.mxu0 }
 0x179   : > { %v3373_v23 = vpop.f32.mrf.mxu1 }
 0x17a   : > { %v2246_v28 = vpop.f32.mrf.mxu0  ;;  %v2069_v23 = vadd.f32 %v3337_v4, %v1862_v3  ;;  %v1864_v4 = vadd.f32 %v1832_v1, %v4108_v19  ;;  %v2073_v19 = vadd.f32 %v4120_v58, %v1866_v21  ;;  %v2407_v3 = vadd.f32 %v4134_v5, %v2274_v32 }
 0x17b   : > { %v4150_v17 = vpop.f32.mrf.mxu1 }
 0x17c   : > { %4240 = vst [vmem:[#allocation4_spill] sm:$0xff] %v4150_v17  ;;  %v4152_v36 = vpop.f32.mrf.mxu0  ;;  %v2276_v62 = vadd.f32 %v3351_v6, %v2069_v23  ;;  %v1869_v6 = vadd.f32 %v3330_v61, %v4110_v13  ;;  %v2071_v56 = vadd.f32 %v4122_v42, %v1864_v4 }
 0x17d   : > { %v3392_v27 = vpop.f32.mrf.mxu1 }
 0x17e   : > { %v4155_v34 = vpop.f32.mrf.mxu0  ;;  %v2409_v38 = vadd.f32 %v3365_v40, %v2276_v62  ;;  %v2280_v40 = vadd.f32 %v3355_v52, %v2073_v19  ;;  %v2278_v18 = vadd.f32 %v2246_v28, %v2071_v56  ;;  %v2076_v49 = vadd.f32 %v4124_v53, %v1869_v6 }
 0x17f   : > { %v2648_v26 = vpop.f32.mrf.mxu1  ;;  %v1868_v53 = vadd.f32 %v4132_v51, %v4116_v43 }
 0x180   : > { %v3359_v20 = vpop.f32.mrf.mxu0  ;;  %v2283_v28 = vadd.f32 %v4152_v36, %v2076_v49  ;;  %v2413_v46 = vadd.f32 %v4140_v24, %v2280_v40  ;;  %v2411_v43 = vadd.f32 %v4142_v63, %v2278_v18 }
 0x181   : > { %v3393_v55 = vpop.f32.mrf.mxu1  ;;  %v2075_v4 = vadd.f32 %v4128_v22, %v1868_v53 }
 0x182   : > { %v4160_v17 = vpop.f32.mrf.mxu0 }
 0x183   : > { %v2651_v8 = vpop.f32.mrf.mxu1 }
 0x184   : > { %v3378_v7 = vpop.f32.mrf.mxu0 }
 0x185   : > { %v2563_v37 = vadd.f32 %v3378_v7, %v2408_v33  ;;  %v3396_v60 = vpop.f32.mrf.mxu1 }
 0x186   : > { %v2515_v15 = vpop.f32.mrf.mxu0 }
 0x187   : > { %v2696_v41 = vadd.f32 %v3392_v27, %v2563_v37  ;;  %v2561_v9 = vadd.f32 %v2515_v15, %v2406_v57  ;;  %v2664_v45 = vpop.f32.mrf.mxu1  ;;  %v1867_v27 = vadd.f32 %v4130_v50, %v4112_v16  ;;  %v2412_v16 = vadd.f32 %v4136_v59, %v2279_v47 }
 0x188   : > { %v3379_v11 = vpop.f32.mrf.mxu0  ;;  %v2410_v50 = vadd.f32 %v4138_v31, %v2277_v44 }
 0x189   : > { %v2714_v30 = vadd.f32 %v4169_v14, %v2696_v41  ;;  %v2694_v1 = vadd.f32 %v2648_v26, %v2561_v9  ;;  %v2564_v54 = vadd.f32 %v3379_v11, %v2409_v38  ;;  %v3397_v25 = vpop.f32.mrf.mxu1  ;;  %v2074_v33 = vadd.f32 %v4126_v39, %v1867_v27  ;;  %v4241_v39 = vld [vmem:[#allocation2_spill] sm:$0xff]  ;;  %v4242_v11 = vld [vmem:[#allocation3_spill] sm:$0xff] }
 0x18a   : > { %v2518_v13 = vpop.f32.mrf.mxu0  ;;  %v2282_v38 = vadd.f32 %v4160_v17, %v2075_v4 }
 0x18b   : > { %v2725_v61 = vmax.f32 %v2714_v30, 0.0  ;;  %v2712_v58 = vadd.f32 %v4169_v14, %v2694_v1  ;;  %v2697_v29 = vadd.f32 %v3393_v55, %v2564_v54  ;;  %v2562_v21 = vadd.f32 %v2518_v13, %v2407_v3  ;;  %v2667_v35 = vpop.f32.mrf.mxu1 }
 0x18c   : > { %v3382_v42 = vpop.f32.mrf.mxu0  ;;  %v2281_v57 = vadd.f32 %v4155_v34, %v2074_v33 }
 0x18d   : > { %v3057_v5 = vpack.c.bf16 %v2725_v61, %v2725_v61  ;;  %v2723_v52 = vmax.f32 %v2712_v58, 0.0  ;;  %v2715_v55 = vadd.f32 %v4169_v14, %v2697_v29  ;;  %v2695_v26 = vadd.f32 %v2651_v8, %v2562_v21  ;;  %v3400_v20 = vpop.f32.mrf.mxu1  ;;  %v4243_v58 = vld [vmem:[#allocation4_spill] sm:$0xff] }
 0x18e   : > { %v2567_v12 = vadd.f32 %v3382_v42, %v2412_v16  ;;  %v2531_v23 = vpop.f32.mrf.mxu0  ;;  %v2414_v30 = vadd.f32 %v4242_v11, %v2281_v57  ;;  %v2415_v29 = vadd.f32 %v4243_v58, %v2282_v38 }
 0x18f   : > { %2782 = vst.msk [vmem:[%s4184_s29 + $0x8] sm:$0xf] %vm2779_vm8, %v3057_v5  ;;  %v3055_v59 = vpack.c.bf16 %v2723_v52, %v2723_v52  ;;  %v2726_v31 = vmax.f32 %v2715_v55, 0.0  ;;  %v2713_v48 = vadd.f32 %v4169_v14, %v2695_v26  ;;  %v2565_v62 = vadd.f32 %v2531_v23, %v2410_v50  ;;  %v2680_v10 = vpop.f32.mrf.mxu1 }
 0x190   : > { %v2700_v8 = vadd.f32 %v3396_v60, %v2567_v12  ;;  %v3383_v7 = vpop.f32.mrf.mxu0  ;;  %v2416_v60 = vadd.f32 %v4241_v39, %v2283_v28 }
 0x191   : > { %2780 = vst.msk [vmem:[%s4184_s29] sm:$0xf] %vm2779_vm8, %v3055_v59  ;;  %v3058_v51 = vpack.c.bf16 %v2726_v31, %v2726_v31  ;;  %v2724_v36 = vmax.f32 %v2713_v48, 0.0  ;;  %v2698_v24 = vadd.f32 %v2664_v45, %v2565_v62  ;;  %v2568_v32 = vadd.f32 %v3383_v7, %v2413_v46  ;;  %v3401_v37 = vpop.f32.mrf.mxu1 }
 0x192   : > { %v2718_v0 = vadd.f32 %v4169_v14, %v2700_v8  ;;  %v2534_v2 = vpop.f32.mrf.mxu0 }
 0x193   : > { %2783 = vst.msk [vmem:[%s4184_s29 + $0xc] sm:$0xf] %vm2779_vm8, %v3058_v51  ;;  %v3056_v63 = vpack.c.bf16 %v2724_v36, %v2724_v36  ;;  %v2716_v15 = vadd.f32 %v4169_v14, %v2698_v24  ;;  %v2701_v41 = vadd.f32 %v3397_v25, %v2568_v32  ;;  %v2566_v9 = vadd.f32 %v2534_v2, %v2411_v43  ;;  %v2683_v50 = vpop.f32.mrf.mxu1 }
 0x194   : > { %v2729_v45 = vmax.f32 %v2718_v0, 0.0  ;;  %v3386_v6 = vpop.f32.mrf.mxu0 }
 0x195   : > { %2781 = vst.msk [vmem:[%s4184_s29 + $0x4] sm:$0xf] %vm2779_vm8, %v3056_v63  ;;  %v2727_v22 = vmax.f32 %v2716_v15, 0.0  ;;  %v2719_v34 = vadd.f32 %v4169_v14, %v2701_v41  ;;  %v2699_v47 = vadd.f32 %v2667_v35, %v2566_v9  ;;  %v2571_v44 = vadd.f32 %v3386_v6, %v2416_v60 }
 0x196   : > { %v3061_v19 = vpack.c.bf16 %v2729_v45, %v2729_v45  ;;  %v2547_v1 = vpop.f32.mrf.mxu0 }
 0x197   : > { %v3059_v54 = vpack.c.bf16 %v2727_v22, %v2727_v22  ;;  %v2730_v3 = vmax.f32 %v2719_v34, 0.0  ;;  %v2717_v25 = vadd.f32 %v4169_v14, %v2699_v47  ;;  %v2704_v17 = vadd.f32 %v3400_v20, %v2571_v44 }
 0x198   : > { %2786 = vst.msk [vmem:[%s4184_s29 + $0x18] sm:$0xf] %vm2779_vm8, %v3061_v19  ;;  %v2569_v27 = vadd.f32 %v2547_v1, %v2414_v30  ;;  %v3387_v40 = vpop.f32.mrf.mxu0 }
 0x199   : > { %2784 = vst.msk [vmem:[%s4184_s29 + $0x10] sm:$0xf] %vm2779_vm8, %v3059_v54  ;;  %v3062_v56 = vpack.c.bf16 %v2730_v3, %v2730_v3  ;;  %v2728_v13 = vmax.f32 %v2717_v25, 0.0  ;;  %v2722_v61 = vadd.f32 %v4169_v14, %v2704_v17 }
 0x19a   : > { %v2702_v21 = vadd.f32 %v2680_v10, %v2569_v27  ;;  %v2550_v35 = vpop.f32.mrf.mxu0 }
 0x19b   : > { %2787 = vst.msk [vmem:[%s4184_s29 + $0x1c] sm:$0xf] %vm2779_vm8, %v3062_v56  ;;  %v3060_v18 = vpack.c.bf16 %v2728_v13, %v2728_v13  ;;  %v2733_v49 = vmax.f32 %v2722_v61, 0.0  ;;  %v2570_v16 = vadd.f32 %v2550_v35, %v2415_v29 }
 0x19c   : > { %v2720_v42 = vadd.f32 %v4169_v14, %v2702_v21 }
 0x19d   : > { %2785 = vst.msk [vmem:[%s4184_s29 + $0x14] sm:$0xf] %vm2779_vm8, %v3060_v18  ;;  %v3065_v5 = vpack.c.bf16 %v2733_v49, %v2733_v49  ;;  %v2703_v52 = vadd.f32 %v2683_v50, %v2570_v16 }
 0x19e   : > { %v2731_v55 = vmax.f32 %v2720_v42, 0.0 }
 0x19f   : > { %2790 = vst.msk [vmem:[%s4184_s29 + $0x28] sm:$0xf] %vm2779_vm8, %v3065_v5  ;;  %v2721_v26 = vadd.f32 %v4169_v14, %v2703_v52 }
 0x1a0   : > { %v3063_v20 = vpack.c.bf16 %v2731_v55, %v2731_v55 }
 0x1a1   : > { %v2732_v53 = vmax.f32 %v2721_v26, 0.0 }
 0x1a2   : > { %2788 = vst.msk [vmem:[%s4184_s29 + $0x20] sm:$0xf] %vm2779_vm8, %v3063_v20 }
 0x1a3   : > { %v3064_v28 = vpack.c.bf16 %v2732_v53, %v2732_v53 }
 0x1a5   : > { %2789 = vst.msk [vmem:[%s4184_s29 + $0x24] sm:$0xf] %vm2779_vm8, %v3064_v28 }
 0x1a6 PF: > { %s13_s12 = sadd.s32 1, %s3480_s12  }
 0x1a7   : > { %p10_p4 = scmp.ge.s32.totalorder %s13_s12, 4  }
 0x1a9   :  { %12 = sbr.rel (!%p10_p4) target bundleno = 1 (0x1), region = 77 }

// kernel: _lambda_.19
= control target key start
LH: loop header
LB: loop body
LE: loop exit
PB: predicated region body
PF: predicated region fallthrough
CT: control target
= control target key end

     0   :  { %vm51_vm0 = vcmask 519168   ;;  %s125_s0 = inlined_call_operand.vmem [shape: bf16[32,64], index: 0, kind: input, shape index: {}]   ;;  %s126_s1 = inlined_call_operand.vmem [shape: bf16[32,64], index: 1, kind: input, shape index: {}]   ;;  %s127_s2 = inlined_call_operand.vmem [shape: bf16[32,64], index: 2, kind: output, shape index: {}]  }
   0x1   :  { %v69_v0 = vld [vmem:[%s125_s0] sm:$0xff]   ;;  %v84_v2 = vld [vmem:[%s125_s0 + $0x8] sm:$0xff]  }
   0x2   :  { %v77_v1 = vld [vmem:[%s126_s1] sm:$0xff]   ;;  %v70_v3 = vunpack.c.l.bf16 %v69_v0  ;;  %v71_v5 = vunpack.c.h.bf16 %v69_v0  ;;  %v85_v7 = vld [vmem:[%s126_s1 + $0x8] sm:$0xff]   ;;  %v74_v8 = vunpack.c.l.bf16 %v84_v2  ;;  %v75_v10 = vunpack.c.h.bf16 %v84_v2 }
   0x3   :  { %v78_v4 = vunpack.c.l.bf16 %v77_v1  ;;  %v79_v6 = vunpack.c.h.bf16 %v77_v1  ;;  %v82_v9 = vunpack.c.l.bf16 %v85_v7  ;;  %v83_v11 = vunpack.c.h.bf16 %v85_v7 }
   0x5   :  { %v27_v12 = vadd.f32 %v78_v4, %v70_v3  ;;  %v28_v13 = vadd.f32 %v79_v6, %v71_v5  ;;  %v29_v14 = vadd.f32 %v82_v9, %v74_v8  ;;  %v30_v15 = vadd.f32 %v83_v11, %v75_v10 }
   0x7   :  { %v31_v16 = vmax.f32 %v27_v12, 0.0  ;;  %v32_v17 = vmax.f32 %v28_v13, 0.0  ;;  %v33_v18 = vmax.f32 %v29_v14, 0.0  ;;  %v34_v19 = vmax.f32 %v30_v15, 0.0 }
   0x9   :  { %v64_v20 = vpack.c.bf16 %v31_v16, %v31_v16  ;;  %v65_v21 = vpack.c.bf16 %v32_v17, %v32_v17  ;;  %v66_v22 = vpack.c.bf16 %v33_v18, %v33_v18  ;;  %v67_v23 = vpack.c.bf16 %v34_v19, %v34_v19 }
   0xb   :  { %52 = vst.msk [vmem:[%s127_s2] sm:$0xf] %vm51_vm0, %v64_v20  ;;  %53 = vst.msk [vmem:[%s127_s2 + $0x4] sm:$0xf] %vm51_vm0, %v65_v21 }
   0xc   :  { %54 = vst.msk [vmem:[%s127_s2 + $0x8] sm:$0xf] %vm51_vm0, %v66_v22  ;;  %55 = vst.msk [vmem:[%s127_s2 + $0xc] sm:$0xf] %vm51_vm0, %v67_v23 }

// kernel: _lambda_.18
= control target key start
LH: loop header
LB: loop body
LE: loop exit
PB: predicated region body
PF: predicated region fallthrough
CT: control target
= control target key end

     0   :  { %s1575_s12 = smov 0   ;;  %s1778_s0 = inlined_call_operand.vmem [shape: bf16[2,42,64], index: 0, kind: input, shape index: {}]   ;;  %s1779_s1 = inlined_call_operand.vmem [shape: bf16[9,64,64], index: 1, kind: input, shape index: {}]   ;;  %s1780_s2 = inlined_call_operand.vmem [shape: f32[1,64], index: 2, kind: input, shape index: {}]   ;;  %s1781_s3 = inlined_call_operand.vmem [shape: bf16[2,24,64], index: 3, kind: output, shape index: {}]  }
   0x1 LB: > { %s1179_s13 = sadd.s32 4294967295, %s1553_s12   ;;  %p1183_p0 = scmp.ge.s32.totalorder %s1553_s12, 1  ;;  %s1553_s12 = sphi %s1575_s12, %s13_s12  }
   0x2   : > { %p137_p1 = scmp.lt.s32.totalorder %s1553_s12, 3 }
   0x4   : > { %p138_p2 = pnand %p1183_p0, %p137_p1 }
   0x5   : > { %p161_p3 = scmp.lt.s32.totalorder (!%p138_p2), %s1179_s13, 1 }
   0x6   : > { %141 = sbr.rel (%p138_p2) target bundleno = 298 (0x12a), region = 32 }
   0xb   : > { %v1498_v0 = vld [vmem:[%s1779_s1 + $0x38] sm:$0xff]   ;;  %v1500_v2 = vld [vmem:[%s1779_s1 + $0x30] sm:$0xff]   ;;  %s1783_s13 = smov (!%p161_p3, %s1179_s13), 1  ;;  %v1502_v4 = vld [vmem:[%s1779_s1 + $0x28] sm:$0xff]   ;;  %vm243_vm0 = vcmask 523264   ;;  %vm389_vm2 = vcmask 1046528  }
   0xc   : > { %v1499_v1 = vld [vmem:[%s1779_s1 + $0x18] sm:$0xff]   ;;  %1380 = vmatprep.subr.bf16.mxu0 %v1498_v0  ;;  %v1501_v3 = vld [vmem:[%s1779_s1 + $0x10] sm:$0xff]   ;;  %s1488_s24 = smul.u32 24, %s1783_s13  ;;  %v1503_v5 = vld [vmem:[%s1779_s1 + $0x8] sm:$0xff]   ;;  %vm203_vm1 = vsmask.f32 7424 }
   0xd   : > { %1392 = vmatprep.subr.bf16.mxu1 %v1499_v1  ;;  %1381 = vmatpush3.bf16.msra.mxu0 %v1498_v0  ;;  %v1504_v6 = vld [vmem:[%s1779_s1 + $0x20] sm:$0xff]   ;;  %v1509_v16 = vld [vmem:[%s1779_s1 + $0x58] sm:$0xff]   ;;  %v1511_v25 = vld [vmem:[%s1779_s1 + $0x50] sm:$0xff]   ;;  %vm491_vm3 = vcmask 1044480   ;;  %vm589_vm4 = vsmask.f32 4352 }
   0xe   : > { %1393 = vmatpush3.bf16.msra.mxu1 %v1499_v1  ;;  %1382 = vmatprep.subr.bf16.mxu0 %v1500_v2  ;;  %s1607_s29 = scalar_lea.vmem %s1778_s0, %s1488_s24  ;;  %v1505_v10 = vld [vmem:[%s1779_s1] sm:$0xff]   ;;  %v1510_v20 = vld [vmem:[%s1779_s1 + $0x78] sm:$0xff]   ;;  %v1512_v27 = vld [vmem:[%s1779_s1 + $0x70] sm:$0xff]   ;;  %vm803_vm5 = vcmask 1045504   ;;  %vm901_vm6 = vsmask.f32 5376 }
   0xf   : > { %1394 = vmatprep.subr.bf16.mxu1 %v1501_v3  ;;  %v172_v7 = vld [vmem:[%s1607_s29] sm:$0xf]  ;;  %v1614_v8 = vld [vmem:[%s1607_s29 + $0x4] sm:$0xf]  ;;  %v1617_v9 = vld [vmem:[%s1607_s29 + $0x8] sm:$0xf] }
  0x10   : > { %v183_v11 = vld [vmem:[%s1607_s29 + $0xc] sm:$0x1]  ;;  %v1194_v12 = vcombine.low %v172_v7, %v1614_v8  ;;  %v1202_v23 = vcombine.low %v1617_v9, %v1617_v9  ;;  %v376_v28 = vld [vmem:[%s1607_s29] sm:$0xe]  ;;  %v1518_v46 = vld [vmem:[%s1779_s1 + $0x98] sm:$0xff]   ;;  %v1263_v60 = vcombine.low %v1614_v8, %v1617_v9  ;;  %s1489_s16 = smul.u32 12, %s1783_s13 }
  0x11   : > { %1383 = vmatpush3.bf16.msra.mxu0 %v1500_v2  ;;  %v1625_v13 = vcombine.low %v1617_v9, %v183_v11  ;;  %v1217_v29 = vcombine.low %v376_v28, %v1614_v8  ;;  %v474_v31 = vld [vmem:[%s1607_s29] sm:$0x8]  ;;  %v475_v32 = vld [vmem:[%s1607_s29 + $0xc] sm:$0x7]  ;;  %v1521_v51 = vld [vmem:[%s1779_s1 + $0xb8] sm:$0xff]   ;;  %vm1120_vm7 = vcmask 519168  }
  0x12   : > { %1395 = vmatpush3.bf16.msra.mxu1 %v1501_v3  ;;  %1384 = vmatprep.subr.bf16.mxu0 %v1502_v4  ;;  %v205_v14 = vshrl.u32 %v1194_v12, 16  ;;  %v207_v15 = vshll.u32 %v1194_v12, 16  ;;  %v1513_v33 = vld [vmem:[%s1779_s1 + $0x48] sm:$0xff]   ;;  %v1232_v34 = vcombine.low %v474_v31, %v1614_v8  ;;  %v1233_v35 = vcombine.low %v1617_v9, %v475_v32  ;;  %v1515_v42 = vld [vmem:[%s1779_s1 + $0x40] sm:$0xff]   ;;  %v1522_v54 = vld [vmem:[%s1779_s1 + $0x90] sm:$0xff]   ;;  %s170_s21 = scalar_lea.vmem %s1781_s3, %s1489_s16 }
  0x13   : > { %1396 = vmatprep.subr.bf16.mxu1 %v1503_v5  ;;  %1400 = vmatprep.mubr.msk.bf16.mxu1 %vm243_vm0, %v1194_v12  ;;  %v212_v17 = vshll.u32 %v1625_v13, 16  ;;  %v216_v18 = vshrl.u32 %v1625_v13, 16  ;;  %v391_v30 = vrot.slane %v1625_v13, 1  ;;  %v1514_v36 = vld [vmem:[%s1779_s1 + $0x68] sm:$0xff]   ;;  %v390_v37 = vrot.slane %v1217_v29, 1  ;;  %v1516_v45 = vld [vmem:[%s1779_s1 + $0x60] sm:$0xff]  }
  0x14   : > { %v209_v19 = vrot.slane %v207_v15, 1  ;;  %v492_v38 = vrot.slane %v1232_v34, 3  ;;  %v493_v39 = vrot.slane %v1233_v35, 3  ;;  %v591_v41 = vshrl.u32 %v1232_v34, 16  ;;  %v1675_v47 = vld [vmem:[%s1607_s29 + $0xc] sm:$0xf] }
  0x15   : > { %1385 = vmatpush3.bf16.msra.mxu0 %v1502_v4  ;;  %v214_v21 = vrot.slane %v212_v17, 1  ;;  %v392_v40 = vsel %vm389_vm2, %v390_v37, %v391_v30  ;;  %v594_v44 = vshll.u32 %v1232_v34, 16  ;;  %v1248_v50 = vcombine.low %v1617_v9, %v1675_v47  ;;  %v1523_v55 = vld [vmem:[%s1779_s1 + $0xb0] sm:$0xff]   ;;  %v1524_v61 = vld [vmem:[%s1779_s1 + $0x88] sm:$0xff]   ;;  %v780_v62 = vld [vmem:[%s1607_s29 + $0x4] sm:$0xc] }
  0x16   : > { %1397 = vmatpush3.bf16.msra.mxu1 %v1503_v5  ;;  %1386 = vmatprep.subr.bf16.mxu0 %v1504_v6  ;;  %v210_v22 = vor.u32 %v209_v19, %v205_v14  ;;  %v494_v43 = vsel %vm491_vm3, %v492_v38, %v493_v39  ;;  %v593_v48 = vrot.slane %v591_v41, 3  ;;  %v1525_v63 = vld [vmem:[%s1779_s1 + $0xa8] sm:$0xff]   ;;  %v888_v4 = vld [vmem:[%s1607_s29 + $0x10] sm:$0x7]  ;;  %v1526_v11 = vld [vmem:[%s1779_s1 + $0x80] sm:$0xff]  }
  0x17   : > { %1398 = vmatprep.subr.bf16.mxu1 %v1505_v10  ;;  %v218_v24 = vor.u32 %v216_v18, %v214_v21  ;;  %v596_v49 = vrot.slane %v594_v44, 4  ;;  %v599_v52 = vshrl.u32 %v1248_v50, 16  ;;  %v602_v53 = vshll.u32 %v1248_v50, 16  ;;  %v1700_v1 = vld [vmem:[%s1607_s29 + $0x8] sm:$0xf]  ;;  %v1527_v12 = vld [vmem:[%s1779_s1 + $0xa0] sm:$0xff]  }
  0x18   : > { %v215_v26 = vsel %vm203_vm1, %v210_v22, %v214_v21  ;;  %v782_v2 = vld [vmem:[%s1607_s29 + $0xc] sm:$0xf]  ;;  %v1279_v3 = vcombine.low %v780_v62, %v1700_v1  ;;  %v1529_v18 = vld [vmem:[%s1779_s1 + $0xd8] sm:$0xff]   ;;  %v1000_v31 = vld [vmem:[%s1607_s29 + $0x4] sm:$0x8] }
  0x19   : > { %1387 = vmatpush3.bf16.msra.mxu0 %v1504_v6  ;;  %1388 = vmatprep.mubr.msk.bf16.mxu0 %vm243_vm0, %v215_v26  ;;  %v597_v56 = vor.u32 %v596_v49, %v593_v48  ;;  %v601_v57 = vrot.slane %v599_v52, 3  ;;  %v604_v58 = vrot.slane %v602_v53, 4  ;;  %v1707_v5 = vcombine.low %v782_v2, %v888_v4  ;;  %v783_v6 = vld [vmem:[%s1607_s29 + $0x10] sm:$0x3]  ;;  %v1532_v19 = vld [vmem:[%s1779_s1 + $0xf8] sm:$0xff]   ;;  %v1535_v29 = vld [vmem:[%s1779_s1 + $0xc8] sm:$0xff]  }
  0x1a   : > { %1399 = vmatpush3.bf16.msra.mxu1 %v1505_v10  ;;  %1404 = vmatprep.subr.bf16.mxu0 %v1509_v16  ;;  %v903_v7 = vshrl.u32 %v1279_v3, 16  ;;  %v906_v8 = vshll.u32 %v1279_v3, 16  ;;  %v1280_v13 = vcombine.low %v782_v2, %v783_v6  ;;  %v804_v21 = vrot.slane %v1279_v3, 2  ;;  %v1534_v26 = vld [vmem:[%s1779_s1 + $0xf0] sm:$0xff]   ;;  %v1537_v32 = vld [vmem:[%s1779_s1 + $0xc0] sm:$0xff]   ;;  %v1542_v35 = vld [vmem:[%s1779_s1 + $0x118] sm:$0xff]  }
  0x1b   : > { %1416 = vmatprep.subr.bf16.mxu1 %v1510_v20  ;;  %v605_v59 = vor.u32 %v604_v58, %v601_v57  ;;  %v911_v9 = vshrl.u32 %v1707_v5, 16  ;;  %v914_v10 = vshll.u32 %v1707_v5, 16  ;;  %v1310_v34 = vcombine.low %v1000_v31, %v1700_v1  ;;  %v1543_v38 = vld [vmem:[%s1779_s1 + $0x110] sm:$0xff]   ;;  %v1545_v41 = vld [vmem:[%s1779_s1 + $0x100] sm:$0xff]  }
  0x1c   : > { %1389 = vmatmul.mubr.msk.bf16.vlgmr.msra.gmra.mxu0 %vm243_vm0, %v218_v24  ;;  %v905_v14 = vrot.slane %v903_v7, 2  ;;  %v908_v15 = vrot.slane %v906_v8, 3  ;;  %v805_v22 = vrot.slane %v1280_v13, 2  ;;  %v1014_v37 = vrot.slane %v1707_v5, 3 }
  0x1d   : > { %1401 = vmatmul.mubr.msk.bf16.vlgmr.msra.gmra.mxu1 %vm243_vm0, %v1202_v23  ;;  %1405 = vmatpush3.bf16.msra.mxu0 %v1509_v16  ;;  %v606_v0 = vsel %vm589_vm4, %v597_v56, %v605_v59  ;;  %v913_v16 = vrot.slane %v911_v9, 2  ;;  %v916_v17 = vrot.slane %v914_v10, 3 }
  0x1e   : > { %1417 = vmatpush3.bf16.msra.mxu1 %v1510_v20  ;;  %1406 = vmatprep.subr.bf16.mxu0 %v1511_v25  ;;  %v1264_v20 = vcombine.low %v1675_v47, %v1675_v47  ;;  %v909_v23 = vor.u32 %v908_v15, %v905_v14 }
  0x1f   : > { %1418 = vmatprep.subr.bf16.mxu1 %v1512_v27  ;;  %1412 = vmatprep.mubr.msk.bf16.mxu0 %vm243_vm0, %v392_v40  ;;  %v917_v24 = vor.u32 %v916_v17, %v913_v16  ;;  %v1544_v40 = vld [vmem:[%s1779_s1 + $0x108] sm:$0xff]  }
  0x20   : > { %1424 = vmatprep.mubr.msk.bf16.mxu1 %vm243_vm0, %v494_v43 }
  0x21   : > { %1407 = vmatpush3.bf16.msra.mxu0 %v1511_v25  ;;  %v1533_v25 = vld [vmem:[%s1779_s1 + $0xd0] sm:$0xff]   ;;  %v918_v28 = vsel %vm901_vm6, %v909_v23, %v917_v24 }
  0x22   : > { %1419 = vmatpush3.bf16.msra.mxu1 %v1512_v27  ;;  %1408 = vmatprep.subr.bf16.mxu0 %v1513_v33  ;;  %v806_v27 = vsel %vm803_vm5, %v804_v21, %v805_v22 }
  0x23   : > { %1420 = vmatprep.subr.bf16.mxu1 %v1514_v36 }
  0x25   : > { %1409 = vmatpush3.bf16.msra.mxu0 %v1513_v33  ;;  %v1538_v33 = vld [vmem:[%s1779_s1 + $0xe0] sm:$0xff]  }
  0x26   : > { %1421 = vmatpush3.bf16.msra.mxu1 %v1514_v36  ;;  %1410 = vmatprep.subr.bf16.mxu0 %v1515_v42  ;;  %v1013_v36 = vrot.slane %v1310_v34, 3 }
  0x27   : > { %1422 = vmatprep.subr.bf16.mxu1 %v1516_v45 }
  0x29   : > { %1411 = vmatpush3.bf16.msra.mxu0 %v1515_v42 }
  0x2a   : > { %1423 = vmatpush3.bf16.msra.mxu1 %v1516_v45  ;;  %1428 = vmatprep.subr.bf16.mxu0 %v1518_v46 }
  0x2b   : > { %1440 = vmatprep.subr.bf16.mxu1 %v1521_v51 }
  0x2c   : > { %1413 = vmatmul.mubr.msk.bf16.vlgmr.msra.gmra.mxu0 %vm243_vm0, %v391_v30  ;;  %v1536_v30 = vld [vmem:[%s1779_s1 + $0xe8] sm:$0xff]  }
  0x2d   : > { %1425 = vmatmul.mubr.msk.bf16.vlgmr.msra.gmra.mxu1 %vm243_vm0, %v493_v39  ;;  %1429 = vmatpush3.bf16.msra.mxu0 %v1518_v46  ;;  %v1015_v39 = vsel %vm491_vm3, %v1013_v36, %v1014_v37 }
  0x2e   : > { %1441 = vmatpush3.bf16.msra.mxu1 %v1521_v51  ;;  %1430 = vmatprep.subr.bf16.mxu0 %v1522_v54 }
  0x2f   : > { %1442 = vmatprep.subr.bf16.mxu1 %v1523_v55  ;;  %1436 = vmatprep.mubr.msk.bf16.mxu0 %vm243_vm0, %v606_v0 }
  0x30   : > { %1448 = vmatprep.mubr.msk.bf16.mxu1 %vm243_vm0, %v1263_v60 }
  0x31   : > { %1431 = vmatpush3.bf16.msra.mxu0 %v1522_v54 }
  0x32   : > { %1443 = vmatpush3.bf16.msra.mxu1 %v1523_v55  ;;  %1432 = vmatprep.subr.bf16.mxu0 %v1524_v61 }
  0x33   : > { %1444 = vmatprep.subr.bf16.mxu1 %v1525_v63 }
  0x35   : > { %1433 = vmatpush3.bf16.msra.mxu0 %v1524_v61 }
  0x36   : > { %1445 = vmatpush3.bf16.msra.mxu1 %v1525_v63  ;;  %1434 = vmatprep.subr.bf16.mxu0 %v1526_v11 }
  0x37   : > { %1446 = vmatprep.subr.bf16.mxu1 %v1527_v12 }
  0x39   : > { %1435 = vmatpush3.bf16.msra.mxu0 %v1526_v11 }
  0x3a   : > { %1447 = vmatpush3.bf16.msra.mxu1 %v1527_v12  ;;  %1452 = vmatprep.subr.bf16.mxu0 %v1529_v18 }
  0x3b   : > { %1464 = vmatprep.subr.bf16.mxu1 %v1532_v19 }
  0x3c   : > { %1437 = vmatmul.mubr.msk.bf16.vlgmr.msra.gmra.mxu0 %vm243_vm0, %v605_v59 }
  0x3d   : > { %1449 = vmatmul.mubr.msk.bf16.vlgmr.msra.gmra.mxu1 %vm243_vm0, %v1264_v20  ;;  %1453 = vmatpush3.bf16.msra.mxu0 %v1529_v18 }
  0x3e   : > { %1465 = vmatpush3.bf16.msra.mxu1 %v1532_v19  ;;  %1454 = vmatprep.subr.bf16.mxu0 %v1533_v25 }
  0x3f   : > { %1466 = vmatprep.subr.bf16.mxu1 %v1534_v26  ;;  %1460 = vmatprep.mubr.msk.bf16.mxu0 %vm243_vm0, %v806_v27 }
  0x40   : > { %1472 = vmatprep.mubr.msk.bf16.mxu1 %vm243_vm0, %v918_v28  ;;  %v1317_v28 = vld [vmem:[%s1780_s2] ss:$0 sm:$0xff] }
  0x41   : > { %1455 = vmatpush3.bf16.msra.mxu0 %v1533_v25 }
  0x42   : > { %1467 = vmatpush3.bf16.msra.mxu1 %v1534_v26  ;;  %1456 = vmatprep.subr.bf16.mxu0 %v1535_v29 }
  0x43   : > { %1468 = vmatprep.subr.bf16.mxu1 %v1536_v30 }
  0x45   : > { %1457 = vmatpush3.bf16.msra.mxu0 %v1535_v29 }
  0x46   : > { %1469 = vmatpush3.bf16.msra.mxu1 %v1536_v30  ;;  %1458 = vmatprep.subr.bf16.mxu0 %v1537_v32 }
  0x47   : > { %1470 = vmatprep.subr.bf16.mxu1 %v1538_v33 }
  0x49   : > { %1459 = vmatpush3.bf16.msra.mxu0 %v1537_v32 }
  0x4a   : > { %1471 = vmatpush3.bf16.msra.mxu1 %v1538_v33  ;;  %1476 = vmatprep.subr.bf16.mxu0 %v1542_v35 }
  0x4c   : > { %1461 = vmatmul.mubr.msk.bf16.vlgmr.msra.gmra.mxu0 %vm243_vm0, %v805_v22 }
  0x4d   : > { %1473 = vmatmul.mubr.msk.bf16.vlgmr.msra.gmra.mxu1 %vm243_vm0, %v917_v24  ;;  %1477 = vmatpush3.bf16.msra.mxu0 %v1542_v35 }
  0x4e   : > { %1484 = vmatprep.mubr.msk.bf16.mxu0 %vm243_vm0, %v1015_v39  ;;  %1478 = vmatprep.subr.bf16.mxu0 %v1543_v38 }
  0x51   : > { %1479 = vmatpush3.bf16.msra.mxu0 %v1543_v38 }
  0x52   : > { %1480 = vmatprep.subr.bf16.mxu0 %v1544_v40 }
  0x55   : > { %1481 = vmatpush3.bf16.msra.mxu0 %v1544_v40 }
  0x56   : > { %1482 = vmatprep.subr.bf16.mxu0 %v1545_v41 }
  0x59   : > { %1483 = vmatpush3.bf16.msra.mxu0 %v1545_v41 }
  0x5c   : > { %1485 = vmatmul.mubr.msk.bf16.vlgmr.msra.gmra.mxu0 %vm243_vm0, %v1014_v37 }
  0xdc   : > { %v1390_v42 = vpop.f32.mrf.mxu0 }
  0xdd   : > { %v1402_v43 = vpop.f32.mrf.mxu1 }
  0xde   : > { %v284_v44 = vpop.f32.mrf.mxu0  ;;  %v371_v0 = vadd.f32 %v1402_v43, %v1390_v42 }
  0xdf   : > { %v362_v45 = vpop.f32.mrf.mxu1 }
  0xe0   : > { %v1391_v46 = vpop.f32.mrf.mxu0  ;;  %v363_v3 = vadd.f32 %v362_v45, %v284_v44 }
  0xe1   : > { %v1403_v47 = vpop.f32.mrf.mxu1 }
  0xe2   : > { %v287_v48 = vpop.f32.mrf.mxu0 }
  0xe3   : > { %v365_v49 = vpop.f32.mrf.mxu1 }
  0xe4   : > { %v366_v10 = vadd.f32 %v365_v49, %v287_v48 }
  0xec   : > { %v1414_v50 = vpop.f32.mrf.mxu0 }
  0xed   : > { %v1426_v51 = vpop.f32.mrf.mxu1  ;;  %v473_v4 = vadd.f32 %v1414_v50, %v371_v0 }
  0xee   : > { %v457_v52 = vpop.f32.mrf.mxu0 }
  0xef   : > { %v559_v53 = vpop.f32.mrf.mxu1  ;;  %v471_v7 = vadd.f32 %v457_v52, %v363_v3  ;;  %v575_v11 = vadd.f32 %v1426_v51, %v473_v4 }
  0xf0   : > { %v1415_v54 = vpop.f32.mrf.mxu0 }
  0xf1   : > { %v1427_v55 = vpop.f32.mrf.mxu1  ;;  %v573_v14 = vadd.f32 %v559_v53, %v471_v7 }
  0xf2   : > { %v460_v56 = vpop.f32.mrf.mxu0 }
  0xf3   : > { %v562_v57 = vpop.f32.mrf.mxu1  ;;  %v472_v15 = vadd.f32 %v460_v56, %v366_v10 }
  0xf5   : > { %v574_v18 = vadd.f32 %v562_v57, %v472_v15 }
  0xfc   : > { %v1438_v58 = vpop.f32.mrf.mxu0 }
  0xfd   : > { %v1450_v59 = vpop.f32.mrf.mxu1  ;;  %v687_v16 = vadd.f32 %v1438_v58, %v575_v11 }
  0xfe   : > { %v671_v60 = vpop.f32.mrf.mxu0 }
  0xff   : > { %v763_v61 = vpop.f32.mrf.mxu1  ;;  %v685_v17 = vadd.f32 %v671_v60, %v573_v14  ;;  %v779_v19 = vadd.f32 %v1450_v59, %v687_v16 }
 0x100   : > { %v1439_v62 = vpop.f32.mrf.mxu0 }
 0x101   : > { %v1451_v63 = vpop.f32.mrf.mxu1  ;;  %v777_v20 = vadd.f32 %v763_v61, %v685_v17 }
 0x102   : > { %v674_v1 = vpop.f32.mrf.mxu0 }
 0x103   : > { %v766_v2 = vpop.f32.mrf.mxu1  ;;  %v686_v21 = vadd.f32 %v674_v1, %v574_v18 }
 0x105   : > { %v778_v25 = vadd.f32 %v766_v2, %v686_v21 }
 0x10c   : > { %v1462_v5 = vpop.f32.mrf.mxu0 }
 0x10d   : > { %v1474_v6 = vpop.f32.mrf.mxu1  ;;  %v887_v22 = vadd.f32 %v1462_v5, %v779_v19 }
 0x10e   : > { %v871_v8 = vpop.f32.mrf.mxu0 }
 0x10f   : > { %v983_v9 = vpop.f32.mrf.mxu1  ;;  %v885_v23 = vadd.f32 %v871_v8, %v777_v20  ;;  %v999_v26 = vadd.f32 %v1474_v6, %v887_v22 }
 0x110   : > { %v1463_v12 = vpop.f32.mrf.mxu0 }
 0x111   : > { %v1475_v13 = vpop.f32.mrf.mxu1  ;;  %v997_v29 = vadd.f32 %v983_v9, %v885_v23 }
 0x112   : > { %v874_v24 = vpop.f32.mrf.mxu0 }
 0x113   : > { %v886_v30 = vadd.f32 %v874_v24, %v778_v25  ;;  %v986_v32 = vpop.f32.mrf.mxu1 }
 0x115   : > { %v998_v37 = vadd.f32 %v986_v32, %v886_v30 }
 0x11c   : > { %v1486_v27 = vpop.f32.mrf.mxu0 }
 0x11d   : > { %v1096_v31 = vadd.f32 %v1486_v27, %v999_v26 }
 0x11e   : > { %v1080_v33 = vpop.f32.mrf.mxu0 }
 0x11f   : > { %v1106_v34 = vadd.f32 %v1317_v28, %v1096_v31  ;;  %v1094_v35 = vadd.f32 %v1080_v33, %v997_v29 }
 0x120   : > { %v1487_v36 = vpop.f32.mrf.mxu0 }
 0x121   : > { %v1325_v38 = vpack.c.bf16 %v1106_v34, %v1106_v34  ;;  %v1104_v39 = vadd.f32 %v1317_v28, %v1094_v35 }
 0x122   : > { %v1083_v40 = vpop.f32.mrf.mxu0 }
 0x123   : > { %1123 = vst.msk [vmem:[%s170_s21 + $0x8] sm:$0xf] %vm1120_vm7, %v1325_v38  ;;  %v1323_v41 = vpack.c.bf16 %v1104_v39, %v1104_v39  ;;  %v1095_v42 = vadd.f32 %v1083_v40, %v998_v37 }
 0x125   : > { %1121 = vst.msk [vmem:[%s170_s21] sm:$0xf] %vm1120_vm7, %v1323_v41  ;;  %v1105_v43 = vadd.f32 %v1317_v28, %v1095_v42 }
 0x127   : > { %v1324_v44 = vpack.c.bf16 %v1105_v43, %v1105_v43 }
 0x129   : > { %1122 = vst.msk [vmem:[%s170_s21 + $0x4] sm:$0xf] %vm1120_vm7, %v1324_v44 }
 0x12a PF: > { %s13_s12 = sadd.s32 1, %s1553_s12  }
 0x12b   : > { %p10_p4 = scmp.ge.s32.totalorder %s13_s12, 4  }
 0x12d   :  { %12 = sbr.rel (!%p10_p4) target bundleno = 1 (0x1), region = 70 }

// kernel: _lambda_.26
= control target key start
LH: loop header
LB: loop body
LE: loop exit
PB: predicated region body
PF: predicated region fallthrough
CT: control target
= control target key end

     0   :  { %s47_s0 = inlined_call_operand.vmem [shape: bf16[8,128], index: 0, kind: input, shape index: {}]   ;;  %s48_s1 = inlined_call_operand.vmem [shape: bf16[8,128], index: 1, kind: input, shape index: {}]   ;;  %s49_s2 = inlined_call_operand.vmem [shape: bf16[8,128], index: 2, kind: output, shape index: {}]  }
   0x1   :  { %v11_v0 = vld [vmem:[%s47_s0] sm:$0xf] }
   0x2   :  { %v13_v1 = vld [vmem:[%s48_s1] sm:$0xf]  ;;  %v12_v2 = vunpack.c.l.bf16 %v11_v0 }
   0x3   :  { %v14_v3 = vunpack.c.l.bf16 %v13_v1 }
   0x5   :  { %v15_v4 = vadd.f32 %v14_v3, %v12_v2 }
   0x7   :  { %v16_v5 = vmax.f32 %v15_v4, 0.0 }
   0x9   :  { %v17_v6 = vpack.c.bf16 %v16_v5, %v16_v5 }
   0xb   :  { %18 = vst [vmem:[%s49_s2] sm:$0xf] %v17_v6 }

// kernel: _lambda_.23
= control target key start
LH: loop header
LB: loop body
LE: loop exit
PB: predicated region body
PF: predicated region fallthrough
CT: control target
= control target key end

     0   :  { %s1355_s12 = smov 0   ;;  %s1582_s0 = inlined_call_operand.vmem [shape: bf16[2,12,256], index: 0, kind: input, shape index: {}]   ;;  %s1583_s1 = inlined_call_operand.vmem [shape: bf16[4,256,128], index: 1, kind: input, shape index: {}]   ;;  %s1584_s2 = inlined_call_operand.vmem [shape: f32[1,128], index: 2, kind: input, shape index: {}]   ;;  %s1585_s3 = inlined_call_operand.vmem [shape: bf16[2,8,128], index: 3, kind: output, shape index: {}]  }
   0x1 LB: > { %s979_s13 = sadd.s32 4294967295, %s1333_s12   ;;  %p983_p0 = scmp.ge.s32.totalorder %s1333_s12, 1  ;;  %s1333_s12 = sphi %s1355_s12, %s13_s12  }
   0x2   : > { %p137_p1 = scmp.lt.s32.totalorder %s1333_s12, 3 }
   0x4   : > { %p138_p2 = pnand %p983_p0, %p137_p1 }
   0x5   : > { %p160_p3 = scmp.lt.s32.totalorder (!%p138_p2), %s979_s13, 1 }
   0x6   : > { %141 = sbr.rel (%p138_p2) target bundleno = 285 (0x11d), region = 32 }
   0xb   : > { %v1255_v0 = vld [vmem:[%s1583_s1 + $0xf8] sm:$0xff]   ;;  %v1259_v4 = vld [vmem:[%s1583_s1 + $0xf0] sm:$0xff]   ;;  %v1263_v8 = vld [vmem:[%s1583_s1 + $0xe8] sm:$0xff]   ;;  %s1587_s13 = smov (!%p160_p3, %s979_s13), 1 }
   0xc   : > { %v1256_v1 = vld [vmem:[%s1583_s1 + $0x78] sm:$0xff]   ;;  %1159 = vmatprep.subr.bf16.mxu0 %v1255_v0  ;;  %v1260_v5 = vld [vmem:[%s1583_s1 + $0x70] sm:$0xff]   ;;  %v1264_v9 = vld [vmem:[%s1583_s1 + $0x68] sm:$0xff]   ;;  %s1158_s18 = sshll.u32 %s1587_s13, 4  ;;  %s986_s24 = sshll.u32 %s1587_s13, 2 }
   0xd   : > { %v1257_v2 = vld [vmem:[%s1583_s1 + $0xb8] sm:$0xff]   ;;  %1181 = vmatprep.subr.bf16.mxu1 %v1256_v1  ;;  %v1261_v6 = vld [vmem:[%s1583_s1 + $0xb0] sm:$0xff]   ;;  %v1265_v10 = vld [vmem:[%s1583_s1 + $0xa8] sm:$0xff]   ;;  %s1463_s27 = scalar_lea.vmem %s1582_s0, %s1158_s18  ;;  %s168_s28 = scalar_lea.vmem %s1585_s3, %s986_s24 }
   0xe   : > { %v1258_v3 = vld [vmem:[%s1583_s1 + $0x38] sm:$0xff]   ;;  %1160 = vmatpush3.bf16.msra.mxu0 %v1257_v2  ;;  %v1262_v7 = vld [vmem:[%s1583_s1 + $0x30] sm:$0xff]   ;;  %v1266_v11 = vld [vmem:[%s1583_s1 + $0x28] sm:$0xff]  }
   0xf   : > { %1182 = vmatpush3.bf16.msra.mxu1 %v1258_v3  ;;  %1161 = vmatprep.subr.bf16.mxu0 %v1259_v4  ;;  %v1267_v12 = vld [vmem:[%s1583_s1 + $0xe0] sm:$0xff]   ;;  %v1271_v16 = vld [vmem:[%s1583_s1 + $0xd8] sm:$0xff]   ;;  %v1275_v20 = vld [vmem:[%s1583_s1 + $0xd0] sm:$0xff]  }
  0x10   : > { %1183 = vmatprep.subr.bf16.mxu1 %v1260_v5  ;;  %v1268_v13 = vld [vmem:[%s1583_s1 + $0x60] sm:$0xff]   ;;  %v1272_v17 = vld [vmem:[%s1583_s1 + $0x58] sm:$0xff]   ;;  %v1276_v21 = vld [vmem:[%s1583_s1 + $0x50] sm:$0xff]  }
  0x11   : > { %v1269_v14 = vld [vmem:[%s1583_s1 + $0xa0] sm:$0xff]   ;;  %v1273_v18 = vld [vmem:[%s1583_s1 + $0x98] sm:$0xff]   ;;  %v1277_v22 = vld [vmem:[%s1583_s1 + $0x90] sm:$0xff]  }
  0x12   : > { %1162 = vmatpush3.bf16.msra.mxu0 %v1261_v6  ;;  %v1270_v15 = vld [vmem:[%s1583_s1 + $0x20] sm:$0xff]   ;;  %v1274_v19 = vld [vmem:[%s1583_s1 + $0x18] sm:$0xff]   ;;  %v1278_v23 = vld [vmem:[%s1583_s1 + $0x10] sm:$0xff]  }
  0x13   : > { %1184 = vmatpush3.bf16.msra.mxu1 %v1262_v7  ;;  %1163 = vmatprep.subr.bf16.mxu0 %v1263_v8  ;;  %v1279_v24 = vld [vmem:[%s1583_s1 + $0xc8] sm:$0xff]   ;;  %v1283_v28 = vld [vmem:[%s1583_s1 + $0xc0] sm:$0xff]   ;;  %v1291_v38 = vld [vmem:[%s1583_s1 + $0x178] sm:$0xff]  }
  0x14   : > { %1185 = vmatprep.subr.bf16.mxu1 %v1264_v9  ;;  %v1280_v25 = vld [vmem:[%s1583_s1 + $0x48] sm:$0xff]   ;;  %v1284_v29 = vld [vmem:[%s1583_s1 + $0x40] sm:$0xff]   ;;  %v1292_v39 = vld [vmem:[%s1583_s1 + $0x1f8] sm:$0xff]  }
  0x15   : > { %v1281_v26 = vld [vmem:[%s1583_s1 + $0x88] sm:$0xff]   ;;  %v1285_v30 = vld [vmem:[%s1583_s1 + $0x80] sm:$0xff]   ;;  %v1293_v46 = vld [vmem:[%s1583_s1 + $0x138] sm:$0xff]  }
  0x16   : > { %1164 = vmatpush3.bf16.msra.mxu0 %v1265_v10  ;;  %v1282_v27 = vld [vmem:[%s1583_s1 + $0x8] sm:$0xff]   ;;  %v1286_v31 = vld [vmem:[%s1583_s1] sm:$0xff]   ;;  %v1294_v47 = vld [vmem:[%s1583_s1 + $0x1b8] sm:$0xff]  }
  0x17   : > { %1186 = vmatpush3.bf16.msra.mxu1 %v1266_v11  ;;  %1165 = vmatprep.subr.bf16.mxu0 %v1267_v12  ;;  %v170_v32 = vld [vmem:[%s1463_s27] sm:$0xff]  ;;  %v203_v33 = vld [vmem:[%s1463_s27 + $0x8] sm:$0x11]  ;;  %v1296_v50 = vld [vmem:[%s1583_s1 + $0x1f0] sm:$0xff]  }
  0x18   : > { %1187 = vmatprep.subr.bf16.mxu1 %v1268_v13  ;;  %v1019_v34 = vcombine.low %v170_v32, %v203_v33  ;;  %v1020_v35 = vcombine.high %v170_v32, %v203_v33  ;;  %v1038_v36 = vcombine.high %v170_v32, %v170_v32  ;;  %v1037_v37 = vcombine.low %v170_v32, %v170_v32  ;;  %v1295_v51 = vld [vmem:[%s1583_s1 + $0x170] sm:$0xff]   ;;  %v1300_v54 = vld [vmem:[%s1583_s1 + $0x1e8] sm:$0xff]   ;;  %v1304_v58 = vld [vmem:[%s1583_s1 + $0x1e0] sm:$0xff]  }
  0x19   : > { %v1298_v52 = vld [vmem:[%s1583_s1 + $0x1b0] sm:$0xff]   ;;  %v1299_v55 = vld [vmem:[%s1583_s1 + $0x168] sm:$0xff]   ;;  %v1303_v59 = vld [vmem:[%s1583_s1 + $0x160] sm:$0xff]  }
  0x1a   : > { %1166 = vmatpush3.bf16.msra.mxu0 %v1269_v14  ;;  %v253_v40 = vshrl.u32 %v1020_v35, 16  ;;  %v255_v41 = vshll.u32 %v1020_v35, 16  ;;  %529 = vmatprep.mubr.bf16.mxu1 %v1038_v36  ;;  %v246_v42 = vshrl.u32 %v1019_v34, 16  ;;  %v248_v43 = vshll.u32 %v1019_v34, 16  ;;  %v1297_v53 = vld [vmem:[%s1583_s1 + $0x130] sm:$0xff]   ;;  %v1302_v56 = vld [vmem:[%s1583_s1 + $0x1a8] sm:$0xff]  }
  0x1b   : > { %1188 = vmatpush3.bf16.msra.mxu1 %v1270_v15  ;;  %1167 = vmatprep.subr.bf16.mxu0 %v1271_v16  ;;  %v1301_v57 = vld [vmem:[%s1583_s1 + $0x128] sm:$0xff]   ;;  %v1306_v60 = vld [vmem:[%s1583_s1 + $0x1a0] sm:$0xff]   ;;  %v1308_v62 = vld [vmem:[%s1583_s1 + $0x1d8] sm:$0xff]  }
  0x1c   : > { %1189 = vmatprep.subr.bf16.mxu1 %v1272_v17  ;;  %v257_v44 = vrot.slane %v255_v41, 1  ;;  %v250_v45 = vrot.slane %v248_v43, 1  ;;  %v1305_v61 = vld [vmem:[%s1583_s1 + $0x120] sm:$0xff]   ;;  %v1307_v63 = vld [vmem:[%s1583_s1 + $0x158] sm:$0xff]   ;;  %v1312_v2 = vld [vmem:[%s1583_s1 + $0x1d0] sm:$0xff]  }
  0x1d   : > { %v1310_v0 = vld [vmem:[%s1583_s1 + $0x198] sm:$0xff]   ;;  %v1311_v3 = vld [vmem:[%s1583_s1 + $0x150] sm:$0xff]   ;;  %v1316_v6 = vld [vmem:[%s1583_s1 + $0x1c8] sm:$0xff]  }
  0x1e   : > { %1168 = vmatpush3.bf16.msra.mxu0 %v1273_v18  ;;  %v258_v48 = vor.u32 %v257_v44, %v253_v40  ;;  %v251_v49 = vor.u32 %v250_v45, %v246_v42  ;;  %v1309_v1 = vld [vmem:[%s1583_s1 + $0x118] sm:$0xff]   ;;  %v1314_v4 = vld [vmem:[%s1583_s1 + $0x190] sm:$0xff]   ;;  %v1315_v7 = vld [vmem:[%s1583_s1 + $0x148] sm:$0xff]  }
  0x1f   : > { %1190 = vmatpush3.bf16.msra.mxu1 %v1274_v19  ;;  %1169 = vmatprep.subr.bf16.mxu0 %v1275_v20  ;;  %v1313_v5 = vld [vmem:[%s1583_s1 + $0x110] sm:$0xff]   ;;  %v1318_v8 = vld [vmem:[%s1583_s1 + $0x188] sm:$0xff]   ;;  %v1320_v10 = vld [vmem:[%s1583_s1 + $0x1c0] sm:$0xff]  }
  0x20   : > { %1191 = vmatprep.subr.bf16.mxu1 %v1276_v21  ;;  %389 = vmatprep.mubr.bf16.mxu0 %v258_v48  ;;  %v1317_v9 = vld [vmem:[%s1583_s1 + $0x108] sm:$0xff]   ;;  %v1319_v11 = vld [vmem:[%s1583_s1 + $0x140] sm:$0xff]  }
  0x21   : > { %v1322_v12 = vld [vmem:[%s1583_s1 + $0x180] sm:$0xff]   ;;  %v538_v14 = vld [vmem:[%s1463_s27 + $0x8] sm:$0x33] }
  0x22   : > { %1170 = vmatpush3.bf16.msra.mxu0 %v1277_v22  ;;  %v537_v13 = vld [vmem:[%s1463_s27] sm:$0xee] }
  0x23   : > { %1192 = vmatpush3.bf16.msra.mxu1 %v1278_v23  ;;  %1171 = vmatprep.subr.bf16.mxu0 %v1279_v24  ;;  %v1087_v15 = vcombine.low %v537_v13, %v538_v14  ;;  %v1088_v16 = vcombine.high %v537_v13, %v538_v14  ;;  %v735_v17 = vld [vmem:[%s1463_s27] sm:$0xcc] }
  0x24   : > { %1193 = vmatprep.subr.bf16.mxu1 %v1280_v25  ;;  %v1321_v18 = vld [vmem:[%s1583_s1 + $0x100] sm:$0xff]   ;;  %v1137_v19 = vcombine.low %v735_v17, %v538_v14  ;;  %v1138_v20 = vcombine.high %v735_v17, %v538_v14 }
  0x25   : > { %v589_v21 = vshrl.u32 %v1088_v16, 16  ;;  %v592_v22 = vshll.u32 %v1088_v16, 16  ;;  %v581_v23 = vshrl.u32 %v1087_v15, 16  ;;  %v584_v24 = vshll.u32 %v1087_v15, 16 }
  0x26   : > { %1172 = vmatpush3.bf16.msra.mxu0 %v1281_v26  ;;  %v774_v25 = vrot.slane %v1137_v19, 2  ;;  %v775_v26 = vrot.slane %v1138_v20, 2 }
  0x27   : > { %1194 = vmatpush3.bf16.msra.mxu1 %v1282_v27  ;;  %1173 = vmatprep.subr.bf16.mxu0 %v1283_v28  ;;  %v591_v27 = vrot.slane %v589_v21, 1  ;;  %v594_v28 = vrot.slane %v592_v22, 2 }
  0x28   : > { %1195 = vmatprep.subr.bf16.mxu1 %v1284_v29  ;;  %v583_v29 = vrot.slane %v581_v23, 1 }
  0x2a   : > { %1174 = vmatpush3.bf16.msra.mxu0 %v1285_v30  ;;  %v586_v30 = vrot.slane %v584_v24, 2 }
  0x2b   : > { %1196 = vmatpush3.bf16.msra.mxu1 %v1286_v31  ;;  %1203 = vmatprep.subr.bf16.mxu0 %v1291_v38  ;;  %v595_v31 = vor.u32 %v594_v28, %v591_v27 }
  0x2c   : > { %1225 = vmatprep.subr.bf16.mxu1 %v1292_v39  ;;  %v587_v32 = vor.u32 %v586_v30, %v583_v29 }
  0x2d   : > { %390 = vmatmul.mubr.bf16.vlgmr.msra.gmra.mxu0 %v251_v49 }
  0x2e   : > { %530 = vmatmul.mubr.bf16.vlgmr.msra.gmra.mxu1 %v1037_v37  ;;  %1204 = vmatpush3.bf16.msra.mxu0 %v1293_v46 }
  0x2f   : > { %1226 = vmatpush3.bf16.msra.mxu1 %v1294_v47  ;;  %1205 = vmatprep.subr.bf16.mxu0 %v1295_v51 }
  0x30   : > { %1227 = vmatprep.subr.bf16.mxu1 %v1296_v50  ;;  %906 = vmatprep.mubr.bf16.mxu1 %v775_v26 }
  0x31   : > { %726 = vmatprep.mubr.bf16.mxu0 %v595_v31 }
  0x32   : > { %1206 = vmatpush3.bf16.msra.mxu0 %v1297_v53 }
  0x33   : > { %1228 = vmatpush3.bf16.msra.mxu1 %v1298_v52  ;;  %1207 = vmatprep.subr.bf16.mxu0 %v1299_v55 }
  0x34   : > { %1229 = vmatprep.subr.bf16.mxu1 %v1300_v54  ;;  %v1155_v54 = vld [vmem:[%s1584_s2] ss:$0 sm:$0xff] }
  0x36   : > { %1208 = vmatpush3.bf16.msra.mxu0 %v1301_v57 }
  0x37   : > { %1230 = vmatpush3.bf16.msra.mxu1 %v1302_v56  ;;  %1209 = vmatprep.subr.bf16.mxu0 %v1303_v59 }
  0x38   : > { %1231 = vmatprep.subr.bf16.mxu1 %v1304_v58 }
  0x3a   : > { %1210 = vmatpush3.bf16.msra.mxu0 %v1305_v61 }
  0x3b   : > { %1232 = vmatpush3.bf16.msra.mxu1 %v1306_v60  ;;  %1211 = vmatprep.subr.bf16.mxu0 %v1307_v63 }
  0x3c   : > { %1233 = vmatprep.subr.bf16.mxu1 %v1308_v62 }
  0x3e   : > { %1212 = vmatpush3.bf16.msra.mxu0 %v1309_v1 }
  0x3f   : > { %1234 = vmatpush3.bf16.msra.mxu1 %v1310_v0  ;;  %1213 = vmatprep.subr.bf16.mxu0 %v1311_v3 }
  0x40   : > { %1235 = vmatprep.subr.bf16.mxu1 %v1312_v2 }
  0x42   : > { %1214 = vmatpush3.bf16.msra.mxu0 %v1313_v5 }
  0x43   : > { %1236 = vmatpush3.bf16.msra.mxu1 %v1314_v4  ;;  %1215 = vmatprep.subr.bf16.mxu0 %v1315_v7 }
  0x44   : > { %1237 = vmatprep.subr.bf16.mxu1 %v1316_v6 }
  0x46   : > { %1216 = vmatpush3.bf16.msra.mxu0 %v1317_v9 }
  0x47   : > { %1238 = vmatpush3.bf16.msra.mxu1 %v1318_v8  ;;  %1217 = vmatprep.subr.bf16.mxu0 %v1319_v11 }
  0x48   : > { %1239 = vmatprep.subr.bf16.mxu1 %v1320_v10 }
  0x4a   : > { %1218 = vmatpush3.bf16.msra.mxu0 %v1321_v18 }
  0x4b   : > { %1240 = vmatpush3.bf16.msra.mxu1 %v1322_v12 }
  0x4d   : > { %727 = vmatmul.mubr.bf16.vlgmr.msra.gmra.mxu0 %v587_v32 }
  0x4e   : > { %907 = vmatmul.mubr.bf16.vlgmr.msra.gmra.mxu1 %v774_v25 }
  0xed   : > { %v1175_v36 = vpop.f32.mrf.mxu0 }
  0xee   : > { %v1197_v33 = vpop.f32.mrf.mxu1 }
  0xef   : > { %v1176_v38 = vpop.f32.mrf.mxu0 }
  0xf0   : > { %v1198_v34 = vpop.f32.mrf.mxu1  ;;  %v1177_v42 = vadd.f32 %v1176_v38, %v1175_v36 }
  0xf1   : > { %v1178_v39 = vpop.f32.mrf.mxu0  ;;  %v1199_v43 = vadd.f32 %v1198_v34, %v1197_v33 }
  0xf2   : > { %v1200_v35 = vpop.f32.mrf.mxu1 }
  0xf3   : > { %v1179_v40 = vpop.f32.mrf.mxu0  ;;  %v532_v48 = vadd.f32 %v1199_v43, %v1177_v42 }
  0xf4   : > { %v1201_v37 = vpop.f32.mrf.mxu1 }
 0x10d   : > { %v1219_v45 = vpop.f32.mrf.mxu0 }
 0x10e   : > { %v1241_v41 = vpop.f32.mrf.mxu1 }
 0x10f   : > { %v1220_v47 = vpop.f32.mrf.mxu0 }
 0x110   : > { %v1242_v44 = vpop.f32.mrf.mxu1  ;;  %v1221_v49 = vadd.f32 %v1220_v47, %v1219_v45 }
 0x111   : > { %v1222_v51 = vpop.f32.mrf.mxu0  ;;  %v1243_v53 = vadd.f32 %v1242_v44, %v1241_v41 }
 0x112   : > { %v1244_v46 = vpop.f32.mrf.mxu1  ;;  %v734_v52 = vadd.f32 %v1221_v49, %v532_v48 }
 0x113   : > { %v1223_v55 = vpop.f32.mrf.mxu0 }
 0x114   : > { %v1245_v50 = vpop.f32.mrf.mxu1  ;;  %v914_v56 = vadd.f32 %v1243_v53, %v734_v52 }
 0x116   : > { %v922_v57 = vadd.f32 %v1155_v54, %v914_v56 }
 0x118   : > { %v923_v58 = vmax.f32 %v922_v57, 0.0 }
 0x11a   : > { %v924_v59 = vpack.c.bf16 %v923_v58, %v923_v58 }
 0x11c   : > { %925 = vst [vmem:[%s168_s28] sm:$0xf] %v924_v59 }
 0x11d PF: > { %s13_s12 = sadd.s32 1, %s1333_s12  }
 0x11e   : > { %p10_p4 = scmp.ge.s32.totalorder %s13_s12, 4  }
 0x120   :  { %12 = sbr.rel (!%p10_p4) target bundleno = 1 (0x1), region = 65 }

// kernel: _lambda_.25
= control target key start
LH: loop header
LB: loop body
LE: loop exit
PB: predicated region body
PF: predicated region fallthrough
CT: control target
= control target key end

     0   :  { %s382_s12 = smov 0   ;;  %s414_s0 = inlined_call_operand.vmem [shape: bf16[2,8,64], index: 0, kind: input, shape index: {}]   ;;  %s415_s1 = inlined_call_operand.vmem [shape: bf16[1,64,128], index: 1, kind: input, shape index: {}]   ;;  %s416_s2 = inlined_call_operand.vmem [shape: f32[1,128], index: 2, kind: input, shape index: {}]   ;;  %s417_s3 = inlined_call_operand.vmem [shape: bf16[2,8,128], index: 3, kind: output, shape index: {}]  }
   0x1 LB: > { %s306_s13 = sadd.s32 4294967295, %s358_s12   ;;  %p310_p0 = scmp.ge.s32.totalorder %s358_s12, 1  ;;  %s358_s12 = sphi %s382_s12, %s13_s12  }
   0x2   : > { %p136_p1 = scmp.lt.s32.totalorder %s358_s12, 3 }
   0x4   : > { %p137_p2 = pnand %p310_p0, %p136_p1 }
   0x5   : > { %p158_p3 = scmp.lt.s32.totalorder (!%p137_p2), %s306_s13, 1 }
   0x6   : > { %140 = sbr.rel (%p137_p2) target bundleno = 227 (0xe3), region = 32 }
   0xb   : > { %v348_v0 = vld [vmem:[%s415_s1 + $0x18] sm:$0xff]   ;;  %v360_v1 = vmov 0.0   ;;  %v349_v2 = vld [vmem:[%s415_s1 + $0x10] sm:$0xff]   ;;  %vm361_vm0 = vmmov 0   ;;  %s419_s13 = smov (!%p158_p3, %s306_s13), 1  ;;  %v350_v3 = vld [vmem:[%s415_s1 + $0x8] sm:$0xff]  }
   0xc   : > { %326 = vmatprep.subr.bf16.mxu0 %v360_v1  ;;  %334 = vmatprep.mubr.msk.bf16.mxu0 %vm361_vm0, %v360_v1  ;;  %s311_s20 = sshll.u32 %s419_s13, 2  ;;  %v351_v4 = vld [vmem:[%s415_s1] sm:$0xff]   ;;  %vm207_vm1 = vcmask 523264  }
   0xd   : > { %327 = vmatpush3.bf16.msra.mxu0 %v348_v0  ;;  %s161_s25 = scalar_lea.vmem %s414_s0, %s311_s20  ;;  %v313_v6 = vld [vmem:[%s416_s2] ss:$0 sm:$0xff]  ;;  %s165_s30 = scalar_lea.vmem %s417_s3, %s311_s20 }
   0xe   : > { %328 = vmatprep.subr.bf16.mxu0 %v360_v1  ;;  %v167_v5 = vld [vmem:[%s161_s25] sm:$0xf] }
  0x11   : > { %329 = vmatpush3.bf16.msra.mxu0 %v349_v2 }
  0x12   : > { %330 = vmatprep.subr.bf16.mxu0 %v360_v1 }
  0x15   : > { %331 = vmatpush3.bf16.msra.mxu0 %v350_v3 }
  0x16   : > { %332 = vmatprep.subr.bf16.mxu0 %v360_v1 }
  0x19   : > { %333 = vmatpush3.bf16.msra.mxu0 %v351_v4 }
  0x1c   : > { %335 = vmatmul.mubr.msk.bf16.vlgmr.msra.gmra.mxu0 %vm207_vm1, %v167_v5 }
  0xdc   : > { %v245_v7 = vpop.f32.mrf.mxu0 }
  0xdd   : > { %v246_v8 = vadd.f32 %v313_v6, %v245_v7 }
  0xde   : > { %v336_v9 = vpop.f32.mrf.mxu0 }
  0xdf   : > { %v251_v10 = vpack.c.bf16 %v246_v8, %v246_v8 }
  0xe0   : > { %v248_v11 = vpop.f32.mrf.mxu0 }
  0xe1   : > { %252 = vst [vmem:[%s165_s30] sm:$0xf] %v251_v10 }
  0xe2   : > { %v337_v12 = vpop.f32.mrf.mxu0 }
  0xe3 PF: > { %s13_s12 = sadd.s32 1, %s358_s12  }
  0xe4   : > { %p10_p4 = scmp.ge.s32.totalorder %s13_s12, 4  }
  0xe6   :  { %12 = sbr.rel (!%p10_p4) target bundleno = 1 (0x1), region = 62 }

// kernel: _lambda_.24
= control target key start
LH: loop header
LB: loop body
LE: loop exit
PB: predicated region body
PF: predicated region fallthrough
CT: control target
= control target key end

     0   :  { %s1853_s12 = smov 0   ;;  %s2200_s0 = inlined_call_operand.vmem [shape: bf16[2,20,128], index: 0, kind: input, shape index: {}]   ;;  %s2201_s1 = inlined_call_operand.vmem [shape: bf16[9,128,128], index: 1, kind: input, shape index: {}]   ;;  %s2202_s2 = inlined_call_operand.vmem [shape: f32[1,128], index: 2, kind: input, shape index: {}]   ;;  %s2203_s3 = inlined_call_operand.vmem [shape: bf16[2,8,128], index: 3, kind: output, shape index: {}]  }
   0x1 LB: > { %s1255_s13 = sadd.s32 4294967295, %s1829_s12   ;;  %p1259_p0 = scmp.ge.s32.totalorder %s1829_s12, 1  ;;  %s1829_s12 = sphi %s1853_s12, %s13_s12  }
   0x2   : > { %p137_p1 = scmp.lt.s32.totalorder %s1829_s12, 3 }
   0x4   : > { %p138_p2 = pnand %p1259_p0, %p137_p1 }
   0x5   : > { %p160_p3 = scmp.lt.s32.totalorder (!%p138_p2), %s1255_s13, 1 }
   0x6   : > { %141 = sbr.rel (%p138_p2) target bundleno = 372 (0x174), region = 32 }
   0xb   : > { %v1744_v0 = vld [vmem:[%s2201_s1 + $0x78] sm:$0xff]   ;;  %v1831_v1 = vmov 0.0   ;;  %v1746_v3 = vld [vmem:[%s2201_s1 + $0x70] sm:$0xff]   ;;  %vm1832_vm0 = vmmov 0   ;;  %s2205_s13 = smov (!%p160_p3, %s1255_s13), 1  ;;  %v1748_v5 = vld [vmem:[%s2201_s1 + $0x68] sm:$0xff]  }
   0xc   : > { %1553 = vmatprep.subr.bf16.mxu0 %v1831_v1  ;;  %1573 = vmatprep.subr.bf16.mxu1 %v1831_v1  ;;  %v1745_v2 = vld [vmem:[%s2201_s1 + $0x38] sm:$0xff]   ;;  %v1747_v4 = vld [vmem:[%s2201_s1 + $0x30] sm:$0xff]   ;;  %v1749_v6 = vld [vmem:[%s2201_s1 + $0x28] sm:$0xff]   ;;  %s1733_s26 = smul.u32 12, %s2205_s13  ;;  %s1261_s18 = sshll.u32 %s2205_s13, 2 }
   0xd   : > { %1554 = vmatpush3.bf16.msra.mxu0 %v1744_v0  ;;  %1569 = vmatprep.mubr.msk.bf16.mxu0 %vm1832_vm0, %v1831_v1  ;;  %v1750_v7 = vld [vmem:[%s2201_s1 + $0x60] sm:$0xff]   ;;  %v1752_v9 = vld [vmem:[%s2201_s1 + $0x58] sm:$0xff]   ;;  %v1754_v14 = vld [vmem:[%s2201_s1 + $0x50] sm:$0xff]   ;;  %s168_s21 = scalar_lea.vmem %s2203_s3, %s1261_s18 }
   0xe   : > { %1574 = vmatpush3.bf16.msra.mxu1 %v1745_v2  ;;  %1555 = vmatprep.subr.bf16.mxu0 %v1831_v1  ;;  %v1751_v8 = vld [vmem:[%s2201_s1 + $0x20] sm:$0xff]   ;;  %s1903_s6 = scalar_lea.vmem %s2200_s0, %s1733_s26  ;;  %v1753_v10 = vld [vmem:[%s2201_s1 + $0x18] sm:$0xff]   ;;  %v1755_v15 = vld [vmem:[%s2201_s1 + $0x10] sm:$0xff]  }
   0xf   : > { %1575 = vmatprep.subr.bf16.mxu1 %v1831_v1  ;;  %1589 = vmatprep.mubr.msk.bf16.mxu1 %vm1832_vm0, %v1831_v1  ;;  %v170_v11 = vld [vmem:[%s1903_s6] sm:$0xf]  ;;  %v1915_v12 = vld [vmem:[%s1903_s6 + $0x4] sm:$0x1]  ;;  %v1756_v17 = vld [vmem:[%s2201_s1 + $0x48] sm:$0xff]  }
  0x10   : > { %v1278_v13 = vcombine.low %v170_v11, %v1915_v12  ;;  %v1757_v18 = vld [vmem:[%s2201_s1 + $0x8] sm:$0xff]   ;;  %v1758_v21 = vld [vmem:[%s2201_s1 + $0x40] sm:$0xff]   ;;  %v1761_v24 = vld [vmem:[%s2201_s1 + $0xb8] sm:$0xff]  }
  0x11   : > { %1556 = vmatpush3.bf16.msra.mxu0 %v1746_v3  ;;  %v1759_v22 = vld [vmem:[%s2201_s1] sm:$0xff]   ;;  %v1762_v25 = vld [vmem:[%s2201_s1 + $0xf8] sm:$0xff]   ;;  %v1763_v26 = vld [vmem:[%s2201_s1 + $0xb0] sm:$0xff]  }
  0x12   : > { %1576 = vmatpush3.bf16.msra.mxu1 %v1747_v4  ;;  %1557 = vmatprep.subr.bf16.mxu0 %v1831_v1  ;;  %v213_v16 = vshll.u32 %v1278_v13, 16  ;;  %v211_v19 = vshrl.u32 %v1278_v13, 16  ;;  %v1764_v27 = vld [vmem:[%s2201_s1 + $0xf0] sm:$0xff]   ;;  %v1765_v28 = vld [vmem:[%s2201_s1 + $0xa8] sm:$0xff]   ;;  %v1767_v30 = vld [vmem:[%s2201_s1 + $0xa0] sm:$0xff]  }
  0x13   : > { %1577 = vmatprep.subr.bf16.mxu1 %v1831_v1  ;;  %v1766_v29 = vld [vmem:[%s2201_s1 + $0xe8] sm:$0xff]   ;;  %v1768_v31 = vld [vmem:[%s2201_s1 + $0xe0] sm:$0xff]   ;;  %v1769_v32 = vld [vmem:[%s2201_s1 + $0x98] sm:$0xff]  }
  0x14   : > { %v215_v20 = vrot.slane %v213_v16, 1  ;;  %v1770_v33 = vld [vmem:[%s2201_s1 + $0xd8] sm:$0xff]   ;;  %v1771_v34 = vld [vmem:[%s2201_s1 + $0x90] sm:$0xff]   ;;  %v1773_v36 = vld [vmem:[%s2201_s1 + $0x88] sm:$0xff]  }
  0x15   : > { %1558 = vmatpush3.bf16.msra.mxu0 %v1748_v5  ;;  %v1772_v35 = vld [vmem:[%s2201_s1 + $0xd0] sm:$0xff]   ;;  %v1774_v37 = vld [vmem:[%s2201_s1 + $0xc8] sm:$0xff]   ;;  %v394_v38 = vld [vmem:[%s1903_s6] sm:$0xe] }
  0x16   : > { %1578 = vmatpush3.bf16.msra.mxu1 %v1749_v6  ;;  %1559 = vmatprep.subr.bf16.mxu0 %v1831_v1  ;;  %v216_v23 = vor.u32 %v215_v20, %v211_v19  ;;  %v506_v39 = vld [vmem:[%s1903_s6] sm:$0xc]  ;;  %v507_v40 = vld [vmem:[%s1903_s6 + $0x4] sm:$0x3]  ;;  %v1311_v41 = vcombine.low %v394_v38, %v1915_v12  ;;  %v1778_v46 = vld [vmem:[%s2201_s1 + $0x138] sm:$0xff]  }
  0x17   : > { %1579 = vmatprep.subr.bf16.mxu1 %v1831_v1  ;;  %v1775_v42 = vld [vmem:[%s2201_s1 + $0x80] sm:$0xff]   ;;  %v1336_v43 = vcombine.low %v506_v39, %v507_v40  ;;  %v1781_v48 = vld [vmem:[%s2201_s1 + $0x178] sm:$0xff]   ;;  %v1782_v49 = vld [vmem:[%s2201_s1 + $0x130] sm:$0xff]  }
  0x18   : > { %v1776_v44 = vld [vmem:[%s2201_s1 + $0xc0] sm:$0xff]   ;;  %v415_v45 = vrot.slane %v1311_v41, 1  ;;  %v1783_v50 = vld [vmem:[%s2201_s1 + $0x170] sm:$0xff]   ;;  %v1784_v51 = vld [vmem:[%s2201_s1 + $0x128] sm:$0xff]  }
  0x19   : > { %1560 = vmatpush3.bf16.msra.mxu0 %v1750_v7  ;;  %v530_v47 = vrot.slane %v1336_v43, 2  ;;  %v1785_v52 = vld [vmem:[%s2201_s1 + $0x168] sm:$0xff]   ;;  %v1786_v53 = vld [vmem:[%s2201_s1 + $0x120] sm:$0xff]   ;;  %v1788_v56 = vld [vmem:[%s2201_s1 + $0x118] sm:$0xff]  }
  0x1a   : > { %1580 = vmatpush3.bf16.msra.mxu1 %v1751_v8  ;;  %1561 = vmatprep.subr.bf16.mxu0 %v1831_v1  ;;  %v1787_v54 = vld [vmem:[%s2201_s1 + $0x160] sm:$0xff]   ;;  %v1789_v57 = vld [vmem:[%s2201_s1 + $0x158] sm:$0xff]   ;;  %v1790_v59 = vld [vmem:[%s2201_s1 + $0x110] sm:$0xff]  }
  0x1b   : > { %1581 = vmatprep.subr.bf16.mxu1 %v1831_v1  ;;  %v621_v55 = vld [vmem:[%s1903_s6 + $0x4] sm:$0x7]  ;;  %v1791_v60 = vld [vmem:[%s2201_s1 + $0x150] sm:$0xff]   ;;  %v1792_v63 = vld [vmem:[%s2201_s1 + $0x108] sm:$0xff]  }
  0x1c   : > { %v1361_v58 = vcombine.low %v506_v39, %v621_v55  ;;  %v1793_v0 = vld [vmem:[%s2201_s1 + $0x148] sm:$0xff]   ;;  %v740_v2 = vld [vmem:[%s1903_s6] sm:$0x8]  ;;  %v1799_v12 = vld [vmem:[%s2201_s1 + $0x1b0] sm:$0xff]  }
  0x1d   : > { %1562 = vmatpush3.bf16.msra.mxu0 %v1752_v9  ;;  %v1794_v5 = vld [vmem:[%s2201_s1 + $0x100] sm:$0xff]   ;;  %v1386_v6 = vcombine.low %v740_v2, %v621_v55  ;;  %v1796_v9 = vld [vmem:[%s2201_s1 + $0x1b8] sm:$0xff]   ;;  %v1800_v13 = vld [vmem:[%s2201_s1 + $0x1f0] sm:$0xff]  }
  0x1e   : > { %1582 = vmatpush3.bf16.msra.mxu1 %v1753_v10  ;;  %1563 = vmatprep.subr.bf16.mxu0 %v1831_v1  ;;  %v643_v61 = vshrl.u32 %v1361_v58, 16  ;;  %v646_v62 = vshll.u32 %v1361_v58, 16  ;;  %v1795_v7 = vld [vmem:[%s2201_s1 + $0x140] sm:$0xff]   ;;  %v1806_v19 = vld [vmem:[%s2201_s1 + $0x1d8] sm:$0xff]   ;;  %v1819_v39 = vld [vmem:[%s2201_s1 + $0x210] sm:$0xff]  }
  0x1f   : > { %1583 = vmatprep.subr.bf16.mxu1 %v1831_v1  ;;  %v761_v10 = vrot.slane %v1386_v6, 3  ;;  %v1803_v16 = vld [vmem:[%s2201_s1 + $0x1a0] sm:$0xff]   ;;  %v1818_v38 = vld [vmem:[%s2201_s1 + $0x218] sm:$0xff]   ;;  %v1820_v40 = vld [vmem:[%s2201_s1 + $0x208] sm:$0xff]  }
  0x20   : > { %v645_v3 = vrot.slane %v643_v61, 2  ;;  %v648_v4 = vrot.slane %v646_v62, 3  ;;  %v959_v20 = vld [vmem:[%s1903_s6 + $0x4] sm:$0xf] }
  0x21   : > { %1564 = vmatpush3.bf16.msra.mxu0 %v1754_v14  ;;  %v1801_v14 = vld [vmem:[%s2201_s1 + $0x1a8] sm:$0xff]   ;;  %v1080_v41 = vld [vmem:[%s1903_s6 + $0x4] sm:$0xe] }
  0x22   : > { %1584 = vmatpush3.bf16.msra.mxu1 %v1755_v15  ;;  %1565 = vmatprep.subr.bf16.mxu0 %v1831_v1  ;;  %v649_v8 = vor.u32 %v648_v4, %v645_v3  ;;  %v1802_v15 = vld [vmem:[%s2201_s1 + $0x1e8] sm:$0xff]   ;;  %v1821_v43 = vld [vmem:[%s2201_s1 + $0x200] sm:$0xff]  }
  0x23   : > { %1585 = vmatprep.subr.bf16.mxu1 %v1831_v1 }
  0x25   : > { %1566 = vmatpush3.bf16.msra.mxu0 %v1756_v17  ;;  %v1804_v17 = vld [vmem:[%s2201_s1 + $0x1e0] sm:$0xff]  }
  0x26   : > { %1586 = vmatpush3.bf16.msra.mxu1 %v1757_v18  ;;  %1567 = vmatprep.subr.bf16.mxu0 %v1831_v1  ;;  %v1805_v18 = vld [vmem:[%s2201_s1 + $0x198] sm:$0xff]  }
  0x27   : > { %1587 = vmatprep.subr.bf16.mxu1 %v1831_v1 }
  0x29   : > { %1568 = vmatpush3.bf16.msra.mxu0 %v1758_v21  ;;  %v960_v21 = vld [vmem:[%s1903_s6 + $0x8] sm:$0x1] }
  0x2a   : > { %1588 = vmatpush3.bf16.msra.mxu1 %v1759_v22  ;;  %1593 = vmatprep.subr.bf16.mxu0 %v1831_v1  ;;  %v1807_v22 = vld [vmem:[%s2201_s1 + $0x190] sm:$0xff]  }
  0x2b   : > { %1613 = vmatprep.subr.bf16.mxu1 %v1831_v1 }
  0x2c   : > { %1570 = vmatmul.mubr.bf16.vlgmr.msra.gmra.mxu0 %v216_v23  ;;  %v1435_v23 = vcombine.low %v959_v20, %v960_v21 }
  0x2d   : > { %1590 = vmatmul.mubr.bf16.vlgmr.msra.gmra.mxu1 %v170_v11  ;;  %1594 = vmatpush3.bf16.msra.mxu0 %v1761_v24  ;;  %v1798_v11 = vld [vmem:[%s2201_s1 + $0x1f8] sm:$0xff]   ;;  %v1808_v24 = vld [vmem:[%s2201_s1 + $0x1d0] sm:$0xff]  }
  0x2e   : > { %1614 = vmatpush3.bf16.msra.mxu1 %v1762_v25  ;;  %1595 = vmatprep.subr.bf16.mxu0 %v1831_v1  ;;  %v1809_v25 = vld [vmem:[%s2201_s1 + $0x188] sm:$0xff]  }
  0x2f   : > { %1615 = vmatprep.subr.bf16.mxu1 %v1831_v1  ;;  %1609 = vmatprep.mubr.msk.bf16.mxu0 %vm1832_vm0, %v1831_v1 }
  0x30   : > { %1629 = vmatprep.mubr.msk.bf16.mxu1 %vm1832_vm0, %v1831_v1 }
  0x31   : > { %1596 = vmatpush3.bf16.msra.mxu0 %v1763_v26  ;;  %v986_v26 = vshll.u32 %v1435_v23, 16 }
  0x32   : > { %1616 = vmatpush3.bf16.msra.mxu1 %v1764_v27  ;;  %1597 = vmatprep.subr.bf16.mxu0 %v1831_v1  ;;  %v1810_v27 = vld [vmem:[%s2201_s1 + $0x1c8] sm:$0xff]  }
  0x33   : > { %1617 = vmatprep.subr.bf16.mxu1 %v1831_v1 }
  0x35   : > { %1598 = vmatpush3.bf16.msra.mxu0 %v1765_v28  ;;  %v1811_v28 = vld [vmem:[%s2201_s1 + $0x180] sm:$0xff]  }
  0x36   : > { %1618 = vmatpush3.bf16.msra.mxu1 %v1766_v29  ;;  %1599 = vmatprep.subr.bf16.mxu0 %v1831_v1  ;;  %v984_v29 = vshrl.u32 %v1435_v23, 16 }
  0x37   : > { %1619 = vmatprep.subr.bf16.mxu1 %v1831_v1 }
  0x39   : > { %1600 = vmatpush3.bf16.msra.mxu0 %v1767_v30  ;;  %v988_v30 = vrot.slane %v986_v26, 1 }
  0x3a   : > { %1620 = vmatpush3.bf16.msra.mxu1 %v1768_v31  ;;  %1601 = vmatprep.subr.bf16.mxu0 %v1831_v1  ;;  %v1812_v31 = vld [vmem:[%s2201_s1 + $0x1c0] sm:$0xff]  }
  0x3b   : > { %1621 = vmatprep.subr.bf16.mxu1 %v1831_v1 }
  0x3d   : > { %1602 = vmatpush3.bf16.msra.mxu0 %v1769_v32  ;;  %v852_v32 = vld [vmem:[%s1903_s6 + $0x4] sm:$0xf] }
  0x3e   : > { %1622 = vmatpush3.bf16.msra.mxu1 %v1770_v33  ;;  %1603 = vmatprep.subr.bf16.mxu0 %v1831_v1  ;;  %v1813_v33 = vld [vmem:[%s2201_s1 + $0x238] sm:$0xff]  }
  0x3f   : > { %1623 = vmatprep.subr.bf16.mxu1 %v1831_v1 }
  0x41   : > { %1604 = vmatpush3.bf16.msra.mxu0 %v1771_v34  ;;  %v989_v34 = vor.u32 %v988_v30, %v984_v29 }
  0x42   : > { %1624 = vmatpush3.bf16.msra.mxu1 %v1772_v35  ;;  %1605 = vmatprep.subr.bf16.mxu0 %v1831_v1  ;;  %v1815_v35 = vld [vmem:[%s2201_s1 + $0x230] sm:$0xff]  }
  0x43   : > { %1625 = vmatprep.subr.bf16.mxu1 %v1831_v1 }
  0x45   : > { %1606 = vmatpush3.bf16.msra.mxu0 %v1773_v36  ;;  %v1816_v36 = vld [vmem:[%s2201_s1 + $0x228] sm:$0xff]  }
  0x46   : > { %1626 = vmatpush3.bf16.msra.mxu1 %v1774_v37  ;;  %1607 = vmatprep.subr.bf16.mxu0 %v1831_v1  ;;  %v1817_v37 = vld [vmem:[%s2201_s1 + $0x220] sm:$0xff]  }
  0x47   : > { %1627 = vmatprep.subr.bf16.mxu1 %v1831_v1 }
  0x49   : > { %1608 = vmatpush3.bf16.msra.mxu0 %v1775_v42  ;;  %v1460_v42 = vcombine.low %v1080_v41, %v960_v21  ;;  %v1469_v21 = vld [vmem:[%s2202_s2] ss:$0 sm:$0xff] }
  0x4a   : > { %1628 = vmatpush3.bf16.msra.mxu1 %v1776_v44  ;;  %1633 = vmatprep.subr.bf16.mxu0 %v1831_v1 }
  0x4b   : > { %1653 = vmatprep.subr.bf16.mxu1 %v1831_v1  ;;  %v1101_v44 = vrot.slane %v1460_v42, 1 }
  0x4c   : > { %1610 = vmatmul.mubr.bf16.vlgmr.msra.gmra.mxu0 %v415_v45 }
  0x4d   : > { %1634 = vmatpush3.bf16.msra.mxu0 %v1778_v46  ;;  %1630 = vmatmul.mubr.bf16.vlgmr.msra.gmra.mxu1 %v530_v47 }
  0x4e   : > { %1654 = vmatpush3.bf16.msra.mxu1 %v1781_v48  ;;  %1635 = vmatprep.subr.bf16.mxu0 %v1831_v1 }
  0x4f   : > { %1655 = vmatprep.subr.bf16.mxu1 %v1831_v1  ;;  %1649 = vmatprep.mubr.msk.bf16.mxu0 %vm1832_vm0, %v1831_v1 }
  0x50   : > { %1669 = vmatprep.mubr.msk.bf16.mxu1 %vm1832_vm0, %v1831_v1 }
  0x51   : > { %1636 = vmatpush3.bf16.msra.mxu0 %v1782_v49 }
  0x52   : > { %1656 = vmatpush3.bf16.msra.mxu1 %v1783_v50  ;;  %1637 = vmatprep.subr.bf16.mxu0 %v1831_v1 }
  0x53   : > { %1657 = vmatprep.subr.bf16.mxu1 %v1831_v1 }
  0x55   : > { %1638 = vmatpush3.bf16.msra.mxu0 %v1784_v51 }
  0x56   : > { %1658 = vmatpush3.bf16.msra.mxu1 %v1785_v52  ;;  %1639 = vmatprep.subr.bf16.mxu0 %v1831_v1 }
  0x57   : > { %1659 = vmatprep.subr.bf16.mxu1 %v1831_v1 }
  0x59   : > { %1640 = vmatpush3.bf16.msra.mxu0 %v1786_v53 }
  0x5a   : > { %1660 = vmatpush3.bf16.msra.mxu1 %v1787_v54  ;;  %1641 = vmatprep.subr.bf16.mxu0 %v1831_v1 }
  0x5b   : > { %1661 = vmatprep.subr.bf16.mxu1 %v1831_v1 }
  0x5d   : > { %1642 = vmatpush3.bf16.msra.mxu0 %v1788_v56 }
  0x5e   : > { %1662 = vmatpush3.bf16.msra.mxu1 %v1789_v57  ;;  %1643 = vmatprep.subr.bf16.mxu0 %v1831_v1 }
  0x5f   : > { %1663 = vmatprep.subr.bf16.mxu1 %v1831_v1 }
  0x61   : > { %1644 = vmatpush3.bf16.msra.mxu0 %v1790_v59 }
  0x62   : > { %1664 = vmatpush3.bf16.msra.mxu1 %v1791_v60  ;;  %1645 = vmatprep.subr.bf16.mxu0 %v1831_v1 }
  0x63   : > { %1665 = vmatprep.subr.bf16.mxu1 %v1831_v1 }
  0x65   : > { %1646 = vmatpush3.bf16.msra.mxu0 %v1792_v63 }
  0x66   : > { %1666 = vmatpush3.bf16.msra.mxu1 %v1793_v0  ;;  %1647 = vmatprep.subr.bf16.mxu0 %v1831_v1 }
  0x67   : > { %1667 = vmatprep.subr.bf16.mxu1 %v1831_v1 }
  0x69   : > { %1648 = vmatpush3.bf16.msra.mxu0 %v1794_v5 }
  0x6a   : > { %1668 = vmatpush3.bf16.msra.mxu1 %v1795_v7  ;;  %1673 = vmatprep.subr.bf16.mxu0 %v1831_v1 }
  0x6b   : > { %1693 = vmatprep.subr.bf16.mxu1 %v1831_v1 }
  0x6c   : > { %1650 = vmatmul.mubr.bf16.vlgmr.msra.gmra.mxu0 %v649_v8 }
  0x6d   : > { %1674 = vmatpush3.bf16.msra.mxu0 %v1796_v9  ;;  %1670 = vmatmul.mubr.bf16.vlgmr.msra.gmra.mxu1 %v761_v10 }
  0x6e   : > { %1694 = vmatpush3.bf16.msra.mxu1 %v1798_v11  ;;  %1675 = vmatprep.subr.bf16.mxu0 %v1831_v1 }
  0x6f   : > { %1695 = vmatprep.subr.bf16.mxu1 %v1831_v1  ;;  %1689 = vmatprep.mubr.msk.bf16.mxu0 %vm1832_vm0, %v1831_v1 }
  0x70   : > { %1709 = vmatprep.mubr.msk.bf16.mxu1 %vm1832_vm0, %v1831_v1 }
  0x71   : > { %1676 = vmatpush3.bf16.msra.mxu0 %v1799_v12 }
  0x72   : > { %1696 = vmatpush3.bf16.msra.mxu1 %v1800_v13  ;;  %1677 = vmatprep.subr.bf16.mxu0 %v1831_v1 }
  0x73   : > { %1697 = vmatprep.subr.bf16.mxu1 %v1831_v1 }
  0x75   : > { %1678 = vmatpush3.bf16.msra.mxu0 %v1801_v14 }
  0x76   : > { %1698 = vmatpush3.bf16.msra.mxu1 %v1802_v15  ;;  %1679 = vmatprep.subr.bf16.mxu0 %v1831_v1 }
  0x77   : > { %1699 = vmatprep.subr.bf16.mxu1 %v1831_v1 }
  0x79   : > { %1680 = vmatpush3.bf16.msra.mxu0 %v1803_v16 }
  0x7a   : > { %1700 = vmatpush3.bf16.msra.mxu1 %v1804_v17  ;;  %1681 = vmatprep.subr.bf16.mxu0 %v1831_v1 }
  0x7b   : > { %1701 = vmatprep.subr.bf16.mxu1 %v1831_v1 }
  0x7d   : > { %1682 = vmatpush3.bf16.msra.mxu0 %v1805_v18 }
  0x7e   : > { %1702 = vmatpush3.bf16.msra.mxu1 %v1806_v19  ;;  %1683 = vmatprep.subr.bf16.mxu0 %v1831_v1 }
  0x7f   : > { %1703 = vmatprep.subr.bf16.mxu1 %v1831_v1 }
  0x81   : > { %1684 = vmatpush3.bf16.msra.mxu0 %v1807_v22 }
  0x82   : > { %1704 = vmatpush3.bf16.msra.mxu1 %v1808_v24  ;;  %1685 = vmatprep.subr.bf16.mxu0 %v1831_v1 }
  0x83   : > { %1705 = vmatprep.subr.bf16.mxu1 %v1831_v1 }
  0x85   : > { %1686 = vmatpush3.bf16.msra.mxu0 %v1809_v25 }
  0x86   : > { %1706 = vmatpush3.bf16.msra.mxu1 %v1810_v27  ;;  %1687 = vmatprep.subr.bf16.mxu0 %v1831_v1 }
  0x87   : > { %1707 = vmatprep.subr.bf16.mxu1 %v1831_v1 }
  0x89   : > { %1688 = vmatpush3.bf16.msra.mxu0 %v1811_v28 }
  0x8a   : > { %1708 = vmatpush3.bf16.msra.mxu1 %v1812_v31  ;;  %1713 = vmatprep.subr.bf16.mxu0 %v1831_v1 }
  0x8c   : > { %1690 = vmatmul.mubr.bf16.vlgmr.msra.gmra.mxu0 %v852_v32 }
  0x8d   : > { %1714 = vmatpush3.bf16.msra.mxu0 %v1813_v33  ;;  %1710 = vmatmul.mubr.bf16.vlgmr.msra.gmra.mxu1 %v989_v34 }
  0x8e   : > { %1715 = vmatprep.subr.bf16.mxu0 %v1831_v1  ;;  %1729 = vmatprep.mubr.msk.bf16.mxu0 %vm1832_vm0, %v1831_v1 }
  0x91   : > { %1716 = vmatpush3.bf16.msra.mxu0 %v1815_v35 }
  0x92   : > { %1717 = vmatprep.subr.bf16.mxu0 %v1831_v1 }
  0x95   : > { %1718 = vmatpush3.bf16.msra.mxu0 %v1816_v36 }
  0x96   : > { %1719 = vmatprep.subr.bf16.mxu0 %v1831_v1 }
  0x99   : > { %1720 = vmatpush3.bf16.msra.mxu0 %v1817_v37 }
  0x9a   : > { %1721 = vmatprep.subr.bf16.mxu0 %v1831_v1 }
  0x9d   : > { %1722 = vmatpush3.bf16.msra.mxu0 %v1818_v38 }
  0x9e   : > { %1723 = vmatprep.subr.bf16.mxu0 %v1831_v1 }
  0xa1   : > { %1724 = vmatpush3.bf16.msra.mxu0 %v1819_v39 }
  0xa2   : > { %1725 = vmatprep.subr.bf16.mxu0 %v1831_v1 }
  0xa5   : > { %1726 = vmatpush3.bf16.msra.mxu0 %v1820_v40 }
  0xa6   : > { %1727 = vmatprep.subr.bf16.mxu0 %v1831_v1 }
  0xa9   : > { %1728 = vmatpush3.bf16.msra.mxu0 %v1821_v43 }
  0xac   : > { %1730 = vmatmul.mubr.bf16.vlgmr.msra.gmra.mxu0 %v1101_v44 }
  0xec   : > { %v300_v45 = vpop.f32.mrf.mxu0 }
  0xed   : > { %v388_v46 = vpop.f32.mrf.mxu1 }
  0xee   : > { %v389_v47 = vadd.f32 %v388_v46, %v300_v45  ;;  %v1571_v48 = vpop.f32.mrf.mxu0 }
  0xef   : > { %v1591_v49 = vpop.f32.mrf.mxu1 }
  0xf0   : > { %v303_v50 = vpop.f32.mrf.mxu0 }
  0xf1   : > { %v391_v51 = vpop.f32.mrf.mxu1 }
  0xf2   : > { %v1572_v52 = vpop.f32.mrf.mxu0 }
  0xf3   : > { %v1592_v53 = vpop.f32.mrf.mxu1 }
 0x10c   : > { %v499_v54 = vpop.f32.mrf.mxu0 }
 0x10d   : > { %v505_v55 = vadd.f32 %v499_v54, %v389_v47  ;;  %v614_v56 = vpop.f32.mrf.mxu1 }
 0x10e   : > { %v1611_v57 = vpop.f32.mrf.mxu0 }
 0x10f   : > { %v620_v58 = vadd.f32 %v614_v56, %v505_v55  ;;  %v1631_v59 = vpop.f32.mrf.mxu1 }
 0x110   : > { %v502_v60 = vpop.f32.mrf.mxu0 }
 0x111   : > { %v617_v1 = vpop.f32.mrf.mxu1 }
 0x112   : > { %v1612_v61 = vpop.f32.mrf.mxu0 }
 0x113   : > { %v1632_v62 = vpop.f32.mrf.mxu1 }
 0x12c   : > { %v733_v63 = vpop.f32.mrf.mxu0 }
 0x12d   : > { %v845_v0 = vpop.f32.mrf.mxu1  ;;  %v739_v16 = vadd.f32 %v733_v63, %v620_v58 }
 0x12e   : > { %v1651_v2 = vpop.f32.mrf.mxu0 }
 0x12f   : > { %v1671_v3 = vpop.f32.mrf.mxu1  ;;  %v851_v17 = vadd.f32 %v845_v0, %v739_v16 }
 0x130   : > { %v736_v4 = vpop.f32.mrf.mxu0 }
 0x131   : > { %v848_v5 = vpop.f32.mrf.mxu1 }
 0x132   : > { %v1652_v6 = vpop.f32.mrf.mxu0 }
 0x133   : > { %v1672_v7 = vpop.f32.mrf.mxu1 }
 0x14c   : > { %v952_v8 = vpop.f32.mrf.mxu0 }
 0x14d   : > { %v1073_v9 = vpop.f32.mrf.mxu1  ;;  %v958_v18 = vadd.f32 %v952_v8, %v851_v17 }
 0x14e   : > { %v1691_v10 = vpop.f32.mrf.mxu0 }
 0x14f   : > { %v1711_v11 = vpop.f32.mrf.mxu1  ;;  %v1079_v19 = vadd.f32 %v1073_v9, %v958_v18 }
 0x150   : > { %v955_v12 = vpop.f32.mrf.mxu0 }
 0x151   : > { %v1076_v13 = vpop.f32.mrf.mxu1 }
 0x152   : > { %v1692_v14 = vpop.f32.mrf.mxu0 }
 0x153   : > { %v1712_v15 = vpop.f32.mrf.mxu1 }
 0x16c   : > { %v1185_v20 = vpop.f32.mrf.mxu0 }
 0x16d   : > { %v1191_v22 = vadd.f32 %v1185_v20, %v1079_v19 }
 0x16e   : > { %v1731_v23 = vpop.f32.mrf.mxu0 }
 0x16f   : > { %v1199_v24 = vadd.f32 %v1469_v21, %v1191_v22 }
 0x170   : > { %v1188_v25 = vpop.f32.mrf.mxu0 }
 0x171   : > { %v1200_v26 = vpack.c.bf16 %v1199_v24, %v1199_v24 }
 0x172   : > { %v1732_v27 = vpop.f32.mrf.mxu0 }
 0x173   : > { %1201 = vst [vmem:[%s168_s21] sm:$0xf] %v1200_v26 }
 0x174 PF: > { %s13_s12 = sadd.s32 1, %s1829_s12  }
 0x175   : > { %p10_p4 = scmp.ge.s32.totalorder %s13_s12, 4  }
 0x177   :  { %12 = sbr.rel (!%p10_p4) target bundleno = 1 (0x1), region = 70 }

// kernel: _lambda_.27
= control target key start
LH: loop header
LB: loop body
LE: loop exit
PB: predicated region body
PF: predicated region fallthrough
CT: control target
= control target key end

     0   :  { %s1854_s12 = smov 0   ;;  %s2201_s0 = inlined_call_operand.vmem [shape: bf16[2,20,128], index: 0, kind: input, shape index: {}]   ;;  %s2202_s1 = inlined_call_operand.vmem [shape: bf16[9,128,128], index: 1, kind: input, shape index: {}]   ;;  %s2203_s2 = inlined_call_operand.vmem [shape: f32[1,128], index: 2, kind: input, shape index: {}]   ;;  %s2204_s3 = inlined_call_operand.vmem [shape: bf16[2,8,128], index: 3, kind: output, shape index: {}]  }
   0x1 LB: > { %s1256_s13 = sadd.s32 4294967295, %s1830_s12   ;;  %p1260_p0 = scmp.ge.s32.totalorder %s1830_s12, 1  ;;  %s1830_s12 = sphi %s1854_s12, %s13_s12  }
   0x2   : > { %p137_p1 = scmp.lt.s32.totalorder %s1830_s12, 3 }
   0x4   : > { %p138_p2 = pnand %p1260_p0, %p137_p1 }
   0x5   : > { %p160_p3 = scmp.lt.s32.totalorder (!%p138_p2), %s1256_s13, 1 }
   0x6   : > { %141 = sbr.rel (%p138_p2) target bundleno = 374 (0x176), region = 32 }
   0xb   : > { %v1745_v0 = vld [vmem:[%s2202_s1 + $0x78] sm:$0xff]   ;;  %v1832_v1 = vmov 0.0   ;;  %v1747_v3 = vld [vmem:[%s2202_s1 + $0x70] sm:$0xff]   ;;  %vm1833_vm0 = vmmov 0   ;;  %s2206_s13 = smov (!%p160_p3, %s1256_s13), 1  ;;  %v1749_v5 = vld [vmem:[%s2202_s1 + $0x68] sm:$0xff]  }
   0xc   : > { %1554 = vmatprep.subr.bf16.mxu0 %v1832_v1  ;;  %1574 = vmatprep.subr.bf16.mxu1 %v1832_v1  ;;  %v1746_v2 = vld [vmem:[%s2202_s1 + $0x38] sm:$0xff]   ;;  %v1748_v4 = vld [vmem:[%s2202_s1 + $0x30] sm:$0xff]   ;;  %v1750_v6 = vld [vmem:[%s2202_s1 + $0x28] sm:$0xff]   ;;  %s1734_s26 = smul.u32 12, %s2206_s13  ;;  %s1262_s18 = sshll.u32 %s2206_s13, 2 }
   0xd   : > { %1555 = vmatpush3.bf16.msra.mxu0 %v1745_v0  ;;  %1570 = vmatprep.mubr.msk.bf16.mxu0 %vm1833_vm0, %v1832_v1  ;;  %v1751_v7 = vld [vmem:[%s2202_s1 + $0x60] sm:$0xff]   ;;  %v1753_v9 = vld [vmem:[%s2202_s1 + $0x58] sm:$0xff]   ;;  %v1755_v14 = vld [vmem:[%s2202_s1 + $0x50] sm:$0xff]   ;;  %s168_s21 = scalar_lea.vmem %s2204_s3, %s1262_s18 }
   0xe   : > { %1575 = vmatpush3.bf16.msra.mxu1 %v1746_v2  ;;  %1556 = vmatprep.subr.bf16.mxu0 %v1832_v1  ;;  %v1752_v8 = vld [vmem:[%s2202_s1 + $0x20] sm:$0xff]   ;;  %s1904_s6 = scalar_lea.vmem %s2201_s0, %s1734_s26  ;;  %v1754_v10 = vld [vmem:[%s2202_s1 + $0x18] sm:$0xff]   ;;  %v1756_v15 = vld [vmem:[%s2202_s1 + $0x10] sm:$0xff]  }
   0xf   : > { %1576 = vmatprep.subr.bf16.mxu1 %v1832_v1  ;;  %1590 = vmatprep.mubr.msk.bf16.mxu1 %vm1833_vm0, %v1832_v1  ;;  %v170_v11 = vld [vmem:[%s1904_s6] sm:$0xf]  ;;  %v1916_v12 = vld [vmem:[%s1904_s6 + $0x4] sm:$0x1]  ;;  %v1757_v17 = vld [vmem:[%s2202_s1 + $0x48] sm:$0xff]  }
  0x10   : > { %v1279_v13 = vcombine.low %v170_v11, %v1916_v12  ;;  %v1758_v18 = vld [vmem:[%s2202_s1 + $0x8] sm:$0xff]   ;;  %v1759_v21 = vld [vmem:[%s2202_s1 + $0x40] sm:$0xff]   ;;  %v1762_v24 = vld [vmem:[%s2202_s1 + $0xb8] sm:$0xff]  }
  0x11   : > { %1557 = vmatpush3.bf16.msra.mxu0 %v1747_v3  ;;  %v1760_v22 = vld [vmem:[%s2202_s1] sm:$0xff]   ;;  %v1763_v25 = vld [vmem:[%s2202_s1 + $0xf8] sm:$0xff]   ;;  %v1764_v26 = vld [vmem:[%s2202_s1 + $0xb0] sm:$0xff]  }
  0x12   : > { %1577 = vmatpush3.bf16.msra.mxu1 %v1748_v4  ;;  %1558 = vmatprep.subr.bf16.mxu0 %v1832_v1  ;;  %v213_v16 = vshll.u32 %v1279_v13, 16  ;;  %v211_v19 = vshrl.u32 %v1279_v13, 16  ;;  %v1765_v27 = vld [vmem:[%s2202_s1 + $0xf0] sm:$0xff]   ;;  %v1766_v28 = vld [vmem:[%s2202_s1 + $0xa8] sm:$0xff]   ;;  %v1768_v30 = vld [vmem:[%s2202_s1 + $0xa0] sm:$0xff]  }
  0x13   : > { %1578 = vmatprep.subr.bf16.mxu1 %v1832_v1  ;;  %v1767_v29 = vld [vmem:[%s2202_s1 + $0xe8] sm:$0xff]   ;;  %v1769_v31 = vld [vmem:[%s2202_s1 + $0xe0] sm:$0xff]   ;;  %v1770_v32 = vld [vmem:[%s2202_s1 + $0x98] sm:$0xff]  }
  0x14   : > { %v215_v20 = vrot.slane %v213_v16, 1  ;;  %v1771_v33 = vld [vmem:[%s2202_s1 + $0xd8] sm:$0xff]   ;;  %v1772_v34 = vld [vmem:[%s2202_s1 + $0x90] sm:$0xff]   ;;  %v1774_v36 = vld [vmem:[%s2202_s1 + $0x88] sm:$0xff]  }
  0x15   : > { %1559 = vmatpush3.bf16.msra.mxu0 %v1749_v5  ;;  %v1773_v35 = vld [vmem:[%s2202_s1 + $0xd0] sm:$0xff]   ;;  %v1775_v37 = vld [vmem:[%s2202_s1 + $0xc8] sm:$0xff]   ;;  %v394_v38 = vld [vmem:[%s1904_s6] sm:$0xe] }
  0x16   : > { %1579 = vmatpush3.bf16.msra.mxu1 %v1750_v6  ;;  %1560 = vmatprep.subr.bf16.mxu0 %v1832_v1  ;;  %v216_v23 = vor.u32 %v215_v20, %v211_v19  ;;  %v506_v39 = vld [vmem:[%s1904_s6] sm:$0xc]  ;;  %v507_v40 = vld [vmem:[%s1904_s6 + $0x4] sm:$0x3]  ;;  %v1312_v41 = vcombine.low %v394_v38, %v1916_v12  ;;  %v1779_v46 = vld [vmem:[%s2202_s1 + $0x138] sm:$0xff]  }
  0x17   : > { %1580 = vmatprep.subr.bf16.mxu1 %v1832_v1  ;;  %v1776_v42 = vld [vmem:[%s2202_s1 + $0x80] sm:$0xff]   ;;  %v1337_v43 = vcombine.low %v506_v39, %v507_v40  ;;  %v1782_v48 = vld [vmem:[%s2202_s1 + $0x178] sm:$0xff]   ;;  %v1783_v49 = vld [vmem:[%s2202_s1 + $0x130] sm:$0xff]  }
  0x18   : > { %v1777_v44 = vld [vmem:[%s2202_s1 + $0xc0] sm:$0xff]   ;;  %v415_v45 = vrot.slane %v1312_v41, 1  ;;  %v1784_v50 = vld [vmem:[%s2202_s1 + $0x170] sm:$0xff]   ;;  %v1785_v51 = vld [vmem:[%s2202_s1 + $0x128] sm:$0xff]  }
  0x19   : > { %1561 = vmatpush3.bf16.msra.mxu0 %v1751_v7  ;;  %v530_v47 = vrot.slane %v1337_v43, 2  ;;  %v1786_v52 = vld [vmem:[%s2202_s1 + $0x168] sm:$0xff]   ;;  %v1787_v53 = vld [vmem:[%s2202_s1 + $0x120] sm:$0xff]   ;;  %v1789_v56 = vld [vmem:[%s2202_s1 + $0x118] sm:$0xff]  }
  0x1a   : > { %1581 = vmatpush3.bf16.msra.mxu1 %v1752_v8  ;;  %1562 = vmatprep.subr.bf16.mxu0 %v1832_v1  ;;  %v1788_v54 = vld [vmem:[%s2202_s1 + $0x160] sm:$0xff]   ;;  %v1790_v57 = vld [vmem:[%s2202_s1 + $0x158] sm:$0xff]   ;;  %v1791_v59 = vld [vmem:[%s2202_s1 + $0x110] sm:$0xff]  }
  0x1b   : > { %1582 = vmatprep.subr.bf16.mxu1 %v1832_v1  ;;  %v621_v55 = vld [vmem:[%s1904_s6 + $0x4] sm:$0x7]  ;;  %v1792_v60 = vld [vmem:[%s2202_s1 + $0x150] sm:$0xff]   ;;  %v1793_v63 = vld [vmem:[%s2202_s1 + $0x108] sm:$0xff]  }
  0x1c   : > { %v1362_v58 = vcombine.low %v506_v39, %v621_v55  ;;  %v1794_v0 = vld [vmem:[%s2202_s1 + $0x148] sm:$0xff]   ;;  %v740_v2 = vld [vmem:[%s1904_s6] sm:$0x8]  ;;  %v1800_v12 = vld [vmem:[%s2202_s1 + $0x1b0] sm:$0xff]  }
  0x1d   : > { %1563 = vmatpush3.bf16.msra.mxu0 %v1753_v9  ;;  %v1795_v5 = vld [vmem:[%s2202_s1 + $0x100] sm:$0xff]   ;;  %v1387_v6 = vcombine.low %v740_v2, %v621_v55  ;;  %v1797_v9 = vld [vmem:[%s2202_s1 + $0x1b8] sm:$0xff]   ;;  %v1801_v13 = vld [vmem:[%s2202_s1 + $0x1f0] sm:$0xff]  }
  0x1e   : > { %1583 = vmatpush3.bf16.msra.mxu1 %v1754_v10  ;;  %1564 = vmatprep.subr.bf16.mxu0 %v1832_v1  ;;  %v643_v61 = vshrl.u32 %v1362_v58, 16  ;;  %v646_v62 = vshll.u32 %v1362_v58, 16  ;;  %v1796_v7 = vld [vmem:[%s2202_s1 + $0x140] sm:$0xff]   ;;  %v1807_v19 = vld [vmem:[%s2202_s1 + $0x1d8] sm:$0xff]   ;;  %v1820_v39 = vld [vmem:[%s2202_s1 + $0x210] sm:$0xff]  }
  0x1f   : > { %1584 = vmatprep.subr.bf16.mxu1 %v1832_v1  ;;  %v761_v10 = vrot.slane %v1387_v6, 3  ;;  %v1804_v16 = vld [vmem:[%s2202_s1 + $0x1a0] sm:$0xff]   ;;  %v1819_v38 = vld [vmem:[%s2202_s1 + $0x218] sm:$0xff]   ;;  %v1821_v40 = vld [vmem:[%s2202_s1 + $0x208] sm:$0xff]  }
  0x20   : > { %v645_v3 = vrot.slane %v643_v61, 2  ;;  %v648_v4 = vrot.slane %v646_v62, 3  ;;  %v959_v20 = vld [vmem:[%s1904_s6 + $0x4] sm:$0xf] }
  0x21   : > { %1565 = vmatpush3.bf16.msra.mxu0 %v1755_v14  ;;  %v1802_v14 = vld [vmem:[%s2202_s1 + $0x1a8] sm:$0xff]   ;;  %v1080_v41 = vld [vmem:[%s1904_s6 + $0x4] sm:$0xe] }
  0x22   : > { %1585 = vmatpush3.bf16.msra.mxu1 %v1756_v15  ;;  %1566 = vmatprep.subr.bf16.mxu0 %v1832_v1  ;;  %v649_v8 = vor.u32 %v648_v4, %v645_v3  ;;  %v1803_v15 = vld [vmem:[%s2202_s1 + $0x1e8] sm:$0xff]   ;;  %v1822_v43 = vld [vmem:[%s2202_s1 + $0x200] sm:$0xff]  }
  0x23   : > { %1586 = vmatprep.subr.bf16.mxu1 %v1832_v1 }
  0x25   : > { %1567 = vmatpush3.bf16.msra.mxu0 %v1757_v17  ;;  %v1805_v17 = vld [vmem:[%s2202_s1 + $0x1e0] sm:$0xff]  }
  0x26   : > { %1587 = vmatpush3.bf16.msra.mxu1 %v1758_v18  ;;  %1568 = vmatprep.subr.bf16.mxu0 %v1832_v1  ;;  %v1806_v18 = vld [vmem:[%s2202_s1 + $0x198] sm:$0xff]  }
  0x27   : > { %1588 = vmatprep.subr.bf16.mxu1 %v1832_v1 }
  0x29   : > { %1569 = vmatpush3.bf16.msra.mxu0 %v1759_v21  ;;  %v960_v21 = vld [vmem:[%s1904_s6 + $0x8] sm:$0x1] }
  0x2a   : > { %1589 = vmatpush3.bf16.msra.mxu1 %v1760_v22  ;;  %1594 = vmatprep.subr.bf16.mxu0 %v1832_v1  ;;  %v1808_v22 = vld [vmem:[%s2202_s1 + $0x190] sm:$0xff]  }
  0x2b   : > { %1614 = vmatprep.subr.bf16.mxu1 %v1832_v1 }
  0x2c   : > { %1571 = vmatmul.mubr.bf16.vlgmr.msra.gmra.mxu0 %v216_v23  ;;  %v1436_v23 = vcombine.low %v959_v20, %v960_v21 }
  0x2d   : > { %1591 = vmatmul.mubr.bf16.vlgmr.msra.gmra.mxu1 %v170_v11  ;;  %1595 = vmatpush3.bf16.msra.mxu0 %v1762_v24  ;;  %v1799_v11 = vld [vmem:[%s2202_s1 + $0x1f8] sm:$0xff]   ;;  %v1809_v24 = vld [vmem:[%s2202_s1 + $0x1d0] sm:$0xff]  }
  0x2e   : > { %1615 = vmatpush3.bf16.msra.mxu1 %v1763_v25  ;;  %1596 = vmatprep.subr.bf16.mxu0 %v1832_v1  ;;  %v1810_v25 = vld [vmem:[%s2202_s1 + $0x188] sm:$0xff]  }
  0x2f   : > { %1616 = vmatprep.subr.bf16.mxu1 %v1832_v1  ;;  %1610 = vmatprep.mubr.msk.bf16.mxu0 %vm1833_vm0, %v1832_v1 }
  0x30   : > { %1630 = vmatprep.mubr.msk.bf16.mxu1 %vm1833_vm0, %v1832_v1 }
  0x31   : > { %1597 = vmatpush3.bf16.msra.mxu0 %v1764_v26  ;;  %v986_v26 = vshll.u32 %v1436_v23, 16 }
  0x32   : > { %1617 = vmatpush3.bf16.msra.mxu1 %v1765_v27  ;;  %1598 = vmatprep.subr.bf16.mxu0 %v1832_v1  ;;  %v1811_v27 = vld [vmem:[%s2202_s1 + $0x1c8] sm:$0xff]  }
  0x33   : > { %1618 = vmatprep.subr.bf16.mxu1 %v1832_v1 }
  0x35   : > { %1599 = vmatpush3.bf16.msra.mxu0 %v1766_v28  ;;  %v1812_v28 = vld [vmem:[%s2202_s1 + $0x180] sm:$0xff]  }
  0x36   : > { %1619 = vmatpush3.bf16.msra.mxu1 %v1767_v29  ;;  %1600 = vmatprep.subr.bf16.mxu0 %v1832_v1  ;;  %v984_v29 = vshrl.u32 %v1436_v23, 16 }
  0x37   : > { %1620 = vmatprep.subr.bf16.mxu1 %v1832_v1 }
  0x39   : > { %1601 = vmatpush3.bf16.msra.mxu0 %v1768_v30  ;;  %v988_v30 = vrot.slane %v986_v26, 1 }
  0x3a   : > { %1621 = vmatpush3.bf16.msra.mxu1 %v1769_v31  ;;  %1602 = vmatprep.subr.bf16.mxu0 %v1832_v1  ;;  %v1813_v31 = vld [vmem:[%s2202_s1 + $0x1c0] sm:$0xff]  }
  0x3b   : > { %1622 = vmatprep.subr.bf16.mxu1 %v1832_v1 }
  0x3d   : > { %1603 = vmatpush3.bf16.msra.mxu0 %v1770_v32  ;;  %v852_v32 = vld [vmem:[%s1904_s6 + $0x4] sm:$0xf] }
  0x3e   : > { %1623 = vmatpush3.bf16.msra.mxu1 %v1771_v33  ;;  %1604 = vmatprep.subr.bf16.mxu0 %v1832_v1  ;;  %v1814_v33 = vld [vmem:[%s2202_s1 + $0x238] sm:$0xff]  }
  0x3f   : > { %1624 = vmatprep.subr.bf16.mxu1 %v1832_v1 }
  0x41   : > { %1605 = vmatpush3.bf16.msra.mxu0 %v1772_v34  ;;  %v989_v34 = vor.u32 %v988_v30, %v984_v29 }
  0x42   : > { %1625 = vmatpush3.bf16.msra.mxu1 %v1773_v35  ;;  %1606 = vmatprep.subr.bf16.mxu0 %v1832_v1  ;;  %v1816_v35 = vld [vmem:[%s2202_s1 + $0x230] sm:$0xff]  }
  0x43   : > { %1626 = vmatprep.subr.bf16.mxu1 %v1832_v1 }
  0x45   : > { %1607 = vmatpush3.bf16.msra.mxu0 %v1774_v36  ;;  %v1817_v36 = vld [vmem:[%s2202_s1 + $0x228] sm:$0xff]  }
  0x46   : > { %1627 = vmatpush3.bf16.msra.mxu1 %v1775_v37  ;;  %1608 = vmatprep.subr.bf16.mxu0 %v1832_v1  ;;  %v1818_v37 = vld [vmem:[%s2202_s1 + $0x220] sm:$0xff]  }
  0x47   : > { %1628 = vmatprep.subr.bf16.mxu1 %v1832_v1 }
  0x49   : > { %1609 = vmatpush3.bf16.msra.mxu0 %v1776_v42  ;;  %v1461_v42 = vcombine.low %v1080_v41, %v960_v21  ;;  %v1470_v21 = vld [vmem:[%s2203_s2] ss:$0 sm:$0xff] }
  0x4a   : > { %1629 = vmatpush3.bf16.msra.mxu1 %v1777_v44  ;;  %1634 = vmatprep.subr.bf16.mxu0 %v1832_v1 }
  0x4b   : > { %1654 = vmatprep.subr.bf16.mxu1 %v1832_v1  ;;  %v1101_v44 = vrot.slane %v1461_v42, 1 }
  0x4c   : > { %1611 = vmatmul.mubr.bf16.vlgmr.msra.gmra.mxu0 %v415_v45 }
  0x4d   : > { %1635 = vmatpush3.bf16.msra.mxu0 %v1779_v46  ;;  %1631 = vmatmul.mubr.bf16.vlgmr.msra.gmra.mxu1 %v530_v47 }
  0x4e   : > { %1655 = vmatpush3.bf16.msra.mxu1 %v1782_v48  ;;  %1636 = vmatprep.subr.bf16.mxu0 %v1832_v1 }
  0x4f   : > { %1656 = vmatprep.subr.bf16.mxu1 %v1832_v1  ;;  %1650 = vmatprep.mubr.msk.bf16.mxu0 %vm1833_vm0, %v1832_v1 }
  0x50   : > { %1670 = vmatprep.mubr.msk.bf16.mxu1 %vm1833_vm0, %v1832_v1 }
  0x51   : > { %1637 = vmatpush3.bf16.msra.mxu0 %v1783_v49 }
  0x52   : > { %1657 = vmatpush3.bf16.msra.mxu1 %v1784_v50  ;;  %1638 = vmatprep.subr.bf16.mxu0 %v1832_v1 }
  0x53   : > { %1658 = vmatprep.subr.bf16.mxu1 %v1832_v1 }
  0x55   : > { %1639 = vmatpush3.bf16.msra.mxu0 %v1785_v51 }
  0x56   : > { %1659 = vmatpush3.bf16.msra.mxu1 %v1786_v52  ;;  %1640 = vmatprep.subr.bf16.mxu0 %v1832_v1 }
  0x57   : > { %1660 = vmatprep.subr.bf16.mxu1 %v1832_v1 }
  0x59   : > { %1641 = vmatpush3.bf16.msra.mxu0 %v1787_v53 }
  0x5a   : > { %1661 = vmatpush3.bf16.msra.mxu1 %v1788_v54  ;;  %1642 = vmatprep.subr.bf16.mxu0 %v1832_v1 }
  0x5b   : > { %1662 = vmatprep.subr.bf16.mxu1 %v1832_v1 }
  0x5d   : > { %1643 = vmatpush3.bf16.msra.mxu0 %v1789_v56 }
  0x5e   : > { %1663 = vmatpush3.bf16.msra.mxu1 %v1790_v57  ;;  %1644 = vmatprep.subr.bf16.mxu0 %v1832_v1 }
  0x5f   : > { %1664 = vmatprep.subr.bf16.mxu1 %v1832_v1 }
  0x61   : > { %1645 = vmatpush3.bf16.msra.mxu0 %v1791_v59 }
  0x62   : > { %1665 = vmatpush3.bf16.msra.mxu1 %v1792_v60  ;;  %1646 = vmatprep.subr.bf16.mxu0 %v1832_v1 }
  0x63   : > { %1666 = vmatprep.subr.bf16.mxu1 %v1832_v1 }
  0x65   : > { %1647 = vmatpush3.bf16.msra.mxu0 %v1793_v63 }
  0x66   : > { %1667 = vmatpush3.bf16.msra.mxu1 %v1794_v0  ;;  %1648 = vmatprep.subr.bf16.mxu0 %v1832_v1 }
  0x67   : > { %1668 = vmatprep.subr.bf16.mxu1 %v1832_v1 }
  0x69   : > { %1649 = vmatpush3.bf16.msra.mxu0 %v1795_v5 }
  0x6a   : > { %1669 = vmatpush3.bf16.msra.mxu1 %v1796_v7  ;;  %1674 = vmatprep.subr.bf16.mxu0 %v1832_v1 }
  0x6b   : > { %1694 = vmatprep.subr.bf16.mxu1 %v1832_v1 }
  0x6c   : > { %1651 = vmatmul.mubr.bf16.vlgmr.msra.gmra.mxu0 %v649_v8 }
  0x6d   : > { %1675 = vmatpush3.bf16.msra.mxu0 %v1797_v9  ;;  %1671 = vmatmul.mubr.bf16.vlgmr.msra.gmra.mxu1 %v761_v10 }
  0x6e   : > { %1695 = vmatpush3.bf16.msra.mxu1 %v1799_v11  ;;  %1676 = vmatprep.subr.bf16.mxu0 %v1832_v1 }
  0x6f   : > { %1696 = vmatprep.subr.bf16.mxu1 %v1832_v1  ;;  %1690 = vmatprep.mubr.msk.bf16.mxu0 %vm1833_vm0, %v1832_v1 }
  0x70   : > { %1710 = vmatprep.mubr.msk.bf16.mxu1 %vm1833_vm0, %v1832_v1 }
  0x71   : > { %1677 = vmatpush3.bf16.msra.mxu0 %v1800_v12 }
  0x72   : > { %1697 = vmatpush3.bf16.msra.mxu1 %v1801_v13  ;;  %1678 = vmatprep.subr.bf16.mxu0 %v1832_v1 }
  0x73   : > { %1698 = vmatprep.subr.bf16.mxu1 %v1832_v1 }
  0x75   : > { %1679 = vmatpush3.bf16.msra.mxu0 %v1802_v14 }
  0x76   : > { %1699 = vmatpush3.bf16.msra.mxu1 %v1803_v15  ;;  %1680 = vmatprep.subr.bf16.mxu0 %v1832_v1 }
  0x77   : > { %1700 = vmatprep.subr.bf16.mxu1 %v1832_v1 }
  0x79   : > { %1681 = vmatpush3.bf16.msra.mxu0 %v1804_v16 }
  0x7a   : > { %1701 = vmatpush3.bf16.msra.mxu1 %v1805_v17  ;;  %1682 = vmatprep.subr.bf16.mxu0 %v1832_v1 }
  0x7b   : > { %1702 = vmatprep.subr.bf16.mxu1 %v1832_v1 }
  0x7d   : > { %1683 = vmatpush3.bf16.msra.mxu0 %v1806_v18 }
  0x7e   : > { %1703 = vmatpush3.bf16.msra.mxu1 %v1807_v19  ;;  %1684 = vmatprep.subr.bf16.mxu0 %v1832_v1 }
  0x7f   : > { %1704 = vmatprep.subr.bf16.mxu1 %v1832_v1 }
  0x81   : > { %1685 = vmatpush3.bf16.msra.mxu0 %v1808_v22 }
  0x82   : > { %1705 = vmatpush3.bf16.msra.mxu1 %v1809_v24  ;;  %1686 = vmatprep.subr.bf16.mxu0 %v1832_v1 }
  0x83   : > { %1706 = vmatprep.subr.bf16.mxu1 %v1832_v1 }
  0x85   : > { %1687 = vmatpush3.bf16.msra.mxu0 %v1810_v25 }
  0x86   : > { %1707 = vmatpush3.bf16.msra.mxu1 %v1811_v27  ;;  %1688 = vmatprep.subr.bf16.mxu0 %v1832_v1 }
  0x87   : > { %1708 = vmatprep.subr.bf16.mxu1 %v1832_v1 }
  0x89   : > { %1689 = vmatpush3.bf16.msra.mxu0 %v1812_v28 }
  0x8a   : > { %1709 = vmatpush3.bf16.msra.mxu1 %v1813_v31  ;;  %1714 = vmatprep.subr.bf16.mxu0 %v1832_v1 }
  0x8c   : > { %1691 = vmatmul.mubr.bf16.vlgmr.msra.gmra.mxu0 %v852_v32 }
  0x8d   : > { %1715 = vmatpush3.bf16.msra.mxu0 %v1814_v33  ;;  %1711 = vmatmul.mubr.bf16.vlgmr.msra.gmra.mxu1 %v989_v34 }
  0x8e   : > { %1716 = vmatprep.subr.bf16.mxu0 %v1832_v1  ;;  %1730 = vmatprep.mubr.msk.bf16.mxu0 %vm1833_vm0, %v1832_v1 }
  0x91   : > { %1717 = vmatpush3.bf16.msra.mxu0 %v1816_v35 }
  0x92   : > { %1718 = vmatprep.subr.bf16.mxu0 %v1832_v1 }
  0x95   : > { %1719 = vmatpush3.bf16.msra.mxu0 %v1817_v36 }
  0x96   : > { %1720 = vmatprep.subr.bf16.mxu0 %v1832_v1 }
  0x99   : > { %1721 = vmatpush3.bf16.msra.mxu0 %v1818_v37 }
  0x9a   : > { %1722 = vmatprep.subr.bf16.mxu0 %v1832_v1 }
  0x9d   : > { %1723 = vmatpush3.bf16.msra.mxu0 %v1819_v38 }
  0x9e   : > { %1724 = vmatprep.subr.bf16.mxu0 %v1832_v1 }
  0xa1   : > { %1725 = vmatpush3.bf16.msra.mxu0 %v1820_v39 }
  0xa2   : > { %1726 = vmatprep.subr.bf16.mxu0 %v1832_v1 }
  0xa5   : > { %1727 = vmatpush3.bf16.msra.mxu0 %v1821_v40 }
  0xa6   : > { %1728 = vmatprep.subr.bf16.mxu0 %v1832_v1 }
  0xa9   : > { %1729 = vmatpush3.bf16.msra.mxu0 %v1822_v43 }
  0xac   : > { %1731 = vmatmul.mubr.bf16.vlgmr.msra.gmra.mxu0 %v1101_v44 }
  0xec   : > { %v300_v45 = vpop.f32.mrf.mxu0 }
  0xed   : > { %v388_v46 = vpop.f32.mrf.mxu1 }
  0xee   : > { %v389_v47 = vadd.f32 %v388_v46, %v300_v45  ;;  %v1572_v48 = vpop.f32.mrf.mxu0 }
  0xef   : > { %v1592_v49 = vpop.f32.mrf.mxu1 }
  0xf0   : > { %v303_v50 = vpop.f32.mrf.mxu0 }
  0xf1   : > { %v391_v51 = vpop.f32.mrf.mxu1 }
  0xf2   : > { %v1573_v52 = vpop.f32.mrf.mxu0 }
  0xf3   : > { %v1593_v53 = vpop.f32.mrf.mxu1 }
 0x10c   : > { %v499_v54 = vpop.f32.mrf.mxu0 }
 0x10d   : > { %v505_v55 = vadd.f32 %v499_v54, %v389_v47  ;;  %v614_v56 = vpop.f32.mrf.mxu1 }
 0x10e   : > { %v1612_v57 = vpop.f32.mrf.mxu0 }
 0x10f   : > { %v620_v58 = vadd.f32 %v614_v56, %v505_v55  ;;  %v1632_v59 = vpop.f32.mrf.mxu1 }
 0x110   : > { %v502_v60 = vpop.f32.mrf.mxu0 }
 0x111   : > { %v617_v1 = vpop.f32.mrf.mxu1 }
 0x112   : > { %v1613_v61 = vpop.f32.mrf.mxu0 }
 0x113   : > { %v1633_v62 = vpop.f32.mrf.mxu1 }
 0x12c   : > { %v733_v63 = vpop.f32.mrf.mxu0 }
 0x12d   : > { %v845_v0 = vpop.f32.mrf.mxu1  ;;  %v739_v16 = vadd.f32 %v733_v63, %v620_v58 }
 0x12e   : > { %v1652_v2 = vpop.f32.mrf.mxu0 }
 0x12f   : > { %v1672_v3 = vpop.f32.mrf.mxu1  ;;  %v851_v17 = vadd.f32 %v845_v0, %v739_v16 }
 0x130   : > { %v736_v4 = vpop.f32.mrf.mxu0 }
 0x131   : > { %v848_v5 = vpop.f32.mrf.mxu1 }
 0x132   : > { %v1653_v6 = vpop.f32.mrf.mxu0 }
 0x133   : > { %v1673_v7 = vpop.f32.mrf.mxu1 }
 0x14c   : > { %v952_v8 = vpop.f32.mrf.mxu0 }
 0x14d   : > { %v1073_v9 = vpop.f32.mrf.mxu1  ;;  %v958_v18 = vadd.f32 %v952_v8, %v851_v17 }
 0x14e   : > { %v1692_v10 = vpop.f32.mrf.mxu0 }
 0x14f   : > { %v1712_v11 = vpop.f32.mrf.mxu1  ;;  %v1079_v19 = vadd.f32 %v1073_v9, %v958_v18 }
 0x150   : > { %v955_v12 = vpop.f32.mrf.mxu0 }
 0x151   : > { %v1076_v13 = vpop.f32.mrf.mxu1 }
 0x152   : > { %v1693_v14 = vpop.f32.mrf.mxu0 }
 0x153   : > { %v1713_v15 = vpop.f32.mrf.mxu1 }
 0x16c   : > { %v1185_v20 = vpop.f32.mrf.mxu0 }
 0x16d   : > { %v1191_v22 = vadd.f32 %v1185_v20, %v1079_v19 }
 0x16e   : > { %v1732_v23 = vpop.f32.mrf.mxu0 }
 0x16f   : > { %v1199_v24 = vadd.f32 %v1470_v21, %v1191_v22 }
 0x170   : > { %v1188_v25 = vpop.f32.mrf.mxu0 }
 0x171   : > { %v1200_v26 = vmax.f32 %v1199_v24, 0.0 }
 0x172   : > { %v1733_v27 = vpop.f32.mrf.mxu0 }
 0x173   : > { %v1201_v28 = vpack.c.bf16 %v1200_v26, %v1200_v26 }
 0x175   : > { %1202 = vst [vmem:[%s168_s21] sm:$0xf] %v1201_v28 }
 0x176 PF: > { %s13_s12 = sadd.s32 1, %s1830_s12  }
 0x177   : > { %p10_p4 = scmp.ge.s32.totalorder %s13_s12, 4  }
 0x179   :  { %12 = sbr.rel (!%p10_p4) target bundleno = 1 (0x1), region = 70 }

</bundles_post_ra>
